<compile_context>
chip_gen: v7x
topology: tpu7x:2x2x1
jax: 0.10.0
libtpu: 0.0.40
codegen_flags: <defaults>
</compile_context>

<pallas_src>
import jax
import jax.numpy as jnp
import numpy as np
from jax.experimental import pallas as pl
from jax.experimental.pallas import tpu as pltpu

_EPS = 1e-5
_LANE = 128


# --------------------------------------------------------------------------
# Kernel helpers
# --------------------------------------------------------------------------
def _zero_border(pad_ref):
    """Zero only the 1-pixel spatial border of the padded bf16 scratch."""
    TN, HP, WP, Cp = pad_ref.shape
    zrow = jnp.zeros((TN, 1, WP, Cp), pad_ref.dtype)
    zcol = jnp.zeros((TN, HP, 1, Cp), pad_ref.dtype)
    pad_ref[:, 0:1, :, :] = zrow
    pad_ref[:, HP - 1:HP, :, :] = zrow
    pad_ref[:, :, 0:1, :] = zcol
    pad_ref[:, :, WP - 1:WP, :] = zcol


def _conv3x3_acc(pad_ref, w_ref, M, H, W, Cp):
    """3x3 'same' conv as 9 accumulated MXU dots (no im2col concat copy)."""
    acc = jnp.zeros((M, Cp), jnp.float32)
    for t in range(9):
        dy, dx = divmod(t, 3)
        tap = pad_ref[:, dy:dy + H, dx:dx + W, :].reshape(M, Cp)   # bf16
        acc = acc + jnp.dot(tap, w_ref[t], preferred_element_type=jnp.float32)
    return acc


def _partial_stats(y, stats_ref, Cp):
    """Write per-tile per-channel [sum; sum-of-squares] partials."""
    s = jnp.sum(y, axis=0, keepdims=True)
    ss = jnp.sum(y * y, axis=0, keepdims=True)
    stats_ref[...] = jnp.concatenate([s, ss], axis=0).reshape(1, 2, Cp)


# --------------------------------------------------------------------------
# Pass 1: conv1 + bn1 partial statistics
# --------------------------------------------------------------------------
def conv1_stats_kernel(x_ref, w1_ref, y1_ref, stats_ref, pad_ref):
    TN, H, W, Cp = x_ref.shape
    M = TN * H * W
    _zero_border(pad_ref)
    pad_ref[:, 1:H + 1, 1:W + 1, :] = x_ref[...].astype(jnp.bfloat16)
    y1 = _conv3x3_acc(pad_ref, w1_ref, M, H, W, Cp)
    y1_ref[...] = y1.reshape(TN, H, W, Cp)
    _partial_stats(y1, stats_ref, Cp)


# --------------------------------------------------------------------------
# Pass 2: bn1 + ReLU (fused into bf16 pad write) + conv2 + bn2 partial stats
# --------------------------------------------------------------------------
def bn1_conv2_stats_kernel(y1_ref, sc1_ref, sh1_ref, w2_ref,
                           y2_ref, stats_ref, pad_ref):
    TN, H, W, Cp = y1_ref.shape
    M = TN * H * W
    _zero_border(pad_ref)
    # bn1 + ReLU + f32->bf16 cast fused into the pad-scratch interior write.
    h = jnp.maximum(y1_ref[...] * sc1_ref[...] + sh1_ref[...], 0.0)
    pad_ref[:, 1:H + 1, 1:W + 1, :] = h.astype(jnp.bfloat16)
    y2 = _conv3x3_acc(pad_ref, w2_ref, M, H, W, Cp)
    y2_ref[...] = y2.reshape(TN, H, W, Cp)
    _partial_stats(y2, stats_ref, Cp)


# --------------------------------------------------------------------------
# Pass 3: bn2 + identity skip + ReLU
# --------------------------------------------------------------------------
def bn2_skip_relu_kernel(y2_ref, sc2_ref, sh2_ref, x_ref, out_ref):
    out_ref[...] = jnp.maximum(
        y2_ref[...] * sc2_ref[...] + sh2_ref[...] + x_ref[...], 0.0)


# --------------------------------------------------------------------------
# Wrapper
# --------------------------------------------------------------------------
def _bn_affine(partial_stats, count, gamma, beta):
    """Fold BN (training-mode batch stats) into a per-channel scale/shift."""
    s = jnp.sum(partial_stats[:, 0, :], axis=0)
    ss = jnp.sum(partial_stats[:, 1, :], axis=0)
    mean = s / count
    var = jnp.maximum(ss / count - mean * mean, 0.0)
    # TODO(synk): use a centered (two-pass / Welford) variance for very large
    # N*H*W where E[x^2] - E[x]^2 can cancel in f32.
    scale = gamma * jax.lax.rsqrt(var + _EPS)
    shift = beta - mean * scale
    return scale.reshape(1, -1), shift.reshape(1, -1)


def basic_block_forward(x_nchw, params, *, batch_tile=None):
    """BasicBlock(in_c, out_c, stride=1, downsample=None) forward."""
    N, C, H, W = x_nchw.shape
    w1, w2 = params["w1"], params["w2"]                  # PyTorch OIHW
    assert w1.shape == (C, C, 3, 3) and w2.shape == (C, C, 3, 3), \
        "identity skip requires in_channels == out_channels and stride=1"
    Cp = ((C + _LANE - 1) // _LANE) * _LANE              # lane-dense channels

    # Single wrapper relayout: NCHW -> NHWC + zero-pad channels to Cp.
    x = jnp.transpose(x_nchw, (0, 2, 3, 1)).astype(jnp.float32)
    x = jnp.pad(x, ((0, 0), (0, 0), (0, 0), (0, Cp - C)))

    def pack_w(w):
        # OIHW -> (ky*kx, Cin_p, Cout_p) bf16: one weight slab per tap.
        hwio = jnp.transpose(w, (2, 3, 1, 0)).astype(jnp.float32)
        hwio = jnp.pad(hwio, ((0, 0), (0, 0), (0, Cp - C), (0, Cp - C)))
        return hwio.reshape(9, Cp, Cp).astype(jnp.bfloat16)

    def pack_v(v, fill):
        return jnp.pad(v.astype(jnp.float32), (0, Cp - C), constant_values=fill)

    w1k, w2k = pack_w(w1), pack_w(w2)
    g1, b1 = pack_v(params["g1"], 1.0), pack_v(params["b1"], 0.0)
    g2, b2 = pack_v(params["g2"], 1.0), pack_v(params["b2"], 0.0)

    # ---- batch-tile choice (largest divisor of N fitting a VMEM budget) ----
    def tile_bytes(tn):
        t_f32 = tn * H * W * Cp * 4
        pad_bf16 = tn * (H + 2) * (W + 2) * Cp * 2
        w_bytes = 9 * Cp * Cp * 2
        return 4 * t_f32 + pad_bf16 + w_bytes            # 2x double-buffered io

    if batch_tile is None:
        budget = 24 * 1024 * 1024
        batch_tile = 1
        for tn in range(N, 0, -1):
            if N % tn == 0 and tile_bytes(tn) <= budget:
                batch_tile = tn
                break
    assert N % batch_tile == 0
    TN = batch_tile
    nb = N // TN

    vmem_limit = int(min(64 * 1024 * 1024,
                         max(16 * 1024 * 1024, 2 * tile_bytes(TN))))
    cparams = pltpu.CompilerParams(
        dimension_semantics=("parallel",),               # megacore-split on v7x
        vmem_limit_bytes=vmem_limit,
    )

    tile_spec = pl.BlockSpec((TN, H, W, Cp), lambda i: (i, 0, 0, 0))
    w_spec = pl.BlockSpec((9, Cp, Cp), lambda i: (0, 0, 0))
    vec_spec = pl.BlockSpec((1, Cp), lambda i: (0, 0))
    stats_spec = pl.BlockSpec((1, 2, Cp), lambda i: (i, 0, 0))
    pad_scratch = pltpu.VMEM((TN, H + 2, W + 2, Cp), jnp.bfloat16)

    tile_shape = jax.ShapeDtypeStruct((N, H, W, Cp), jnp.float32)
    stats_shape = jax.ShapeDtypeStruct((nb, 2, Cp), jnp.float32)

    # ---- pass 1: conv1 + bn1 partial stats ----
    y1, st1 = pl.pallas_call(
        conv1_stats_kernel,
        grid=(nb,),
        in_specs=(tile_spec, w_spec),
        out_specs=(tile_spec, stats_spec),
        out_shape=(tile_shape, stats_shape),
        scratch_shapes=[pad_scratch],
        compiler_params=cparams,
    )(x, w1k)

    count = float(N * H * W)
    sc1, sh1 = _bn_affine(st1, count, g1, b1)

    # ---- pass 2: bn1 + relu + conv2 + bn2 partial stats ----
    y2, st2 = pl.pallas_call(
        bn1_conv2_stats_kernel,
        grid=(nb,),
        in_specs=(tile_spec, vec_spec, vec_spec, w_spec),
        out_specs=(tile_spec, stats_spec),
        out_shape=(tile_shape, stats_shape),
        scratch_shapes=[pad_scratch],
        compiler_params=cparams,
    )(y1, sc1, sh1, w2k)

    sc2, sh2 = _bn_affine(st2, count, g2, b2)

    # ---- pass 3: bn2 + identity skip + relu ----
    out = pl.pallas_call(
        bn2_skip_relu_kernel,
        grid=(nb,),
        in_specs=(tile_spec, vec_spec, vec_spec, tile_spec),
        out_specs=tile_spec,
        out_shape=tile_shape,
        compiler_params=cparams,
    )(y2, sc2, sh2, x)

    return jnp.transpose(out[..., :C], (0, 3, 1, 2))     # back to NCHW


# --------------------------------------------------------------------------
# Pure-JAX reference (mirrors the PyTorch module, training-mode BN)
# --------------------------------------------------------------------------
def reference_forward(x_nchw, params):
    def conv(x, w):
        return jax.lax.conv_general_dilated(
            x, w, window_strides=(1, 1), padding=((1, 1), (1, 1)),
            dimension_numbers=("NCHW", "OIHW", "NCHW"))

    def bn(x, g, b):
        mean = jnp.mean(x, axis=(0, 2, 3), keepdims=True)
        var = jnp.mean((x - mean) ** 2, axis=(0, 2, 3), keepdims=True)
        return ((x - mean) * jax.lax.rsqrt(var + _EPS)
                * g.reshape(1, -1, 1, 1) + b.reshape(1, -1, 1, 1))

    out = jax.nn.relu(bn(conv(x_nchw, params["w1"]), params["g1"], params["b1"]))
    out = bn(conv(out, params["w2"]), params["g2"], params["b2"])
    return jax.nn.relu(out + x_nchw)


if __name__ == "__main__":
    N, C, H, W = 2, 4, 16, 16
    key = jax.random.PRNGKey(0)
    kx, k1, k2, kg1, kb1, kg2, kb2 = jax.random.split(key, 7)

    x = jax.random.normal(kx, (N, C, H, W), jnp.float32)
    fan_in = 9 * C
    params = {
        "w1": jax.random.normal(k1, (C, C, 3, 3), jnp.float32) * np.sqrt(2.0 / fan_in),
        "w2": jax.random.normal(k2, (C, C, 3, 3), jnp.float32) * np.sqrt(2.0 / fan_in),
        "g1": 1.0 + 0.1 * jax.random.normal(kg1, (C,), jnp.float32),
        "b1": 0.1 * jax.random.normal(kb1, (C,), jnp.float32),
        "g2": 1.0 + 0.1 * jax.random.normal(kg2, (C,), jnp.float32),
        "b2": 0.1 * jax.random.normal(kb2, (C,), jnp.float32),
    }

    # batch_tile=1 -> grid=(2,) so the BlockSpec pipeline path is exercised.
    out = jax.block_until_ready(basic_block_forward(x, params, batch_tile=1))
    ref = jax.block_until_ready(reference_forward(x, params))

    assert out.shape == (N, C, H, W)
    assert bool(jnp.all(jnp.isfinite(out)))
    # Loose tolerance: conv operands feed the MXU in bf16 (f32 accumulate).
    np.testing.assert_allclose(np.asarray(out), np.asarray(ref),
                               rtol=5e-2, atol=5e-2)
    print("KERNEL_OK")
</pallas_src>

<mosaic_0001>
module attributes {stable_mosaic.version = 11 : i64} {
  func.func @conv1_stats_kernel(%arg0: i32, %arg1: memref<1x16x16x128xf32, #tpu.memory_space<vmem>>, %arg2: memref<9x128x128xbf16, #tpu.memory_space<vmem>>, %arg3: memref<1x16x16x128xf32, #tpu.memory_space<vmem>>, %arg4: memref<1x2x128xf32, #tpu.memory_space<vmem>>, %arg5: memref<1x18x18x128xbf16, #tpu.memory_space<vmem>>) attributes {dimension_semantics = [#tpu.dimension_semantics<parallel>], iteration_bounds = array<i64: 2>, scalar_prefetch = 0 : i64, scratch_operands = 1 : i64, tpu.core_type = #tpu.core_type<tc>, window_params = [{transform_indices = @transform_0, window_bounds = array<i64: 1, 16, 16, 128>}, {pipeline_mode = #tpu.pipeline_mode<synchronous>, transform_indices = @transform_1, window_bounds = array<i64: 9, 128, 128>}, {transform_indices = @transform_2, window_bounds = array<i64: 1, 16, 16, 128>}, {transform_indices = @transform_3, window_bounds = array<i64: 1, 2, 128>}]} {
    %cst = arith.constant 0.000000e+00 : bf16
    %0 = vector.broadcast %cst : bf16 to vector<1x1x18x128xbf16>
    %cst_0 = arith.constant 0.000000e+00 : bf16
    %1 = vector.broadcast %cst_0 : bf16 to vector<1x18x1x128xbf16>
    %c0 = arith.constant 0 : index
    %c0_1 = arith.constant 0 : index
    %c0_2 = arith.constant 0 : index
    %c0_3 = arith.constant 0 : index
    %2 = vector.load %arg5[%c0, %c0_1, %c0_2, %c0_3] : memref<1x18x18x128xbf16, #tpu.memory_space<vmem>>, vector<1x1x18x128xbf16>
    tpu.vector_store %arg5[%c0, %c0_1, %c0_2, %c0_3], %0 {strides = array<i32>} : memref<1x18x18x128xbf16, #tpu.memory_space<vmem>>, vector<1x1x18x128xbf16>,
    %c0_4 = arith.constant 0 : index
    %c17 = arith.constant 17 : index
    %c0_5 = arith.constant 0 : index
    %c0_6 = arith.constant 0 : index
    %3 = vector.load %arg5[%c0_4, %c17, %c0_5, %c0_6] : memref<1x18x18x128xbf16, #tpu.memory_space<vmem>>, vector<1x1x18x128xbf16>
    tpu.vector_store %arg5[%c0_4, %c17, %c0_5, %c0_6], %0 {strides = array<i32>} : memref<1x18x18x128xbf16, #tpu.memory_space<vmem>>, vector<1x1x18x128xbf16>,
    %c0_7 = arith.constant 0 : index
    %c0_8 = arith.constant 0 : index
    %c0_9 = arith.constant 0 : index
    %c0_10 = arith.constant 0 : index
    %4 = vector.load %arg5[%c0_7, %c0_8, %c0_9, %c0_10] : memref<1x18x18x128xbf16, #tpu.memory_space<vmem>>, vector<1x18x1x128xbf16>
    tpu.vector_store %arg5[%c0_7, %c0_8, %c0_9, %c0_10], %1 {strides = array<i32>} : memref<1x18x18x128xbf16, #tpu.memory_space<vmem>>, vector<1x18x1x128xbf16>,
    %c0_11 = arith.constant 0 : index
    %c0_12 = arith.constant 0 : index
    %c17_13 = arith.constant 17 : index
    %c0_14 = arith.constant 0 : index
    %5 = vector.load %arg5[%c0_11, %c0_12, %c17_13, %c0_14] : memref<1x18x18x128xbf16, #tpu.memory_space<vmem>>, vector<1x18x1x128xbf16>
    tpu.vector_store %arg5[%c0_11, %c0_12, %c17_13, %c0_14], %1 {strides = array<i32>} : memref<1x18x18x128xbf16, #tpu.memory_space<vmem>>, vector<1x18x1x128xbf16>,
    %c0_15 = arith.constant 0 : index
    %c0_16 = arith.constant 0 : index
    %c0_17 = arith.constant 0 : index
    %c0_18 = arith.constant 0 : index
    %6 = vector.load %arg1[%c0_15, %c0_16, %c0_17, %c0_18] : memref<1x16x16x128xf32, #tpu.memory_space<vmem>>, vector<1x16x16x128xf32>
    %7 = arith.truncf %6 : vector<1x16x16x128xf32> to vector<1x16x16x128xbf16>
    %c0_19 = arith.constant 0 : index
    %c1 = arith.constant 1 : index
    %c1_20 = arith.constant 1 : index
    %c0_21 = arith.constant 0 : index
    %8 = vector.load %arg5[%c0_19, %c1, %c1_20, %c0_21] : memref<1x18x18x128xbf16, #tpu.memory_space<vmem>>, vector<1x16x16x128xbf16>
    tpu.vector_store %arg5[%c0_19, %c1, %c1_20, %c0_21], %7 {strides = array<i32>} : memref<1x18x18x128xbf16, #tpu.memory_space<vmem>>, vector<1x16x16x128xbf16>,
    %cst_22 = arith.constant 0.000000e+00 : f32
    %9 = vector.broadcast %cst_22 : f32 to vector<256x128xf32>
    %c0_23 = arith.constant 0 : index
    %c0_24 = arith.constant 0 : index
    %c0_25 = arith.constant 0 : index
    %c0_26 = arith.constant 0 : index
    %10 = vector.load %arg5[%c0_23, %c0_24, %c0_25, %c0_26] : memref<1x18x18x128xbf16, #tpu.memory_space<vmem>>, vector<1x16x16x128xbf16>
    %11 = vector.shape_cast %10 : vector<1x16x16x128xbf16> to vector<256x128xbf16>
    %c0_27 = arith.constant 0 : index
    %c0_28 = arith.constant 0 : index
    %c0_29 = arith.constant 0 : index
    %12 = vector.load %arg2[%c0_27, %c0_28, %c0_29] : memref<9x128x128xbf16, #tpu.memory_space<vmem>>, vector<1x128x128xbf16>
    %13 = vector.shape_cast %12 : vector<1x128x128xbf16> to vector<128x128xbf16>
    %cst_30 = arith.constant dense<0.000000e+00> : vector<256x128xf32>
    %14 = tpu.matmul %11, %13, %cst_30 {dimension_numbers = #tpu.dot_dimension_numbers<[1], [0], [0], [1], [0, 0, 1, 1], [], []>} : vector<256x128xbf16>, vector<128x128xbf16>, vector<256x128xf32> -> vector<256x128xf32>
    %15 = arith.addf %9, %14 : vector<256x128xf32>
    %c0_31 = arith.constant 0 : index
    %c0_32 = arith.constant 0 : index
    %c1_33 = arith.constant 1 : index
    %c0_34 = arith.constant 0 : index
    %16 = vector.load %arg5[%c0_31, %c0_32, %c1_33, %c0_34] : memref<1x18x18x128xbf16, #tpu.memory_space<vmem>>, vector<1x16x16x128xbf16>
    %17 = vector.shape_cast %16 : vector<1x16x16x128xbf16> to vector<256x128xbf16>
    %c1_35 = arith.constant 1 : index
    %c0_36 = arith.constant 0 : index
    %c0_37 = arith.constant 0 : index
    %18 = vector.load %arg2[%c1_35, %c0_36, %c0_37] : memref<9x128x128xbf16, #tpu.memory_space<vmem>>, vector<1x128x128xbf16>
    %19 = vector.shape_cast %18 : vector<1x128x128xbf16> to vector<128x128xbf16>
    %cst_38 = arith.constant dense<0.000000e+00> : vector<256x128xf32>
    %20 = tpu.matmul %17, %19, %cst_38 {dimension_numbers = #tpu.dot_dimension_numbers<[1], [0], [0], [1], [0, 0, 1, 1], [], []>} : vector<256x128xbf16>, vector<128x128xbf16>, vector<256x128xf32> -> vector<256x128xf32>
    %21 = arith.addf %15, %20 : vector<256x128xf32>
    %c0_39 = arith.constant 0 : index
    %c0_40 = arith.constant 0 : index
    %c2 = arith.constant 2 : index
    %c0_41 = arith.constant 0 : index
    %22 = vector.load %arg5[%c0_39, %c0_40, %c2, %c0_41] : memref<1x18x18x128xbf16, #tpu.memory_space<vmem>>, vector<1x16x16x128xbf16>
    %23 = vector.shape_cast %22 : vector<1x16x16x128xbf16> to vector<256x128xbf16>
    %c2_42 = arith.constant 2 : index
    %c0_43 = arith.constant 0 : index
    %c0_44 = arith.constant 0 : index
    %24 = vector.load %arg2[%c2_42, %c0_43, %c0_44] : memref<9x128x128xbf16, #tpu.memory_space<vmem>>, vector<1x128x128xbf16>
    %25 = vector.shape_cast %24 : vector<1x128x128xbf16> to vector<128x128xbf16>
    %cst_45 = arith.constant dense<0.000000e+00> : vector<256x128xf32>
    %26 = tpu.matmul %23, %25, %cst_45 {dimension_numbers = #tpu.dot_dimension_numbers<[1], [0], [0], [1], [0, 0, 1, 1], [], []>} : vector<256x128xbf16>, vector<128x128xbf16>, vector<256x128xf32> -> vector<256x128xf32>
    %27 = arith.addf %21, %26 : vector<256x128xf32>
    %c0_46 = arith.constant 0 : index
    %c1_47 = arith.constant 1 : index
    %c0_48 = arith.constant 0 : index
    %c0_49 = arith.constant 0 : index
    %28 = vector.load %arg5[%c0_46, %c1_47, %c0_48, %c0_49] : memref<1x18x18x128xbf16, #tpu.memory_space<vmem>>, vector<1x16x16x128xbf16>
    %29 = vector.shape_cast %28 : vector<1x16x16x128xbf16> to vector<256x128xbf16>
    %c3 = arith.constant 3 : index
    %c0_50 = arith.constant 0 : index
    %c0_51 = arith.constant 0 : index
    %30 = vector.load %arg2[%c3, %c0_50, %c0_51] : memref<9x128x128xbf16, #tpu.memory_space<vmem>>, vector<1x128x128xbf16>
    %31 = vector.shape_cast %30 : vector<1x128x128xbf16> to vector<128x128xbf16>
    %cst_52 = arith.constant dense<0.000000e+00> : vector<256x128xf32>
    %32 = tpu.matmul %29, %31, %cst_52 {dimension_numbers = #tpu.dot_dimension_numbers<[1], [0], [0], [1], [0, 0, 1, 1], [], []>} : vector<256x128xbf16>, vector<128x128xbf16>, vector<256x128xf32> -> vector<256x128xf32>
    %33 = arith.addf %27, %32 : vector<256x128xf32>
    %c0_53 = arith.constant 0 : index
    %c1_54 = arith.constant 1 : index
    %c1_55 = arith.constant 1 : index
    %c0_56 = arith.constant 0 : index
    %34 = vector.load %arg5[%c0_53, %c1_54, %c1_55, %c0_56] : memref<1x18x18x128xbf16, #tpu.memory_space<vmem>>, vector<1x16x16x128xbf16>
    %35 = vector.shape_cast %34 : vector<1x16x16x128xbf16> to vector<256x128xbf16>
    %c4 = arith.constant 4 : index
    %c0_57 = arith.constant 0 : index
    %c0_58 = arith.constant 0 : index
    %36 = vector.load %arg2[%c4, %c0_57, %c0_58] : memref<9x128x128xbf16, #tpu.memory_space<vmem>>, vector<1x128x128xbf16>
    %37 = vector.shape_cast %36 : vector<1x128x128xbf16> to vector<128x128xbf16>
    %cst_59 = arith.constant dense<0.000000e+00> : vector<256x128xf32>
    %38 = tpu.matmul %35, %37, %cst_59 {dimension_numbers = #tpu.dot_dimension_numbers<[1], [0], [0], [1], [0, 0, 1, 1], [], []>} : vector<256x128xbf16>, vector<128x128xbf16>, vector<256x128xf32> -> vector<256x128xf32>
    %39 = arith.addf %33, %38 : vector<256x128xf32>
    %c0_60 = arith.constant 0 : index
    %c1_61 = arith.constant 1 : index
    %c2_62 = arith.constant 2 : index
    %c0_63 = arith.constant 0 : index
    %40 = vector.load %arg5[%c0_60, %c1_61, %c2_62, %c0_63] : memref<1x18x18x128xbf16, #tpu.memory_space<vmem>>, vector<1x16x16x128xbf16>
    %41 = vector.shape_cast %40 : vector<1x16x16x128xbf16> to vector<256x128xbf16>
    %c5 = arith.constant 5 : index
    %c0_64 = arith.constant 0 : index
    %c0_65 = arith.constant 0 : index
    %42 = vector.load %arg2[%c5, %c0_64, %c0_65] : memref<9x128x128xbf16, #tpu.memory_space<vmem>>, vector<1x128x128xbf16>
    %43 = vector.shape_cast %42 : vector<1x128x128xbf16> to vector<128x128xbf16>
    %cst_66 = arith.constant dense<0.000000e+00> : vector<256x128xf32>
    %44 = tpu.matmul %41, %43, %cst_66 {dimension_numbers = #tpu.dot_dimension_numbers<[1], [0], [0], [1], [0, 0, 1, 1], [], []>} : vector<256x128xbf16>, vector<128x128xbf16>, vector<256x128xf32> -> vector<256x128xf32>
    %45 = arith.addf %39, %44 : vector<256x128xf32>
    %c0_67 = arith.constant 0 : index
    %c2_68 = arith.constant 2 : index
    %c0_69 = arith.constant 0 : index
    %c0_70 = arith.constant 0 : index
    %46 = vector.load %arg5[%c0_67, %c2_68, %c0_69, %c0_70] : memref<1x18x18x128xbf16, #tpu.memory_space<vmem>>, vector<1x16x16x128xbf16>
    %47 = vector.shape_cast %46 : vector<1x16x16x128xbf16> to vector<256x128xbf16>
    %c6 = arith.constant 6 : index
    %c0_71 = arith.constant 0 : index
    %c0_72 = arith.constant 0 : index
    %48 = vector.load %arg2[%c6, %c0_71, %c0_72] : memref<9x128x128xbf16, #tpu.memory_space<vmem>>, vector<1x128x128xbf16>
    %49 = vector.shape_cast %48 : vector<1x128x128xbf16> to vector<128x128xbf16>
    %cst_73 = arith.constant dense<0.000000e+00> : vector<256x128xf32>
    %50 = tpu.matmul %47, %49, %cst_73 {dimension_numbers = #tpu.dot_dimension_numbers<[1], [0], [0], [1], [0, 0, 1, 1], [], []>} : vector<256x128xbf16>, vector<128x128xbf16>, vector<256x128xf32> -> vector<256x128xf32>
    %51 = arith.addf %45, %50 : vector<256x128xf32>
    %c0_74 = arith.constant 0 : index
    %c2_75 = arith.constant 2 : index
    %c1_76 = arith.constant 1 : index
    %c0_77 = arith.constant 0 : index
    %52 = vector.load %arg5[%c0_74, %c2_75, %c1_76, %c0_77] : memref<1x18x18x128xbf16, #tpu.memory_space<vmem>>, vector<1x16x16x128xbf16>
    %53 = vector.shape_cast %52 : vector<1x16x16x128xbf16> to vector<256x128xbf16>
    %c7 = arith.constant 7 : index
    %c0_78 = arith.constant 0 : index
    %c0_79 = arith.constant 0 : index
    %54 = vector.load %arg2[%c7, %c0_78, %c0_79] : memref<9x128x128xbf16, #tpu.memory_space<vmem>>, vector<1x128x128xbf16>
    %55 = vector.shape_cast %54 : vector<1x128x128xbf16> to vector<128x128xbf16>
    %cst_80 = arith.constant dense<0.000000e+00> : vector<256x128xf32>
    %56 = tpu.matmul %53, %55, %cst_80 {dimension_numbers = #tpu.dot_dimension_numbers<[1], [0], [0], [1], [0, 0, 1, 1], [], []>} : vector<256x128xbf16>, vector<128x128xbf16>, vector<256x128xf32> -> vector<256x128xf32>
    %57 = arith.addf %51, %56 : vector<256x128xf32>
    %c0_81 = arith.constant 0 : index
    %c2_82 = arith.constant 2 : index
    %c2_83 = arith.constant 2 : index
    %c0_84 = arith.constant 0 : index
    %58 = vector.load %arg5[%c0_81, %c2_82, %c2_83, %c0_84] : memref<1x18x18x128xbf16, #tpu.memory_space<vmem>>, vector<1x16x16x128xbf16>
    %59 = vector.shape_cast %58 : vector<1x16x16x128xbf16> to vector<256x128xbf16>
    %c8 = arith.constant 8 : index
    %c0_85 = arith.constant 0 : index
    %c0_86 = arith.constant 0 : index
    %60 = vector.load %arg2[%c8, %c0_85, %c0_86] : memref<9x128x128xbf16, #tpu.memory_space<vmem>>, vector<1x128x128xbf16>
    %61 = vector.shape_cast %60 : vector<1x128x128xbf16> to vector<128x128xbf16>
    %cst_87 = arith.constant dense<0.000000e+00> : vector<256x128xf32>
    %62 = tpu.matmul %59, %61, %cst_87 {dimension_numbers = #tpu.dot_dimension_numbers<[1], [0], [0], [1], [0, 0, 1, 1], [], []>} : vector<256x128xbf16>, vector<128x128xbf16>, vector<256x128xf32> -> vector<256x128xf32>
    %63 = arith.addf %57, %62 : vector<256x128xf32>
    %64 = vector.shape_cast %63 : vector<256x128xf32> to vector<1x16x16x128xf32>
    %c0_88 = arith.constant 0 : index
    %c0_89 = arith.constant 0 : index
    %c0_90 = arith.constant 0 : index
    %c0_91 = arith.constant 0 : index
    %65 = vector.load %arg3[%c0_88, %c0_89, %c0_90, %c0_91] : memref<1x16x16x128xf32, #tpu.memory_space<vmem>>, vector<1x16x16x128xf32>
    tpu.vector_store %arg3[%c0_88, %c0_89, %c0_90, %c0_91], %64 {strides = array<i32>} : memref<1x16x16x128xf32, #tpu.memory_space<vmem>>, vector<1x16x16x128xf32>,
    %cst_92 = arith.constant dense<0.000000e+00> : vector<128xf32>
    %66 = vector.multi_reduction <add>, %63, %cst_92 [0] : vector<256x128xf32> to vector<128xf32>
    %67 = vector.shape_cast %66 : vector<128xf32> to vector<1x128xf32>
    %68 = arith.mulf %63, %63 : vector<256x128xf32>
    %cst_93 = arith.constant dense<0.000000e+00> : vector<128xf32>
    %69 = vector.multi_reduction <add>, %68, %cst_93 [0] : vector<256x128xf32> to vector<128xf32>
    %70 = vector.shape_cast %69 : vector<128xf32> to vector<1x128xf32>
    %71 = tpu.concatenate %67, %70 in 0 : vector<1x128xf32>, vector<1x128xf32> -> vector<2x128xf32>
    %72 = vector.shape_cast %71 : vector<2x128xf32> to vector<1x2x128xf32>
    %c0_94 = arith.constant 0 : index
    %c0_95 = arith.constant 0 : index
    %c0_96 = arith.constant 0 : index
    %73 = vector.load %arg4[%c0_94, %c0_95, %c0_96] : memref<1x2x128xf32, #tpu.memory_space<vmem>>, vector<1x2x128xf32>
    tpu.vector_store %arg4[%c0_94, %c0_95, %c0_96], %72 {strides = array<i32>} : memref<1x2x128xf32, #tpu.memory_space<vmem>>, vector<1x2x128xf32>,
    return
  }
  func.func @transform_0(%arg0: i32) -> (i32, i32, i32, i32) {
    %c0_i32 = arith.constant 0 : i32
    %c0_i32_0 = arith.constant 0 : i32
    %c0_i32_1 = arith.constant 0 : i32
    %c0_i32_2 = arith.constant 0 : i32
    return %arg0, %c0_i32, %c0_i32_0, %c0_i32_1 : i32, i32, i32, i32
  }
  func.func @transform_1(%arg0: i32) -> (i32, i32, i32) {
    %c0_i32 = arith.constant 0 : i32
    %c0_i32_0 = arith.constant 0 : i32
    %c0_i32_1 = arith.constant 0 : i32
    %c0_i32_2 = arith.constant 0 : i32
    return %c0_i32, %c0_i32_0, %c0_i32_1 : i32, i32, i32
  }
  func.func @transform_2(%arg0: i32) -> (i32, i32, i32, i32) {
    %c0_i32 = arith.constant 0 : i32
    %c0_i32_0 = arith.constant 0 : i32
    %c0_i32_1 = arith.constant 0 : i32
    %c0_i32_2 = arith.constant 0 : i32
    return %arg0, %c0_i32, %c0_i32_0, %c0_i32_1 : i32, i32, i32, i32
  }
  func.func @transform_3(%arg0: i32) -> (i32, i32, i32) {
    %c0_i32 = arith.constant 0 : i32
    %c0_i32_0 = arith.constant 0 : i32
    %c0_i32_1 = arith.constant 0 : i32
    return %arg0, %c0_i32, %c0_i32_0 : i32, i32, i32
  }
}

</mosaic_0001>

<bundles_post_ra>
// kernel: tpu_custom_call.1
= control target key start
LH: loop header
LB: loop body
LE: loop exit
PB: predicated region body
PF: predicated region fallthrough
CT: control target
= control target key end

     0   :  { %9 = vsyncpa [#allocation4], 0  ;;  %s9573_s0 = inlined_call_operand.hbm [shape: f32[2,16,16,128], index: 0, kind: input, shape index: {}]   ;;  %s9574_s1 = inlined_call_operand.hbm [shape: bf16[9,128,128], index: 1, kind: input, shape index: {}]   ;;  %s9575_s2 = inlined_call_operand.hbm [shape: f32[2,16,16,128], index: 2, kind: output, shape index: {0}]   ;;  %s9576_s3 = inlined_call_operand.hbm [shape: f32[2,2,128], index: 3, kind: output, shape index: {1}]  }
   0x1   :  { %11 = vsyncpa [#allocation4 + $0x1], 0 }
   0x2   :  { %12 = vsyncpa [#allocation7], 0 }
   0x3   :  { %13 = vsyncpa [#allocation5], 0 }
   0x4   :  { %15 = vsyncpa [#allocation5 + $0x1], 0 }
   0x5   :  { %16 = vsyncpa [#allocation10], 0 }
   0x6   :  { %18 = vsyncpa [#allocation10 + $0x1], 0  ;;  %s7722_s12 = smov 0   ;;  %s7724_s13 = smov 0  }
   0x7   :  { %s7726_s14 = smov 0   ;;  %s7728_s15 = smov 0  }
   0x8 LB: > { %s7743_s16 = sadd.s32 4294967295, %s7689_s15   ;;  %s5997_s17 = sadd.s32 4294967294, %s7689_s15   ;;  %s7689_s15 = sphi %s7728_s15, %s9678_s15   ;;  %s7685_s14 = sphi %s7726_s14, %s9677_s14   ;;  %s7681_s13 = sphi %s7724_s13, %s9676_s13   ;;  %s7677_s12 = sphi %s7722_s12, %s9675_s12  }
   0x9   : > { %p44_p0 = scmp.ne.s32.totalorder %s7681_s13, %s7677_s12  ;;  %p9577_p1 = scmp.eq.s32.totalorder %s7743_s16, 0 }
   0xa   : > { %p95_p3 = scmp.eq.s32.totalorder %s5997_s17, 1  ;;  %p5998_p5 = scmp.ge.s32.totalorder %s7689_s15, 1 }
   0xb   : > { %p7752_p4 = por %p9577_p1, %p44_p0  ;;  %p128_p7 = scmp.lt.s32.totalorder %s7689_s15, 3 }
   0xc   : > { %p7757_p6 = por %p95_p3, %p44_p0  ;;  %s7691_s21 = smov [#allocation6]  }
   0xd   : > { %s9595_s18 = scalar_select %p7752_p4, 1, 0 }
   0xe   : > { %s9596_s19 = scalar_select %p7757_p6, 1, 0 }
   0xf   : > { %p7762_p8 = pnand %p5998_p5, %p128_p7  ;;  %s140_s22 = sshll.u32 %s7691_s21, 4  ;;  %s7766_s22 = int_to_ptr.vmem [resolvable:$true] %s140_s22 }
  0x10   : > { %s7778_s24 = sadd.s32 1, %s7689_s15   ;;  %s31_s25 = sadd.s32 1, %s7685_s14 }
  0x11   : > { %s9597_s20 = scalar_select %p7762_p8, 1, 0 }
  0x12   : > { %p7276_p9 = pneg %p7762_p8  ;;  %s28_s26 = ssub.s32 %s7689_s15, %s7778_s24 }
  0x13   : > { %s7529_s29 = scalar_lea.hbm %s9574_s1, 9216 }
  0x14   : > { %p7773_p11 = pnand %p7276_p9, %p9577_p1  ;;  %p7530_p12 = scmp.ne.s32.totalorder %s9574_s1, %s7529_s29 }
  0x15   : > { %p7536_p5 = scmp.lt.u32.totalorder %s7529_s29, %s9574_s1 }
  0x16   : > { %p7531_p13 = pneg %p7773_p11 }
  0x18   : > { %p7532_p0 = pnand %p7531_p13, %p7530_p12 }
  0x1a   : > { %p7533_p3 = pneg %p7532_p0 }
  0x1c   : > { %p7538_p7 = pnand %p7536_p5, %p7533_p3 }
  0x1e   : > { %7541 = shalt.err (!%p7538_p7)
}
  0x1f   : > { %s7542_s7 = scalar_lea.vmem %s7766_s22, 9216  ;;  %p7550_p2 = scmp.lt.s32.totalorder %s7766_s22, %s7766_s22 }
  0x20   : > { %p7543_p9 = scmp.ne.s32.totalorder %s7766_s22, %s7542_s7  ;;  %p7551_p6 = scmp.lt.s32.totalorder %s7542_s7, %s7542_s7 }
  0x22   : > { %p7545_p10 = pnand %p7543_p9, %p7531_p13  ;;  %p7552_p4 = por %p7551_p6, %p7550_p2 }
  0x24   : > { %p7546_p1 = pneg %p7545_p10 }
  0x26   : > { %p7553_p8 = pnand %p7552_p4, %p7546_p1 }
  0x28   : > { %7556 = shalt.err (!%p7553_p8)
}
  0x29   : > { %s7692_s8 = smov 64   ;;  %s7693_s9 = smov 4  }
  0x2a   : > { %7279 = dma.hbm_to_vmem [thread:$0]  (!%p7773_p11), %s9574_s1, 9216, %s7766_s22, [#allocation7], %s7692_s8, %s7692_s8, %s7693_s9  }
  0x2b   : > { %p29_p2 = scmp.eq.s32.totalorder %s28_s26, 0  ;;  %p38_p1 = scmp.ne.s32.totalorder %s7685_s14, %s7681_s13 }
  0x2c   : > { %p39_p4 = scmp.eq.s32.totalorder %s7689_s15, 0  ;;  %p7292_p6 = scmp.lt.s32.totalorder %s7689_s15, 2 }
  0x2d   : > { %s7809_s17 = scalar_select %p29_p2, %s7685_s14, %s31_s25  }
  0x2e   : > { %p40_p8 = por %p39_p4, %p38_p1  ;;  %p9599_p10 = scmp.eq.s32.totalorder %s7743_s16, 1 }
  0x2f   : > { %s154_s27 = sand.u32 1, %s7685_s14   ;;  %s6312_s28 = sshll.u32 %s7689_s15, 12 }
  0x30   : > { %p7813_p12 = por %p9599_p10, %p38_p1  ;;  %s6001_s29 = sshll.u32 %s154_s27, 8 }
  0x31   : > { %s7822_s4 = scalar_lea.hbm %s9573_s0, %s6312_s28  ;;  %s158_s22 = scalar_lea.vmem [#allocation3], %s6001_s29 }
  0x32   : > { %s165_s25 = sshll.u32 %s158_s22, 4  ;;  %p7824_p11 = pnand %p7292_p6, %p40_p8  ;;  %s7828_s25 = int_to_ptr.vmem [resolvable:$true] %s165_s25 }
  0x33   : > { %s7830_s5 = scalar_lea.sflag [#allocation4], %s154_s27  ;;  %s7557_s6 = scalar_lea.hbm %s7822_s4, 4096 }
  0x34   : > { %p7558_p13 = scmp.ne.s32.totalorder %s7822_s4, %s7557_s6  ;;  %p7559_p0 = pneg %p7824_p11 }
  0x35   : > { %s7562_s9 = scalar_lea.hbm %s9573_s0, 8192  ;;  %p7563_p7 = scmp.lt.u32.totalorder %s7822_s4, %s9573_s0 }
  0x36   : > { %p7560_p3 = pnand %p7559_p0, %p7558_p13  ;;  %p7564_p9 = scmp.lt.u32.totalorder %s7562_s9, %s7557_s6 }
  0x37   : > { %p7566_p1 = scmp.lt.u32.totalorder %s7557_s6, %s7822_s4 }
  0x38   : > { %p7561_p5 = pneg %p7560_p3  ;;  %p7565_p2 = por %p7564_p9, %p7563_p7 }
  0x3a   : > { %p7567_p4 = por %p7566_p1, %p7565_p2 }
  0x3c   : > { %p7568_p6 = pnand %p7567_p4, %p7561_p5 }
  0x3e   : > { %7571 = shalt.err (!%p7568_p6)
}
  0x3f   : > { %s7572_s27 = scalar_lea.vmem %s7828_s25, 4096  ;;  %s7694_s28 = smov [#allocation3]  }
  0x40   : > { %p7573_p8 = scmp.ne.s32.totalorder %s7828_s25, %s7572_s27  ;;  %s7577_s29 = sshll.u32 %s7694_s28, 4  ;;  %s7578_s29 = int_to_ptr.vmem [resolvable:$false] %s7577_s29 }
  0x41   : > { %s7579_s23 = scalar_lea.vmem %s7578_s29, 8192  ;;  %p7580_p3 = scmp.lt.s32.totalorder %s7828_s25, %s7578_s29 }
  0x42   : > { %p7575_p10 = pnand %p7573_p8, %p7559_p0  ;;  %p7581_p7 = scmp.lt.s32.totalorder %s7579_s23, %s7572_s27 }
  0x44   : > { %p7576_p13 = pneg %p7575_p10  ;;  %p7582_p9 = por %p7581_p7, %p7580_p3 }
  0x46   : > { %p7583_p2 = pnand %p7582_p9, %p7576_p13 }
  0x48   : > { %7586 = shalt.err (!%p7583_p2)
}
  0x49   : > { %s7695_s30 = smov 128   ;;  %s7696_s22 = smov 8  }
  0x4a   : > { %7283 = dma.hbm_to_vmem [thread:$0]  (!%p7824_p11), %s7822_s4, 4096, %s7828_s25, %s7830_s5, %s7695_s30, %s7695_s30, %s7696_s22  }
  0x4b   : > { %p9602_p0 = scmp.ne.s32.totalorder %s9597_s20, 0 }
  0x4d   : > { %177 = sbr.rel (%p9602_p0) target bundleno = 787 (0x313), region = 28 }
  0x54   : > { %s7861_s6 = sand.u32 1, %s7681_s13   ;;  %p9603_p5 = scmp.ne.s32.totalorder %s9595_s18, 0 }
  0x55   : > { %s6005_s7 = sshll.u32 %s7861_s6, 8  ;;  %s180_s8 = scalar_lea.sflag [#allocation4], %s7861_s6 }
  0x56   : > { %s7867_s9 = scalar_lea.vmem [#allocation3], %s6005_s7 }
  0x57   : > { %7660 = dma.done.wait (%p9603_p5), %s180_s8, 4096  }
  0x58   : > { %7662 = vsyncadd (%p9603_p5), %s180_s8, 4294963200  ;;  %p9604_p11 = scmp.eq.s32.totalorder %s7743_s16, 0 }
  0x5a   : > { %7664 = dma.done.wait (%p9604_p11), [#allocation7], 9216   ;;  %p9605_p1 = pmov %p9604_p11 }
  0x5b   : > { %v7697_v0 = vmov 0   ;;  %v7335_v1 = vld [vmem:[#allocation6 + $0x40] sm:$0xff]   ;;  %v7337_v3 = vld [vmem:[#allocation6 + $0x48] sm:$0xff]   ;;  %v7339_v5 = vld [vmem:[#allocation6 + $0x50] sm:$0xff]   ;;  %vm223_vm0 = vcmask 1040384   ;;  %v9608_v10 = vmov 0 }
  0x5c   : > { %7666 = vsyncadd (%p9605_p1), [#allocation7], 4294958080  ;;  %216 = vst [vmem:[#allocation2] sm:$0xf] %v7697_v0  ;;  %v7336_v2 = vld [vmem:[#allocation6 + $0x100] sm:$0xff]   ;;  %6562 = vmatprep.subr.bf16.mxu1 %v7335_v1  ;;  %v7338_v4 = vld [vmem:[#allocation6 + $0x108] sm:$0xff]  }
  0x5d   : > { %217 = vst [vmem:[#allocation2 + $0x4] sm:$0xf] %v7697_v0  ;;  %218 = vst [vmem:[#allocation2 + $0x8] sm:$0x1] %v7697_v0  ;;  %6754 = vmatprep.subr.bf16.mxu0 %v7336_v2  ;;  %6563 = vmatpush3.bf16.msra.mxu1 %v7335_v1  ;;  %v7340_v6 = vld [vmem:[#allocation6 + $0x110] sm:$0xff]   ;;  %v7341_v7 = vld [vmem:[#allocation6 + $0x58] sm:$0xff]  }
  0x5e   : > { %220 = vst [vmem:[#allocation2 + $0xcc] sm:$0xf] %v7697_v0  ;;  %221 = vst [vmem:[#allocation2 + $0xd0] sm:$0xf] %v7697_v0  ;;  %6755 = vmatpush3.bf16.msra.mxu0 %v7336_v2  ;;  %6564 = vmatprep.subr.bf16.mxu1 %v7337_v3  ;;  %vm224_vm1 = vsmask.f32 256 }
  0x5f   : > { %222 = vst [vmem:[#allocation2 + $0xd4] sm:$0x1] %v7697_v0  ;;  %6756 = vmatprep.subr.bf16.mxu0 %v7338_v4  ;;  %vm280_vm2 = vsmask.f32 7938  ;;  %v7342_v8 = vld [vmem:[#allocation6 + $0x118] sm:$0xff]   ;;  %vm7879_vm3 = vmand %vm223_vm0, %vm224_vm1  ;;  %v7343_v11 = vld [vmem:[#allocation6 + $0x60] sm:$0xff]  }
  0x60   : > { %vm7885_vm4 = vmand %vm223_vm0, %vm280_vm2  ;;  %v7344_v12 = vld [vmem:[#allocation6 + $0x120] sm:$0xff]   ;;  %v7345_v13 = vld [vmem:[#allocation6 + $0x68] sm:$0xff]   ;;  %vm464_vm5 = vsmask.f32 4368  ;;  %vm965_vm6 = vsmask.f32 3328 }
  0x61   : > { %6565 = vmatpush3.bf16.msra.mxu1 %v7337_v3  ;;  %v9609_v10 = vsel %vm7885_vm4, 4294967295, %v9608_v10  ;;  %v7346_v14 = vld [vmem:[#allocation6 + $0x128] sm:$0xff]   ;;  %vm966_vm7 = vsmask.f32 7440  ;;  %v229_v22 = vld [vmem:[#allocation2 + $0xc] sm:$0x1]  ;;  %vm7919_vm10 = vmor %vm224_vm1, %vm464_vm5 }
  0x62   : > { %6757 = vmatpush3.bf16.msra.mxu0 %v7338_v4  ;;  %6566 = vmatprep.subr.bf16.mxu1 %v7339_v5  ;;  %9610 = vst [vmem:[#allocation15_spill] sm:$0xff] %v9609_v10  ;;  %v230_v23 = vsel %vm7879_vm3, 0, %v229_v22  ;;  %v285_v24 = vld [vmem:[#allocation2 + $0x14] sm:$0x1]  ;;  %v336_v25 = vld [vmem:[%s7867_s9] sm:$0xff]  ;;  %v337_v26 = vld [vmem:[%s7867_s9 + $0x8] sm:$0xff] }
  0x63   : > { %6758 = vmatprep.subr.bf16.mxu0 %v7340_v6  ;;  %v226_v15 = vld [vmem:[#allocation2] sm:$0x1]  ;;  %vm787_vm8 = vcmask 1043456   ;;  %v7347_v27 = vld [vmem:[#allocation6 + $0x70] sm:$0xff]   ;;  %231 = vst [vmem:[#allocation2 + $0xc] sm:$0x1] %v230_v23  ;;  %v6313_v31 = vpack.c.bf16 %v336_v25, %v336_v25  ;;  %v6314_v32 = vpack.c.bf16 %v337_v26, %v337_v26  ;;  %vm7929_vm11 = vmor %vm965_vm6, %vm966_vm7 }
  0x64   : > { %v282_v16 = vld [vmem:[#allocation2 + $0x8] sm:$0x1]  ;;  %v902_v17 = vld [vmem:[#allocation2 + $0x4] sm:$0xf]  ;;  %v227_v18 = vsel %vm7879_vm3, 0, %v226_v15  ;;  %v286_v30 = vsel %vm7885_vm4, 0, %v285_v24  ;;  %vm7912_vm9 = vmand %vm787_vm8, %vm280_vm2 }
  0x65   : > { %6567 = vmatpush3.bf16.msra.mxu1 %v7339_v5  ;;  %v283_v19 = vsel %vm7885_vm4, 0, %v282_v16  ;;  %v978_v20 = vshll.u32 %v902_v17, 16  ;;  %v982_v21 = vshrl.u32 %v902_v17, 16  ;;  %228 = vst [vmem:[#allocation2] sm:$0x1] %v227_v18  ;;  %v7348_v35 = vld [vmem:[#allocation6 + $0x130] sm:$0xff]  }
  0x66   : > { %6759 = vmatpush3.bf16.msra.mxu0 %v7340_v6  ;;  %6568 = vmatprep.subr.bf16.mxu1 %v7341_v7  ;;  %284 = vst [vmem:[#allocation2 + $0x8] sm:$0x1] %v283_v19  ;;  %287 = vst [vmem:[#allocation2 + $0x14] sm:$0x1] %v286_v30  ;;  %v232_v33 = vld [vmem:[#allocation2 + $0x18] sm:$0x1] }
  0x67   : > { %6760 = vmatprep.subr.bf16.mxu0 %v7342_v8  ;;  %v7897_v28 = vrot.slane %v978_v20, 5  ;;  %v984_v29 = vrot.slane %v982_v21, 4  ;;  %v288_v34 = vld [vmem:[#allocation2 + $0x20] sm:$0x1]  ;;  %v467_v37 = vshrl.u32 %v6313_v31, 16  ;;  %v470_v38 = vshll.u32 %v6313_v31, 16 }
  0x68   : > { %v233_v39 = vsel %vm7879_vm3, 0, %v232_v33  ;;  %v338_v40 = vld [vmem:[%s7867_s9 + $0x10] sm:$0xff]  ;;  %v339_v41 = vld [vmem:[%s7867_s9 + $0x18] sm:$0xff]  ;;  %v475_v43 = vshrl.u32 %v6314_v32, 16  ;;  %v478_v44 = vshll.u32 %v6314_v32, 16  ;;  %v289_v45 = vsel %vm7885_vm4, 0, %v288_v34 }
  0x69   : > { %6569 = vmatpush3.bf16.msra.mxu1 %v7341_v7  ;;  %v985_v36 = vor.u32 %v984_v29, %v7897_v28  ;;  %v7349_v42 = vld [vmem:[#allocation6 + $0x78] sm:$0xff]   ;;  %234 = vst [vmem:[#allocation2 + $0x18] sm:$0x1] %v233_v39  ;;  %v6315_v46 = vpack.c.bf16 %v338_v40, %v338_v40  ;;  %v469_v49 = vrot.slane %v467_v37, 7  ;;  %290 = vst [vmem:[#allocation2 + $0x20] sm:$0x1] %v289_v45 }
  0x6a   : > { %6761 = vmatpush3.bf16.msra.mxu0 %v7342_v8  ;;  %6570 = vmatprep.subr.bf16.mxu1 %v7343_v11  ;;  %v7350_v47 = vld [vmem:[#allocation6 + $0x138] sm:$0xff]   ;;  %v6316_v50 = vpack.c.bf16 %v339_v41, %v339_v41  ;;  %v477_v51 = vrot.slane %v475_v43, 7  ;;  %v340_v55 = vld [vmem:[%s7867_s9 + $0x20] sm:$0xff]  ;;  %v789_v1 = vld [vmem:[#allocation2 + $0xc] sm:$0xf]  ;;  %vm1995_vm12 = vcmask 1042432  }
  0x6b   : > { %6762 = vmatprep.subr.bf16.mxu0 %v7344_v12  ;;  %v7908_v48 = vrot.slane %v985_v36, 4  ;;  %v484_v53 = vshrl.u32 %v6315_v46, 16  ;;  %v487_v54 = vshll.u32 %v6315_v46, 16  ;;  %v472_v58 = vor.u32 %v470_v38, %v469_v49  ;;  %v7923_v2 = vld [vmem:[#allocation6] sm:$0xff]   ;;  %v291_v18 = vld [vmem:[#allocation2 + $0x2c] sm:$0x1] }
  0x6c   : > { %v901_v56 = vld [vmem:[#allocation2] sm:$0xf]  ;;  %v473_v59 = vrot.slane %v469_v49, 4  ;;  %v492_v60 = vshrl.u32 %v6316_v50, 16  ;;  %v7925_v3 = vpack.c.bf16 %v340_v55, %v340_v55  ;;  %v480_v5 = vor.u32 %v478_v44, %v477_v51  ;;  %v294_v40 = vld [vmem:[#allocation2 + $0x38] sm:$0x1] }
  0x6d   : > { %6571 = vmatpush3.bf16.msra.mxu1 %v7343_v11  ;;  %v949_v57 = vld [vmem:[#allocation2 + $0x8] sm:$0x1]  ;;  %v969_v61 = vshrl.u32 %v901_v56, 16  ;;  %v972_v62 = vshll.u32 %v901_v56, 16  ;;  %v482_v6 = vrot.slane %v477_v51, 4  ;;  %v790_v7 = vsel %vm7912_vm9, %v472_v58, %v789_v1  ;;  %v341_v24 = vld [vmem:[%s7867_s9 + $0x28] sm:$0xff] }
  0x6e   : > { %6763 = vmatpush3.bf16.msra.mxu0 %v7344_v12  ;;  %6572 = vmatprep.subr.bf16.mxu1 %v7345_v13  ;;  %v988_v63 = vshll.u32 %v949_v57, 16  ;;  %v793_v8 = vld [vmem:[#allocation2 + $0x14] sm:$0x1]  ;;  %v486_v11 = vrot.slane %v484_v53, 7  ;;  %v7935_v12 = vld [vmem:[#allocation6 + $0x140] sm:$0xff]   ;;  %v494_v17 = vrot.slane %v492_v60, 7  ;;  %v481_v19 = vsel %vm7919_vm10, %v473_v59, %v480_v5 }
  0x6f   : > { %6764 = vmatprep.subr.bf16.mxu0 %v7346_v14  ;;  %v974_v15 = vrot.slane %v972_v62, 5  ;;  %791 = vst [vmem:[#allocation2 + $0xc] sm:$0xf] %v790_v7  ;;  %v794_v20 = vsel %vm7879_vm3, %v482_v6, %v793_v8  ;;  %792 = vst [vmem:[#allocation2 + $0x10] sm:$0xf] %v481_v19  ;;  %v292_v33 = vsel %vm7885_vm4, 0, %v291_v18  ;;  %v6318_v34 = vpack.c.bf16 %v341_v24, %v341_v24 }
  0x70   : > { %v990_v16 = vrot.slane %v988_v63, 5  ;;  %v489_v21 = vor.u32 %v487_v54, %v486_v11  ;;  %v490_v22 = vrot.slane %v486_v11, 4  ;;  %v796_v23 = vld [vmem:[#allocation2 + $0x18] sm:$0xf]  ;;  %795 = vst [vmem:[#allocation2 + $0x14] sm:$0x1] %v794_v20 }
  0x71   : > { %6573 = vmatpush3.bf16.msra.mxu1 %v7345_v13  ;;  %v235_v13 = vld [vmem:[#allocation2 + $0x24] sm:$0x1]  ;;  %v499_v29 = vrot.slane %v494_v17, 4  ;;  %v800_v30 = vld [vmem:[#allocation2 + $0x20] sm:$0x1]  ;;  %v501_v39 = vshrl.u32 %v7925_v3, 16 }
  0x72   : > { %6765 = vmatpush3.bf16.msra.mxu0 %v7346_v14  ;;  %6574 = vmatprep.subr.bf16.mxu1 %v7347_v27  ;;  %v971_v14 = vrot.slane %v969_v61, 4  ;;  %v991_v26 = vsel %vm7929_vm11, %v7908_v48, %v990_v16  ;;  %v797_v31 = vsel %vm7912_vm9, %v489_v21, %v796_v23  ;;  %v236_v32 = vsel %vm7879_vm3, 0, %v235_v13  ;;  %293 = vst [vmem:[#allocation2 + $0x2c] sm:$0x1] %v292_v33  ;;  %v342_v41 = vld [vmem:[%s7867_s9 + $0x30] sm:$0xff]  ;;  %v343_v45 = vld [vmem:[%s7867_s9 + $0x38] sm:$0xff] }
  0x73   : > { %6766 = vmatprep.subr.bf16.mxu0 %v7348_v35  ;;  %798 = vst [vmem:[#allocation2 + $0x18] sm:$0xf] %v797_v31  ;;  %v801_v38 = vsel %vm7879_vm3, %v499_v29, %v800_v30  ;;  %237 = vst [vmem:[#allocation2 + $0x24] sm:$0x1] %v236_v32  ;;  %v509_v43 = vshrl.u32 %v6318_v34, 16  ;;  %v7966_v48 = vrot.slane %v501_v39, 7  ;;  %v7979_v63 = vpack.c.bf16 %v342_v41, %v342_v41 }
  0x74   : > { %v975_v25 = vor.u32 %v974_v15, %v971_v14  ;;  %802 = vst [vmem:[#allocation2 + $0x20] sm:$0x1] %v801_v38  ;;  %v295_v49 = vsel %vm7885_vm4, 0, %v294_v40  ;;  %v512_v55 = vshll.u32 %v6318_v34, 16  ;;  %v7981_v1 = vpack.c.bf16 %v343_v45, %v343_v45  ;;  %v7385_v52 = vld [vmem:[#allocation6 + $0x98] sm:$0xff]   ;;  %v7402_v9 = vld [vmem:[#allocation6 + $0xb0] sm:$0xff]  }
  0x75   : > { %6575 = vmatpush3.bf16.msra.mxu1 %v7347_v27  ;;  %v495_v27 = vshll.u32 %v6316_v50, 16  ;;  %v7970_v54 = vrot.slane %v509_v43, 7  ;;  %296 = vst [vmem:[#allocation2 + $0x38] sm:$0x1] %v295_v49  ;;  %vm1996_vm13 = vcmask 1046532   ;;  %s9451_s18 = scalar_lea.vmem [#allocation8], %s6005_s7 }
  0x76   : > { %6767 = vmatpush3.bf16.msra.mxu0 %v7348_v35  ;;  %6576 = vmatprep.subr.bf16.mxu1 %v7349_v42  ;;  %v238_v35 = vld [vmem:[#allocation2 + $0x30] sm:$0x1]  ;;  %v976_v36 = vrot.slane %v975_v25, 4  ;;  %v2818_v51 = vld [vmem:[#allocation2 + $0xc] sm:$0xf]  ;;  %vm8202_vm14 = vmor %vm1995_vm12, %vm1996_vm13  ;;  %s6345_s20 = sshll.u32 %s7743_s16, 12 }
  0x77   : > { %6768 = vmatprep.subr.bf16.mxu0 %v7350_v47  ;;  %v497_v37 = vor.u32 %v495_v27, %v494_v17  ;;  %v239_v44 = vsel %vm7879_vm3, 0, %v238_v35  ;;  %v903_v53 = vld [vmem:[#allocation2 + $0xc] sm:$0xf]  ;;  %v2867_v56 = vshrl.u32 %v2818_v51, 16  ;;  %v2870_v57 = vshll.u32 %v2818_v51, 16  ;;  %s5869_s4 = sshll.u32 %s9451_s18, 4  ;;  %s9492_s5 = scalar_lea.hbm %s9575_s2, %s6345_s20  ;;  %s9494_s4 = int_to_ptr.vmem [resolvable:$true] %s5869_s4 }
  0x78   : > { %v981_v46 = vsel %vm7929_vm11, %v976_v36, %v7897_v28  ;;  %240 = vst [vmem:[#allocation2 + $0x30] sm:$0x1] %v239_v44  ;;  %v993_v28 = vshrl.u32 %v903_v53, 16  ;;  %v996_v58 = vshll.u32 %v903_v53, 16  ;;  %v7972_v59 = vld [vmem:[#allocation2 + $0x10] sm:$0xf]  ;;  %v7987_v15 = vor.u32 %v512_v55, %v7970_v54 }
  0x79   : > { %6577 = vmatpush3.bf16.msra.mxu1 %v7349_v42  ;;  %v504_v42 = vshll.u32 %v7925_v3, 16  ;;  %v6041_v50 = vcombine.low %v981_v46, %v991_v26  ;;  %v7974_v60 = vld [vmem:[#allocation2 + $0x14] sm:$0x1]  ;;  %v904_v61 = vld [vmem:[#allocation2 + $0x10] sm:$0xf]  ;;  %v2869_v3 = vrot.slane %v2867_v56, 4 }
  0x7a   : > { %6769 = vmatpush3.bf16.msra.mxu0 %v7350_v47  ;;  %6610 = vmatprep.subr.bf16.mxu1 %v7923_v2  ;;  %v498_v47 = vsel %vm7919_vm10, %v490_v22, %v497_v37  ;;  %v2872_v5 = vrot.slane %v2870_v57, 5  ;;  %v2876_v6 = vshll.u32 %v7972_v59, 16  ;;  %v2880_v7 = vshrl.u32 %v7972_v59, 16  ;;  %v950_v8 = vld [vmem:[#allocation2 + $0x14] sm:$0x1]  ;;  %s5851_s10 = scalar_lea.sflag [#allocation5], %s7861_s6 }
  0x7b   : > { %6802 = vmatprep.subr.bf16.mxu0 %v7935_v12  ;;  %799 = vst [vmem:[#allocation2 + $0x1c] sm:$0xf] %v498_v47  ;;  %6578 = vmatprep.mubr.bf16.mxu1 %v6041_v50  ;;  %v7977_v62 = vor.u32 %v504_v42, %v7966_v48  ;;  %v2886_v11 = vshll.u32 %v7974_v60, 16  ;;  %v995_v13 = vrot.slane %v993_v28, 4  ;;  %v998_v14 = vrot.slane %v996_v58, 5  ;;  %s7587_s11 = scalar_lea.vmem %s9494_s4, 4096 }
  0x7c   : > { %v2873_v16 = vor.u32 %v2872_v5, %v2869_v3  ;;  %v2878_v17 = vrot.slane %v2876_v6, 5  ;;  %v2882_v18 = vrot.slane %v2880_v7, 4  ;;  %v1002_v19 = vshll.u32 %v904_v61, 16  ;;  %v2821_v20 = vld [vmem:[#allocation2 + $0x18] sm:$0xf]  ;;  %p7588_p4 = scmp.ne.s32.totalorder %s9494_s4, %s7587_s11  ;;  %s7698_s27 = smov [#allocation8]  }
  0x7d   : > { %v3641_v21 = vrot.slane %v7974_v60, 5  ;;  %v999_v22 = vor.u32 %v998_v14, %v995_v13  ;;  %v1006_v23 = vshrl.u32 %v904_v61, 16  ;;  %v1012_v24 = vshll.u32 %v950_v8, 16  ;;  %v7992_v34 = vld [vmem:[#allocation2 + $0x20] sm:$0x1]  ;;  %s7591_s28 = sshll.u32 %s7698_s27, 4  ;;  %s7592_s28 = int_to_ptr.vmem [resolvable:$false] %s7591_s28 }
  0x7e   : > { %v2874_v25 = vrot.slane %v2873_v16, 4  ;;  %v2883_v26 = vor.u32 %v2882_v18, %v2878_v17  ;;  %v2888_v27 = vrot.slane %v2886_v11, 5  ;;  %v1004_v29 = vrot.slane %v1002_v19, 5  ;;  %v905_v44 = vld [vmem:[#allocation2 + $0x18] sm:$0xf]  ;;  %v7354_v19 = vld [vmem:[#allocation6 + $0x8] sm:$0xff]   ;;  %p7589_p6 = pnand %p7588_p4, %p7813_p12  ;;  %p7594_p10 = scmp.lt.s32.totalorder %s9494_s4, %s7592_s28 }
  0x7f   : > { %v1000_v31 = vrot.slane %v999_v22, 4  ;;  %v1008_v32 = vrot.slane %v1006_v23, 4  ;;  %v1014_v33 = vrot.slane %v1012_v24, 5  ;;  %v2891_v35 = vshrl.u32 %v2821_v20, 16  ;;  %v951_v61 = vld [vmem:[#allocation2 + $0x20] sm:$0x1] }
  0x80   : > { %v2879_v36 = vsel %vm7929_vm11, %v2874_v25, %v2878_v17  ;;  %v2884_v37 = vrot.slane %v2883_v26, 4  ;;  %v2894_v38 = vshll.u32 %v2821_v20, 16  ;;  %v2910_v49 = vshll.u32 %v7992_v34, 16  ;;  %v803_v11 = vld [vmem:[#allocation2 + $0x24] sm:$0xf]  ;;  %p7590_p8 = pneg %p7589_p6  ;;  %s7593_s29 = scalar_lea.vmem %s7592_s28, 8192 }
  0x81   : > { %v1005_v40 = vsel %vm7929_vm11, %v1000_v31, %v1004_v29  ;;  %v1009_v41 = vor.u32 %v1008_v32, %v1004_v29  ;;  %v2893_v42 = vrot.slane %v2891_v35, 4  ;;  %v3648_v58 = vrot.slane %v7992_v34, 5  ;;  %v807_v13 = vld [vmem:[#allocation2 + $0x2c] sm:$0x1]  ;;  %v241_v25 = vld [vmem:[#allocation2 + $0x3c] sm:$0x1]  ;;  %p7595_p13 = scmp.lt.s32.totalorder %s7593_s29, %s7587_s11 }
  0x82   : > { %v7990_v30 = vld [vmem:[#allocation2 + $0x1c] sm:$0xf]  ;;  %v2889_v45 = vsel %vm7929_vm11, %v2884_v37, %v2888_v27  ;;  %v2896_v46 = vrot.slane %v2894_v38, 5  ;;  %v2912_v28 = vrot.slane %v2910_v49, 5  ;;  %v1017_v3 = vshrl.u32 %v905_v44, 16  ;;  %v7353_v27 = vld [vmem:[#allocation6 + $0x148] sm:$0xff]  }
  0x83   : > { %v2900_v39 = vshll.u32 %v7990_v30, 16  ;;  %v2904_v43 = vshrl.u32 %v7990_v30, 16  ;;  %v6153_v50 = vcombine.low %v2879_v36, %v2889_v45  ;;  %v1010_v51 = vrot.slane %v1009_v41, 4  ;;  %v906_v56 = vld [vmem:[#allocation2 + $0x1c] sm:$0xf]  ;;  %v7357_v36 = vld [vmem:[#allocation6 + $0x10] sm:$0xff]   ;;  %p7596_p3 = por %p7595_p13, %p7594_p10 }
  0x84   : > { %v3645_v55 = vrot.slane %v7990_v30, 5  ;;  %v2897_v57 = vor.u32 %v2896_v46, %v2893_v42  ;;  %v1020_v8 = vshll.u32 %v905_v44, 16  ;;  %v1019_v17 = vrot.slane %v1017_v3, 4  ;;  %v344_v35 = vld [vmem:[%s7867_s9 + $0x40] sm:$0xff]  ;;  %v7355_v3 = vld [vmem:[#allocation6 + $0x150] sm:$0xff]  }
  0x85   : > { %v2902_v47 = vrot.slane %v2900_v39, 5  ;;  %v2906_v53 = vrot.slane %v2904_v43, 4  ;;  %6770 = vmatprep.mubr.bf16.mxu0 %v6153_v50  ;;  %v1015_v5 = vsel %vm7929_vm11, %v1010_v51, %v1014_v33  ;;  %v1026_v18 = vshll.u32 %v906_v56, 16  ;;  %v297_v33 = vld [vmem:[#allocation2 + $0x44] sm:$0x1]  ;;  %p7597_p7 = pnand %p7596_p3, %p7590_p8 }
  0x86   : > { %v8009_v7 = vrot.slane %v3645_v55, 4  ;;  %v6042_v14 = vcombine.low %v1005_v40, %v1015_v5  ;;  %v2898_v16 = vrot.slane %v2897_v57, 4  ;;  %v1022_v22 = vrot.slane %v1020_v8, 5  ;;  %v244_v43 = vld [vmem:[#allocation2 + $0x48] sm:$0x1] }
  0x87   : > { %v2907_v6 = vor.u32 %v2906_v53, %v2902_v47  ;;  %v1030_v23 = vshrl.u32 %v906_v56, 16  ;;  %v1036_v24 = vshll.u32 %v951_v61, 16  ;;  %v1028_v29 = vrot.slane %v1026_v18, 5  ;;  %v810_v57 = vld [vmem:[#allocation2 + $0x30] sm:$0xf] }
  0x88   : > { %6579 = vmatmul.mubr.bf16.vlgmr.msra.gmra.mrb[0].mxu1 %v6042_v14  ;;  %v2903_v26 = vsel %vm7929_vm11, %v2898_v16, %v2902_v47  ;;  %v507_v31 = vrot.slane %v7966_v48, 4  ;;  %v516_v32 = vrot.slane %v7970_v54, 4  ;;  %v1023_v38 = vor.u32 %v1022_v22, %v1019_v17  ;;  %v345_v47 = vld [vmem:[%s7867_s9 + $0x48] sm:$0xff]  ;;  %v814_v61 = vld [vmem:[#allocation2 + $0x38] sm:$0x1]  ;;  %v346_v16 = vld [vmem:[%s7867_s9 + $0x50] sm:$0xff] }
  0x89   : > { %v2908_v20 = vrot.slane %v2907_v6, 4  ;;  %6611 = vmatpush3.bf16.msra.mxu1 %v7923_v2  ;;  %v1032_v39 = vrot.slane %v1030_v23, 4  ;;  %v1038_v40 = vrot.slane %v1036_v24, 5  ;;  %v804_v48 = vsel %vm7912_vm9, %v7977_v62, %v803_v11  ;;  %v7360_v17 = vld [vmem:[#allocation6 + $0x18] sm:$0xff]  }
  0x8a   : > { %v515_v42 = vsel %vm7919_vm10, %v507_v31, %v7987_v15  ;;  %v808_v54 = vsel %vm7879_vm3, %v516_v32, %v807_v13  ;;  %6612 = vmatprep.subr.bf16.mxu1 %v7354_v19  ;;  %v1024_v44 = vrot.slane %v1023_v38, 4  ;;  %805 = vst [vmem:[#allocation2 + $0x24] sm:$0xf] %v804_v48  ;;  %v518_v45 = vshrl.u32 %v7979_v63, 16  ;;  %v300_v15 = vld [vmem:[#allocation2 + $0x50] sm:$0x1] }
  0x8b   : > { %v2913_v37 = vsel %vm7929_vm11, %v2908_v20, %v2912_v28  ;;  %v1033_v2 = vor.u32 %v1032_v39, %v1028_v29  ;;  %806 = vst [vmem:[#allocation2 + $0x28] sm:$0xf] %v515_v42  ;;  %809 = vst [vmem:[#allocation2 + $0x2c] sm:$0x1] %v808_v54  ;;  %v521_v46 = vshll.u32 %v7979_v63, 16  ;;  %v526_v49 = vshrl.u32 %v7981_v1, 16 }
  0x8c   : > { %v6154_v41 = vcombine.low %v2903_v26, %v2913_v37  ;;  %v529_v62 = vshll.u32 %v7981_v1, 16  ;;  %v242_v50 = vsel %vm7879_vm3, 0, %v241_v25  ;;  %v298_v51 = vsel %vm7885_vm4, 0, %v297_v33  ;;  %v7356_v22 = vld [vmem:[#allocation6 + $0x158] sm:$0xff]  }
  0x8d   : > { %v1029_v53 = vsel %vm7929_vm11, %v1024_v44, %v1028_v29  ;;  %v1034_v56 = vrot.slane %v1033_v2, 4  ;;  %v520_v63 = vrot.slane %v518_v45, 7  ;;  %6613 = vmatpush3.bf16.msra.mxu1 %v7354_v19  ;;  %243 = vst [vmem:[#allocation2 + $0x3c] sm:$0x1] %v242_v50  ;;  %299 = vst [vmem:[#allocation2 + $0x44] sm:$0x1] %v298_v51  ;;  %v6321_v28 = vpack.c.bf16 %v344_v35, %v344_v35 }
  0x8e   : > { %6771 = vmatmul.mubr.bf16.vlgmr.msra.gmra.mrb[0].mxu0 %v6154_v41  ;;  %v528_v1 = vrot.slane %v526_v49, 7  ;;  %v8039_v5 = vpack.c.bf16 %v345_v47, %v345_v47  ;;  %6614 = vmatprep.subr.bf16.mxu1 %v7357_v36  ;;  %v301_v6 = vsel %vm7885_vm4, 0, %v300_v15  ;;  %v347_v31 = vld [vmem:[%s7867_s9 + $0x58] sm:$0xff]  ;;  %v8063_v38 = vpack.c.bf16 %v346_v16, %v346_v16 }
  0x8f   : > { %6803 = vmatpush3.bf16.msra.mxu0 %v7935_v12  ;;  %v245_v12 = vsel %vm7879_vm3, 0, %v244_v43  ;;  %v1039_v8 = vsel %vm7929_vm11, %v1034_v56, %v1038_v40  ;;  %v523_v11 = vor.u32 %v521_v46, %v520_v63  ;;  %v524_v13 = vrot.slane %v520_v63, 4  ;;  %302 = vst [vmem:[#allocation2 + $0x50] sm:$0x1] %v301_v6  ;;  %v7358_v56 = vld [vmem:[#allocation6 + $0x160] sm:$0xff]  }
  0x90   : > { %6804 = vmatprep.subr.bf16.mxu0 %v7353_v27  ;;  %v535_v14 = vshrl.u32 %v6321_v28, 16  ;;  %246 = vst [vmem:[#allocation2 + $0x48] sm:$0x1] %v245_v12  ;;  %v6043_v18 = vcombine.low %v1029_v53, %v1039_v8  ;;  %v531_v19 = vor.u32 %v529_v62, %v528_v1  ;;  %v533_v20 = vrot.slane %v528_v1, 4  ;;  %v7359_v8 = vld [vmem:[#allocation6 + $0x168] sm:$0xff]  }
  0x91   : > { %v538_v23 = vshll.u32 %v6321_v28, 16  ;;  %v811_v24 = vsel %vm7912_vm9, %v523_v11, %v810_v57  ;;  %v543_v26 = vshrl.u32 %v8039_v5, 16  ;;  %v546_v29 = vshll.u32 %v8039_v5, 16  ;;  %6615 = vmatpush3.bf16.msra.mxu1 %v7357_v36  ;;  %v2824_v32 = vld [vmem:[#allocation2 + $0x24] sm:$0xf] }
  0x92   : > { %v8050_v25 = vrot.slane %v535_v14, 7  ;;  %6582 = vmatprep.mubr.bf16.mxu1 %v6043_v18  ;;  %v8055_v33 = vld [vmem:[#allocation2 + $0x28] sm:$0xf]  ;;  %v8057_v35 = vld [vmem:[#allocation2 + $0x2c] sm:$0x1]  ;;  %v815_v37 = vsel %vm7879_vm3, %v533_v20, %v814_v61  ;;  %v2915_v39 = vshrl.u32 %v2824_v32, 16  ;;  %6616 = vmatprep.subr.bf16.mxu1 %v7360_v17  ;;  %v8071_v45 = vpack.c.bf16 %v347_v31, %v347_v31 }
  0x93   : > { %6805 = vmatpush3.bf16.msra.mxu0 %v7353_v27  ;;  %v532_v27 = vsel %vm7919_vm10, %v524_v13, %v531_v19  ;;  %812 = vst [vmem:[#allocation2 + $0x30] sm:$0xf] %v811_v24  ;;  %v2918_v40 = vshll.u32 %v2824_v32, 16  ;;  %v2924_v36 = vshll.u32 %v8055_v33, 16  ;;  %v2928_v41 = vshrl.u32 %v8055_v33, 16 }
  0x94   : > { %6806 = vmatprep.subr.bf16.mxu0 %v7355_v3  ;;  %v907_v42 = vld [vmem:[#allocation2 + $0x24] sm:$0xf]  ;;  %813 = vst [vmem:[#allocation2 + $0x34] sm:$0xf] %v532_v27  ;;  %816 = vst [vmem:[#allocation2 + $0x38] sm:$0x1] %v815_v37  ;;  %v8069_v2 = vor.u32 %v538_v23, %v8050_v25 }
  0x95   : > { %v2934_v48 = vshll.u32 %v8057_v35, 16  ;;  %v908_v54 = vld [vmem:[#allocation2 + $0x28] sm:$0xf]  ;;  %v952_v43 = vld [vmem:[#allocation2 + $0x2c] sm:$0x1]  ;;  %v1041_v44 = vshrl.u32 %v907_v42, 16  ;;  %6617 = vmatpush3.bf16.msra.mxu1 %v7360_v17 }
  0x96   : > { %v2917_v46 = vrot.slane %v2915_v39, 4  ;;  %v2920_v47 = vrot.slane %v2918_v40, 5  ;;  %v2926_v15 = vrot.slane %v2924_v36, 5  ;;  %v2930_v49 = vrot.slane %v2928_v41, 4 }
  0x97   : > { %6807 = vmatpush3.bf16.msra.mxu0 %v7355_v3  ;;  %v2936_v62 = vrot.slane %v2934_v48, 5  ;;  %v1043_v50 = vrot.slane %v1041_v44, 4  ;;  %v1044_v51 = vshll.u32 %v907_v42, 16  ;;  %v1050_v53 = vshll.u32 %v908_v54, 16 }
  0x98   : > { %6808 = vmatprep.subr.bf16.mxu0 %v7356_v22  ;;  %v2921_v63 = vor.u32 %v2920_v47, %v2917_v46  ;;  %v2931_v57 = vor.u32 %v2930_v49, %v2926_v15  ;;  %v1054_v28 = vshrl.u32 %v908_v54, 16  ;;  %v1060_v1 = vshll.u32 %v952_v43, 16  ;;  %v7361_v54 = vld [vmem:[#allocation6 + $0x170] sm:$0xff]   ;;  %v817_v49 = vld [vmem:[#allocation2 + $0x3c] sm:$0xf] }
  0x99   : > { %v1046_v61 = vrot.slane %v1044_v51, 5  ;;  %v1052_v5 = vrot.slane %v1050_v53, 5  ;;  %v541_v12 = vrot.slane %v8050_v25, 4  ;;  %v8074_v6 = vrot.slane %v543_v26, 7 }
  0x9a   : > { %v2922_v11 = vrot.slane %v2921_v63, 4  ;;  %v2932_v3 = vrot.slane %v2931_v57, 4  ;;  %v1056_v13 = vrot.slane %v1054_v28, 4  ;;  %v1062_v14 = vrot.slane %v1060_v1, 5  ;;  %v2827_v16 = vld [vmem:[#allocation2 + $0x30] sm:$0xf] }
  0x9b   : > { %6809 = vmatpush3.bf16.msra.mxu0 %v7356_v22  ;;  %v1047_v17 = vor.u32 %v1046_v61, %v1043_v50  ;;  %v8076_v18 = vld [vmem:[#allocation2 + $0x34] sm:$0xf]  ;;  %v8078_v19 = vld [vmem:[#allocation2 + $0x38] sm:$0x1]  ;;  %v2939_v20 = vshrl.u32 %v2827_v16, 16  ;;  %v2942_v23 = vshll.u32 %v2827_v16, 16  ;;  %v548_v24 = vor.u32 %v546_v29, %v8074_v6 }
  0x9c   : > { %6810 = vmatprep.subr.bf16.mxu0 %v7358_v56  ;;  %v2927_v25 = vsel %vm7929_vm11, %v2922_v11, %v2926_v15  ;;  %v2937_v26 = vsel %vm7929_vm11, %v2932_v3, %v2936_v62  ;;  %v1057_v31 = vor.u32 %v1056_v13, %v1052_v5  ;;  %v2948_v32 = vshll.u32 %v8076_v18, 16  ;;  %v909_v22 = vld [vmem:[#allocation2 + $0x30] sm:$0xf]  ;;  %v910_v36 = vld [vmem:[#allocation2 + $0x34] sm:$0xf]  ;;  %v7363_v63 = vld [vmem:[#allocation6 + $0x20] sm:$0xff]  }
  0x9d   : > { %v6155_v27 = vcombine.low %v2927_v25, %v2937_v26  ;;  %v1048_v37 = vrot.slane %v1047_v17, 4  ;;  %v2941_v39 = vrot.slane %v2939_v20, 4  ;;  %v2944_v40 = vrot.slane %v2942_v23, 5  ;;  %v953_v46 = vld [vmem:[#allocation2 + $0x38] sm:$0x1]  ;;  %6618 = vmatprep.subr.bf16.mxu1 %v7363_v63  ;;  %v7362_v25 = vld [vmem:[#allocation6 + $0x178] sm:$0xff]  }
  0x9e   : > { %v1058_v41 = vrot.slane %v1057_v31, 4  ;;  %v2950_v42 = vrot.slane %v2948_v32, 5  ;;  %v2952_v29 = vshrl.u32 %v8076_v18, 16  ;;  %v2958_v48 = vshll.u32 %v8078_v19, 16  ;;  %v821_v61 = vld [vmem:[#allocation2 + $0x44] sm:$0x1]  ;;  %6619 = vmatpush3.bf16.msra.mxu1 %v7363_v63 }
  0x9f   : > { %6811 = vmatpush3.bf16.msra.mxu0 %v7358_v56  ;;  %6774 = vmatprep.mubr.bf16.mxu0 %v6155_v27  ;;  %v1053_v43 = vsel %vm7929_vm11, %v1048_v37, %v1052_v5  ;;  %v2945_v44 = vor.u32 %v2944_v40, %v2941_v39  ;;  %v1065_v47 = vshrl.u32 %v909_v22, 16  ;;  %v1068_v15 = vshll.u32 %v909_v22, 16  ;;  %v247_v23 = vld [vmem:[#allocation2 + $0x54] sm:$0x1]  ;;  %v303_v22 = vld [vmem:[#allocation2 + $0x5c] sm:$0x1] }
  0xa0   : > { %6812 = vmatprep.subr.bf16.mxu0 %v7359_v8  ;;  %v1063_v62 = vsel %vm7929_vm11, %v1058_v41, %v1062_v14  ;;  %v2954_v50 = vrot.slane %v2952_v29, 4  ;;  %v2960_v51 = vrot.slane %v2958_v48, 5  ;;  %v1074_v53 = vshll.u32 %v910_v36, 16  ;;  %v348_v37 = vld [vmem:[%s7867_s9 + $0x60] sm:$0xff]  ;;  %v250_v39 = vld [vmem:[#allocation2 + $0x60] sm:$0x1] }
  0xa1   : > { %v6044_v57 = vcombine.low %v1053_v43, %v1063_v62  ;;  %v2946_v56 = vrot.slane %v2945_v44, 4  ;;  %v1067_v28 = vrot.slane %v1065_v47, 4  ;;  %v1070_v1 = vrot.slane %v1068_v15, 5  ;;  %v349_v29 = vld [vmem:[%s7867_s9 + $0x68] sm:$0xff]  ;;  %v8113_v48 = vld [vmem:[#allocation6 + $0x180] sm:$0xff]  }
  0xa2   : > { %v2955_v11 = vor.u32 %v2954_v50, %v2950_v42  ;;  %v8092_v5 = vrot.slane %v1074_v53, 5  ;;  %v1078_v3 = vshrl.u32 %v910_v36, 16  ;;  %v1084_v13 = vshll.u32 %v953_v46, 16  ;;  %v7365_v62 = vld [vmem:[#allocation6 + $0x28] sm:$0xff]  }
  0xa3   : > { %6813 = vmatpush3.bf16.msra.mxu0 %v7359_v8  ;;  %6583 = vmatmul.mubr.bf16.gmra.mrb[4].mxu1 %v6044_v57  ;;  %v2951_v14 = vsel %vm7929_vm11, %v2946_v56, %v2950_v42  ;;  %v1071_v16 = vor.u32 %v1070_v1, %v1067_v28  ;;  %v549_v17 = vsel %vm7919_vm10, %v541_v12, %v548_v24  ;;  %v550_v20 = vrot.slane %v8074_v6, 4  ;;  %v824_v42 = vld [vmem:[#allocation2 + $0x48] sm:$0xf] }
  0xa4   : > { %6814 = vmatprep.subr.bf16.mxu0 %v7361_v54  ;;  %v2956_v26 = vrot.slane %v2955_v11, 4  ;;  %v1080_v31 = vrot.slane %v1078_v3, 4  ;;  %v1086_v32 = vrot.slane %v1084_v13, 5  ;;  %v818_v8 = vsel %vm7912_vm9, %v8069_v2, %v817_v49  ;;  %820 = vst [vmem:[#allocation2 + $0x40] sm:$0xf] %v549_v17  ;;  %v351_v11 = vld [vmem:[%s7867_s9 + $0x78] sm:$0xff]  ;;  %6620 = vmatprep.subr.bf16.mxu1 %v7365_v62 }
  0xa5   : > { %v1072_v27 = vrot.slane %v1071_v16, 4  ;;  %819 = vst [vmem:[#allocation2 + $0x3c] sm:$0xf] %v818_v8  ;;  %v822_v12 = vsel %vm7879_vm3, %v550_v20, %v821_v61  ;;  %v552_v6 = vshrl.u32 %v8063_v38, 16  ;;  %v555_v24 = vshll.u32 %v8063_v38, 16  ;;  %v350_v61 = vld [vmem:[%s7867_s9 + $0x70] sm:$0xff]  ;;  %6621 = vmatpush3.bf16.msra.mxu1 %v7365_v62 }
  0xa6   : > { %v2961_v40 = vsel %vm7929_vm11, %v2956_v26, %v2960_v51  ;;  %v1081_v2 = vor.u32 %v1080_v31, %v8092_v5  ;;  %823 = vst [vmem:[#allocation2 + $0x44] sm:$0x1] %v822_v12  ;;  %v560_v36 = vshrl.u32 %v8071_v45, 16  ;;  %v563_v41 = vshll.u32 %v8071_v45, 16  ;;  %v828_v49 = vld [vmem:[#allocation2 + $0x50] sm:$0x1] }
  0xa7   : > { %6815 = vmatpush3.bf16.msra.mxu0 %v7361_v54  ;;  %v6156_v43 = vcombine.low %v2951_v14, %v2961_v40  ;;  %v1077_v38 = vsel %vm7929_vm11, %v1072_v27, %v8092_v5  ;;  %v554_v44 = vrot.slane %v552_v6, 7  ;;  %v248_v46 = vsel %vm7879_vm3, 0, %v247_v23 }
  0xa8   : > { %6816 = vmatprep.subr.bf16.mxu0 %v7362_v25  ;;  %v1082_v47 = vrot.slane %v1081_v2, 4  ;;  %v562_v15 = vrot.slane %v560_v36, 7  ;;  %249 = vst [vmem:[#allocation2 + $0x54] sm:$0x1] %v248_v46  ;;  %v304_v45 = vsel %vm7885_vm4, 0, %v303_v22  ;;  %v8122_v54 = vpack.c.bf16 %v348_v37, %v348_v37 }
  0xa9   : > { %6775 = vmatmul.mubr.bf16.gmra.mrb[4].mxu0 %v6156_v43  ;;  %v557_v50 = vor.u32 %v555_v24, %v554_v44  ;;  %v558_v51 = vrot.slane %v554_v44, 4  ;;  %305 = vst [vmem:[#allocation2 + $0x5c] sm:$0x1] %v304_v45  ;;  %v8124_v53 = vpack.c.bf16 %v349_v29, %v349_v29  ;;  %v251_v63 = vsel %vm7879_vm3, 0, %v250_v39 }
  0xaa   : > { %v1087_v57 = vsel %vm7929_vm11, %v1082_v47, %v1086_v32  ;;  %v565_v56 = vor.u32 %v563_v41, %v562_v15  ;;  %v567_v28 = vrot.slane %v562_v15, 4  ;;  %v569_v1 = vshrl.u32 %v8122_v54, 16  ;;  %252 = vst [vmem:[#allocation2 + $0x60] sm:$0x1] %v251_v63  ;;  %v352_v47 = vld [vmem:[%s7867_s9 + $0x80] sm:$0xff] }
  0xab   : > { %6817 = vmatpush3.bf16.msra.mxu0 %v7362_v25  ;;  %v6045_v5 = vcombine.low %v1077_v38, %v1087_v57  ;;  %v8133_v3 = vld [vmem:[#allocation2 + $0x40] sm:$0xf]  ;;  %v825_v14 = vsel %vm7912_vm9, %v557_v50, %v824_v42  ;;  %v572_v16 = vshll.u32 %v8122_v54, 16  ;;  %v577_v17 = vshrl.u32 %v8124_v53, 16 }
  0xac   : > { %v912_v13 = vld [vmem:[#allocation2 + $0x40] sm:$0xf]  ;;  %6850 = vmatprep.subr.bf16.mxu0 %v8113_v48  ;;  %v2830_v20 = vld [vmem:[#allocation2 + $0x3c] sm:$0xf]  ;;  %v2972_v23 = vshll.u32 %v8133_v3, 16  ;;  %v2976_v25 = vshrl.u32 %v8133_v3, 16  ;;  %v566_v31 = vsel %vm7919_vm10, %v558_v51, %v565_v56  ;;  %v829_v32 = vsel %vm7879_vm3, %v567_v28, %v828_v49 }
  0xad   : > { %v911_v26 = vld [vmem:[#allocation2 + $0x3c] sm:$0xf]  ;;  %826 = vst [vmem:[#allocation2 + $0x48] sm:$0xf] %v825_v14  ;;  %6586 = vmatprep.mubr.bf16.mxu1 %v6045_v5  ;;  %v8146_v8 = vld [vmem:[#allocation2 + $0x44] sm:$0x1]  ;;  %v8148_v12 = vpack.c.bf16 %v350_v61, %v350_v61  ;;  %v8150_v6 = vpack.c.bf16 %v351_v11, %v351_v11  ;;  %v8158_v5 = vpack.c.bf16 %v352_v47, %v352_v47 }
  0xae   : > { %v2963_v22 = vshrl.u32 %v2830_v20, 16  ;;  %v2966_v27 = vshll.u32 %v2830_v20, 16  ;;  %827 = vst [vmem:[#allocation2 + $0x4c] sm:$0xf] %v566_v31  ;;  %830 = vst [vmem:[#allocation2 + $0x50] sm:$0x1] %v829_v32 }
  0xaf   : > { %v2974_v24 = vrot.slane %v2972_v23, 5  ;;  %v2978_v37 = vrot.slane %v2976_v25, 4  ;;  %v2982_v39 = vshll.u32 %v8146_v8, 16  ;;  %v954_v40 = vld [vmem:[#allocation2 + $0x44] sm:$0x1]  ;;  %v1089_v2 = vshrl.u32 %v911_v26, 16 }
  0xb0   : > { %v2965_v36 = vrot.slane %v2963_v22, 4  ;;  %v2968_v41 = vrot.slane %v2966_v27, 5  ;;  %v1092_v42 = vshll.u32 %v911_v26, 16  ;;  %v1098_v29 = vshll.u32 %v912_v13, 16 }
  0xb1   : > { %v2979_v43 = vor.u32 %v2978_v37, %v2974_v24  ;;  %v2984_v38 = vrot.slane %v2982_v39, 5  ;;  %v1091_v44 = vrot.slane %v1089_v2, 4  ;;  %v1102_v46 = vshrl.u32 %v912_v13, 16 }
  0xb2   : > { %v2969_v15 = vor.u32 %v2968_v41, %v2965_v36  ;;  %v1094_v49 = vrot.slane %v1092_v42, 5  ;;  %v1100_v45 = vrot.slane %v1098_v29, 5  ;;  %v1108_v62 = vshll.u32 %v954_v40, 16  ;;  %v7367_v36 = vld [vmem:[#allocation6 + $0x30] sm:$0xff]  }
  0xb3   : > { %v2980_v50 = vrot.slane %v2979_v43, 4  ;;  %v1104_v51 = vrot.slane %v1102_v46, 4  ;;  %v8154_v63 = vrot.slane %v569_v1, 7  ;;  %v8156_v57 = vrot.slane %v577_v17, 7  ;;  %6622 = vmatprep.subr.bf16.mxu1 %v7367_v36 }
  0xb4   : > { %v2970_v56 = vrot.slane %v2969_v15, 4  ;;  %v1095_v28 = vor.u32 %v1094_v49, %v1091_v44  ;;  %v1110_v61 = vrot.slane %v1108_v62, 5  ;;  %v2833_v11 = vld [vmem:[#allocation2 + $0x48] sm:$0xf]  ;;  %6623 = vmatpush3.bf16.msra.mxu1 %v7367_v36 }
  0xb5   : > { %v2985_v13 = vsel %vm7929_vm11, %v2980_v50, %v2984_v38  ;;  %v1105_v14 = vor.u32 %v1104_v51, %v1100_v45  ;;  %v8162_v20 = vld [vmem:[#allocation2 + $0x4c] sm:$0xf]  ;;  %v8164_v23 = vld [vmem:[#allocation2 + $0x50] sm:$0x1]  ;;  %v2987_v25 = vshrl.u32 %v2833_v11, 16  ;;  %v2990_v26 = vshll.u32 %v2833_v11, 16 }
  0xb6   : > { %v2975_v1 = vsel %vm7929_vm11, %v2970_v56, %v2974_v24  ;;  %v1096_v17 = vrot.slane %v1095_v28, 4  ;;  %v2996_v31 = vshll.u32 %v8162_v20, 16  ;;  %v3000_v32 = vshrl.u32 %v8162_v20, 16  ;;  %v913_v22 = vld [vmem:[#allocation2 + $0x48] sm:$0xf] }
  0xb7   : > { %v6157_v27 = vcombine.low %v2975_v1, %v2985_v13  ;;  %v1106_v37 = vrot.slane %v1105_v14, 4  ;;  %v2989_v39 = vrot.slane %v2987_v25, 4  ;;  %v2992_v40 = vrot.slane %v2990_v26, 5  ;;  %v914_v2 = vld [vmem:[#allocation2 + $0x4c] sm:$0xf] }
  0xb8   : > { %v1101_v41 = vsel %vm7929_vm11, %v1096_v17, %v1100_v45  ;;  %v2998_v42 = vrot.slane %v2996_v31, 5  ;;  %v3002_v29 = vrot.slane %v3000_v32, 4  ;;  %v3006_v24 = vshll.u32 %v8164_v23, 16  ;;  %v955_v44 = vld [vmem:[#allocation2 + $0x50] sm:$0x1] }
  0xb9   : > { %6778 = vmatprep.mubr.bf16.mxu0 %v6157_v27  ;;  %v1111_v43 = vsel %vm7929_vm11, %v1106_v37, %v1110_v61  ;;  %v2993_v38 = vor.u32 %v2992_v40, %v2989_v39  ;;  %v1113_v46 = vshrl.u32 %v913_v22, 16  ;;  %v1116_v47 = vshll.u32 %v913_v22, 16  ;;  %v831_v51 = vld [vmem:[#allocation2 + $0x54] sm:$0xf]  ;;  %v835_v32 = vld [vmem:[#allocation2 + $0x5c] sm:$0x1] }
  0xba   : > { %v6046_v15 = vcombine.low %v1101_v41, %v1111_v43  ;;  %v3003_v49 = vor.u32 %v3002_v29, %v2998_v42  ;;  %v3008_v62 = vrot.slane %v3006_v24, 5  ;;  %v1122_v50 = vshll.u32 %v914_v2, 16  ;;  %v306_v22 = vld [vmem:[#allocation2 + $0x68] sm:$0x1]  ;;  %v309_v29 = vld [vmem:[#allocation2 + $0x74] sm:$0x1] }
  0xbb   : > { %v2994_v45 = vrot.slane %v2993_v38, 4  ;;  %v1115_v56 = vrot.slane %v1113_v46, 4  ;;  %v1118_v28 = vrot.slane %v1116_v47, 5  ;;  %v1126_v11 = vshrl.u32 %v914_v2, 16  ;;  %v3572_v2 = vld [vmem:[#allocation2 + $0xc] sm:$0xe] }
  0xbc   : > { %6587 = vmatmul.mubr.bf16.gmra.mrb[8].mxu1 %v6046_v15  ;;  %v3004_v13 = vrot.slane %v3003_v49, 4  ;;  %v1124_v14 = vrot.slane %v1122_v50, 5  ;;  %v1132_v25 = vshll.u32 %v955_v44, 16  ;;  %v574_v61 = vor.u32 %v572_v16, %v8154_v63  ;;  %v838_v47 = vld [vmem:[#allocation2 + $0x60] sm:$0xf]  ;;  %v7369_v15 = vld [vmem:[#allocation6 + $0x38] sm:$0xff]  }
  0xbd   : > { %v2999_v26 = vsel %vm7929_vm11, %v2994_v45, %v2998_v42  ;;  %v1119_v1 = vor.u32 %v1118_v28, %v1115_v56  ;;  %v1128_v17 = vrot.slane %v1126_v11, 4  ;;  %v575_v31 = vrot.slane %v8154_v63, 4  ;;  %v253_v42 = vld [vmem:[#allocation2 + $0x6c] sm:$0x1]  ;;  %v353_v56 = vld [vmem:[%s7867_s9 + $0x88] sm:$0xff]  ;;  %6624 = vmatprep.subr.bf16.mxu1 %v7369_v15 }
  0xbe   : > { %v3009_v27 = vsel %vm7929_vm11, %v3004_v13, %v3008_v62  ;;  %v1134_v37 = vrot.slane %v1132_v25, 5  ;;  %v580_v39 = vshll.u32 %v8124_v53, 16  ;;  %v584_v40 = vrot.slane %v8156_v57, 4  ;;  %v3573_v28 = vld [vmem:[#allocation2 + $0x18] sm:$0xe]  ;;  %6625 = vmatpush3.bf16.msra.mxu1 %v7369_v15 }
  0xbf   : > { %v6158_v54 = vcombine.low %v2999_v26, %v3009_v27  ;;  %v1120_v16 = vrot.slane %v1119_v1, 4  ;;  %v1129_v36 = vor.u32 %v1128_v17, %v1124_v14  ;;  %v832_v41 = vsel %vm7912_vm9, %v574_v61, %v831_v51 }
  0xc0   : > { %v582_v63 = vor.u32 %v580_v39, %v8156_v57  ;;  %833 = vst [vmem:[#allocation2 + $0x54] sm:$0xf] %v832_v41  ;;  %v836_v24 = vsel %vm7879_vm3, %v584_v40, %v835_v32  ;;  %v307_v53 = vsel %vm7885_vm4, 0, %v306_v22  ;;  %v586_v43 = vshrl.u32 %v8148_v12, 16  ;;  %v354_v22 = vld [vmem:[%s7867_s9 + $0x90] sm:$0xff] }
  0xc1   : > { %6779 = vmatmul.mubr.bf16.gmra.mrb[8].mxu0 %v6158_v54  ;;  %v1125_v38 = vsel %vm7929_vm11, %v1120_v16, %v1124_v14  ;;  %v1130_v44 = vrot.slane %v1129_v36, 4  ;;  %837 = vst [vmem:[#allocation2 + $0x5c] sm:$0x1] %v836_v24  ;;  %308 = vst [vmem:[#allocation2 + $0x68] sm:$0x1] %v307_v53  ;;  %v589_v46 = vshll.u32 %v8148_v12, 16  ;;  %v8244_v53 = vpack.c.bf16 %v354_v22, %v354_v22 }
  0xc2   : > { %v594_v57 = vshrl.u32 %v8150_v6, 16  ;;  %v583_v49 = vsel %vm7919_vm10, %v575_v31, %v582_v63  ;;  %v588_v62 = vrot.slane %v586_v43, 7  ;;  %v597_v50 = vshll.u32 %v8150_v6, 16  ;;  %v7373_v14 = vld [vmem:[#allocation6 + $0x80] sm:$0xff]  }
  0xc3   : > { %v6177_v45 = vrot.slane %v3572_v2, 9  ;;  %v1135_v12 = vsel %vm7929_vm11, %v1130_v44, %v1134_v37  ;;  %834 = vst [vmem:[#allocation2 + $0x58] sm:$0xf] %v583_v49  ;;  %v3638_v13 = vrot.slane %v7972_v59, 5  ;;  %v254_v6 = vsel %vm7879_vm3, 0, %v253_v42  ;;  %6658 = vmatprep.subr.bf16.mxu1 %v7373_v14 }
  0xc4   : > { %v596_v11 = vrot.slane %v594_v57, 7  ;;  %v6047_v25 = vcombine.low %v1125_v38, %v1135_v12  ;;  %v591_v61 = vor.u32 %v589_v46, %v588_v62  ;;  %v592_v26 = vrot.slane %v588_v62, 4  ;;  %255 = vst [vmem:[#allocation2 + $0x6c] sm:$0x1] %v254_v6 }
  0xc5   : > { %v310_v1 = vsel %vm7885_vm4, 0, %v309_v29  ;;  %v8216_v32 = vsel %vm8202_vm14, %v6177_v45, %v3638_v13  ;;  %v3640_v59 = vrot.slane %v3638_v13, 4  ;;  %v8221_v37 = vpack.c.bf16 %v353_v56, %v353_v56 }
  0xc6   : > { %v599_v17 = vor.u32 %v597_v50, %v596_v11  ;;  %v601_v31 = vrot.slane %v596_v11, 4  ;;  %311 = vst [vmem:[#allocation2 + $0x74] sm:$0x1] %v310_v1  ;;  %6590 = vmatprep.mubr.bf16.mxu1 %v6047_v25  ;;  %v839_v27 = vsel %vm7912_vm9, %v591_v61, %v838_v47  ;;  %v603_v39 = vshrl.u32 %v8158_v5, 16 }
  0xc7   : > { %v606_v40 = vshll.u32 %v8158_v5, 16  ;;  %v2836_v2 = vld [vmem:[#allocation2 + $0x54] sm:$0xf]  ;;  %840 = vst [vmem:[#allocation2 + $0x60] sm:$0xf] %v839_v27  ;;  %v8231_v36 = vsel %vm8202_vm14, %v3640_v59, %v3641_v21  ;;  %v6178_v41 = vrot.slane %v3573_v28, 9  ;;  %v8238_v42 = vsel %vm8202_vm14, %v8009_v7, %v3648_v58 }
  0xc8   : > { %v915_v54 = vld [vmem:[#allocation2 + $0x54] sm:$0xf]  ;;  %v600_v16 = vsel %vm7919_vm10, %v592_v26, %v599_v17  ;;  %v8240_v5 = vld [vmem:[#allocation2 + $0x5c] sm:$0x1]  ;;  %v3011_v29 = vshrl.u32 %v2836_v2, 16  ;;  %v3014_v63 = vshll.u32 %v2836_v2, 16  ;;  %v6193_v60 = vcombine.low %v8216_v32, %v8231_v36 }
  0xc9   : > { %v956_v24 = vld [vmem:[#allocation2 + $0x5c] sm:$0x1]  ;;  %841 = vst [vmem:[#allocation2 + $0x64] sm:$0xf] %v600_v16  ;;  %v3030_v21 = vshll.u32 %v8240_v5, 16  ;;  %v1137_v43 = vshrl.u32 %v915_v54, 16  ;;  %v8255_v15 = vsel %vm8202_vm14, %v6178_v41, %v3645_v55 }
  0xca   : > { %v1140_v34 = vshll.u32 %v915_v54, 16  ;;  %v1156_v38 = vshll.u32 %v956_v24, 16  ;;  %v842_v44 = vld [vmem:[#allocation2 + $0x68] sm:$0x1]  ;;  %v8247_v46 = vld [vmem:[#allocation2 + $0x58] sm:$0xf] }
  0xcb   : > { %v3013_v58 = vrot.slane %v3011_v29, 4  ;;  %v3016_v7 = vrot.slane %v3014_v63, 5  ;;  %v916_v57 = vld [vmem:[#allocation2 + $0x58] sm:$0xf]  ;;  %v843_v47 = vsel %vm7879_vm3, %v601_v31, %v842_v44  ;;  %v3020_v49 = vshll.u32 %v8247_v46, 16  ;;  %v357_v36 = vld [vmem:[%s7867_s9 + $0xa8] sm:$0xff] }
  0xcc   : > { %v3024_v62 = vshrl.u32 %v8247_v46, 16  ;;  %v3032_v50 = vrot.slane %v3030_v21, 5  ;;  %v1139_v45 = vrot.slane %v1137_v43, 4  ;;  %844 = vst [vmem:[#allocation2 + $0x68] sm:$0x1] %v843_v47  ;;  %v1142_v28 = vrot.slane %v1140_v34, 5 }
  0xcd   : > { %v3017_v56 = vor.u32 %v3016_v7, %v3013_v58  ;;  %v1146_v12 = vshll.u32 %v916_v57, 16  ;;  %v1150_v11 = vshrl.u32 %v916_v57, 16  ;;  %v3022_v13 = vrot.slane %v3020_v49, 5  ;;  %v845_v2 = vld [vmem:[#allocation2 + $0x6c] sm:$0xf]  ;;  %v356_v32 = vld [vmem:[%s7867_s9 + $0xa0] sm:$0xff] }
  0xce   : > { %v3026_v6 = vrot.slane %v3024_v62, 4  ;;  %v1158_v14 = vrot.slane %v1156_v38, 5  ;;  %v8259_v25 = vrot.slane %v603_v39, 7  ;;  %v1143_v61 = vor.u32 %v1142_v28, %v1139_v45  ;;  %v2839_v1 = vld [vmem:[#allocation2 + $0x60] sm:$0xf] }
  0xcf   : > { %v3018_v30 = vrot.slane %v3017_v56, 4  ;;  %v1148_v55 = vrot.slane %v1146_v12, 5  ;;  %v1152_v26 = vrot.slane %v1150_v11, 4  ;;  %v3035_v59 = vshrl.u32 %v2839_v1, 16  ;;  %v917_v29 = vld [vmem:[#allocation2 + $0x60] sm:$0xf] }
  0xd0   : > { %v3027_v17 = vor.u32 %v3026_v6, %v3022_v13  ;;  %v8261_v31 = vld [vmem:[#allocation2 + $0x64] sm:$0xf]  ;;  %v3038_v22 = vshll.u32 %v2839_v1, 16  ;;  %v608_v27 = vor.u32 %v606_v40, %v8259_v25  ;;  %v1144_v16 = vrot.slane %v1143_v61, 4 }
  0xd1   : > { %v3023_v54 = vsel %vm7929_vm11, %v3018_v30, %v3022_v13  ;;  %v1153_v41 = vor.u32 %v1152_v26, %v1148_v55  ;;  %v3044_v39 = vshll.u32 %v8261_v31, 16  ;;  %v3037_v24 = vrot.slane %v3035_v59, 4  ;;  %v918_v34 = vld [vmem:[#allocation2 + $0x64] sm:$0xf] }
  0xd2   : > { %v3028_v63 = vrot.slane %v3027_v17, 4  ;;  %v3040_v21 = vrot.slane %v3038_v22, 5  ;;  %v3048_v43 = vshrl.u32 %v8261_v31, 16  ;;  %v1149_v38 = vsel %vm7929_vm11, %v1144_v16, %v1148_v55 }
  0xd3   : > { %v1154_v44 = vrot.slane %v1153_v41, 4  ;;  %v8270_v40 = vld [vmem:[#allocation2 + $0x68] sm:$0x1]  ;;  %v3046_v58 = vrot.slane %v3044_v39, 5  ;;  %v846_v57 = vsel %vm7912_vm9, %v608_v27, %v845_v2  ;;  %v1161_v12 = vshrl.u32 %v917_v29, 16 }
  0xd4   : > { %v957_v7 = vld [vmem:[#allocation2 + $0x68] sm:$0x1]  ;;  %v3033_v47 = vsel %vm7929_vm11, %v3028_v63, %v3032_v50  ;;  %v3041_v49 = vor.u32 %v3040_v21, %v3037_v24  ;;  %v3050_v62 = vrot.slane %v3048_v43, 4  ;;  %v3054_v45 = vshll.u32 %v8270_v40, 16  ;;  %847 = vst [vmem:[#allocation2 + $0x6c] sm:$0xf] %v846_v57 }
  0xd5   : > { %v6159_v56 = vcombine.low %v3023_v54, %v3033_v47  ;;  %v1159_v28 = vsel %vm7929_vm11, %v1154_v44, %v1158_v14  ;;  %v1164_v11 = vshll.u32 %v917_v29, 16  ;;  %v1163_v55 = vrot.slane %v1161_v12, 4  ;;  %v256_v27 = vld [vmem:[#allocation2 + $0x78] sm:$0x1]  ;;  %v312_v39 = vld [vmem:[#allocation2 + $0x80] sm:$0x1] }
  0xd6   : > { %v6048_v13 = vcombine.low %v1149_v38, %v1159_v28  ;;  %v3042_v6 = vrot.slane %v3041_v49, 4  ;;  %v3051_v30 = vor.u32 %v3050_v62, %v3046_v58  ;;  %v3056_v61 = vrot.slane %v3054_v45, 5  ;;  %v355_v43 = vld [vmem:[%s7867_s9 + $0x98] sm:$0xff]  ;;  %v3574_v45 = vld [vmem:[#allocation2 + $0x24] sm:$0xe] }
  0xd7   : > { %6782 = vmatprep.mubr.bf16.mxu0 %v6159_v56  ;;  %v1166_v26 = vrot.slane %v1164_v11, 5  ;;  %v1170_v1 = vshll.u32 %v918_v34, 16  ;;  %v1174_v50 = vshrl.u32 %v918_v34, 16  ;;  %v1180_v22 = vshll.u32 %v957_v7, 16 }
  0xd8   : > { %6591 = vmatmul.mubr.bf16.gmra.mrb[12].mxu1 %v6048_v13  ;;  %v3047_v17 = vsel %vm7929_vm11, %v3042_v6, %v3046_v58  ;;  %v3052_v59 = vrot.slane %v3051_v30, 4  ;;  %v609_v14 = vrot.slane %v8259_v25, 4  ;;  %v611_v41 = vshrl.u32 %v8221_v37, 16  ;;  %v849_v58 = vld [vmem:[#allocation2 + $0x74] sm:$0x1] }
  0xd9   : > { %v1167_v2 = vor.u32 %v1166_v26, %v1163_v55  ;;  %v1172_v54 = vrot.slane %v1170_v1, 5  ;;  %v1176_v16 = vrot.slane %v1174_v50, 4  ;;  %v1182_v63 = vrot.slane %v1180_v22, 5  ;;  %v259_v6 = vld [vmem:[#allocation2 + $0x84] sm:$0x1] }
  0xda   : > { %v3057_v29 = vsel %vm7929_vm11, %v3052_v59, %v3056_v61  ;;  %v614_v24 = vshll.u32 %v8221_v37, 16  ;;  %v6194_v21 = vcombine.low %v8255_v15, %v8238_v42  ;;  %v613_v44 = vrot.slane %v611_v41, 7  ;;  %v315_v30 = vld [vmem:[#allocation2 + $0x8c] sm:$0x1]  ;;  %v3575_v22 = vld [vmem:[#allocation2 + $0x30] sm:$0xe] }
  0xdb   : > { %v6160_v34 = vcombine.low %v3047_v17, %v3057_v29  ;;  %v1168_v38 = vrot.slane %v1167_v2, 4  ;;  %v1177_v25 = vor.u32 %v1176_v16, %v1172_v54  ;;  %v919_v7 = vld [vmem:[#allocation2 + $0x6c] sm:$0xf]  ;;  %v257_v49 = vsel %vm7879_vm3, 0, %v256_v27 }
  0xdc   : > { %v1185_v57 = vshrl.u32 %v919_v7, 16  ;;  %v1188_v47 = vshll.u32 %v919_v7, 16  ;;  %v313_v62 = vsel %vm7885_vm4, 0, %v312_v39  ;;  %v616_v15 = vor.u32 %v614_v24, %v613_v44  ;;  %258 = vst [vmem:[#allocation2 + $0x78] sm:$0x1] %v257_v49  ;;  %v358_v7 = vld [vmem:[%s7867_s9 + $0xb0] sm:$0xff] }
  0xdd   : > { %6783 = vmatmul.mubr.bf16.gmra.mrb[12].mxu0 %v6160_v34  ;;  %v1173_v37 = vsel %vm7929_vm11, %v1168_v38, %v1172_v54  ;;  %v1178_v42 = vrot.slane %v1177_v25, 4  ;;  %v618_v56 = vrot.slane %v613_v44, 4  ;;  %314 = vst [vmem:[#allocation2 + $0x80] sm:$0x1] %v313_v62  ;;  %v6332_v11 = vpack.c.bf16 %v355_v43, %v355_v43 }
  0xde   : > { %6818 = vmatprep.mubr.bf16.mxu0 %v6193_v60  ;;  %v1187_v28 = vrot.slane %v1185_v57, 4  ;;  %v1190_v12 = vrot.slane %v1188_v47, 5  ;;  %v620_v13 = vshrl.u32 %v8244_v53, 16  ;;  %v617_v55 = vsel %vm7919_vm10, %v609_v14, %v616_v15  ;;  %v7368_v15 = vld [vmem:[#allocation6 + $0x190] sm:$0xff]  }
  0xdf   : > { %v1183_v61 = vsel %vm7929_vm11, %v1178_v42, %v1182_v63  ;;  %v850_v26 = vsel %vm7879_vm3, %v618_v56, %v849_v58  ;;  %v623_v1 = vshll.u32 %v8244_v53, 16  ;;  %848 = vst [vmem:[#allocation2 + $0x70] sm:$0xf] %v617_v55  ;;  %v628_v59 = vshrl.u32 %v6332_v11, 16  ;;  %v262_v55 = vld [vmem:[#allocation2 + $0x90] sm:$0x1] }
  0xe0   : > { %v6049_v60 = vcombine.low %v1173_v37, %v1183_v61  ;;  %851 = vst [vmem:[#allocation2 + $0x74] sm:$0x1] %v850_v26  ;;  %v1191_v50 = vor.u32 %v1190_v12, %v1187_v28  ;;  %v622_v17 = vrot.slane %v620_v13, 7  ;;  %v631_v27 = vshll.u32 %v6332_v11, 16  ;;  %v318_v26 = vld [vmem:[#allocation2 + $0x98] sm:$0x1] }
  0xe1   : > { %v6179_v2 = vrot.slane %v3574_v45, 9  ;;  %v3652_v54 = vrot.slane %v8055_v33, 5  ;;  %v3655_v14 = vrot.slane %v8057_v35, 5  ;;  %v630_v39 = vrot.slane %v628_v59, 7  ;;  %v7366_v33 = vld [vmem:[#allocation6 + $0x188] sm:$0xff]  }
  0xe2   : > { %6594 = vmatprep.mubr.bf16.mxu1 %v6049_v60  ;;  %v8310_v16 = vrot.slane %v1191_v50, 4  ;;  %v625_v41 = vor.u32 %v623_v1, %v622_v17  ;;  %v626_v53 = vrot.slane %v622_v17, 4  ;;  %v260_v24 = vsel %vm7879_vm3, 0, %v259_v6  ;;  %v359_v50 = vld [vmem:[%s7867_s9 + $0xb8] sm:$0xff]  ;;  %v360_v17 = vld [vmem:[%s7867_s9 + $0xc0] sm:$0xff] }
  0xe3   : > { %v3653_v29 = vsel %vm8202_vm14, %v6179_v2, %v3652_v54  ;;  %v3654_v63 = vrot.slane %v3652_v54, 4  ;;  %v316_v43 = vsel %vm7885_vm4, 0, %v315_v30  ;;  %v633_v34 = vor.u32 %v631_v27, %v630_v39  ;;  %v852_v38 = vld [vmem:[#allocation2 + $0x78] sm:$0xf]  ;;  %261 = vst [vmem:[#allocation2 + $0x84] sm:$0x1] %v260_v24 }
  0xe4   : > { %v635_v35 = vrot.slane %v630_v39, 4  ;;  %v856_v25 = vld [vmem:[#allocation2 + $0x80] sm:$0x1]  ;;  %317 = vst [vmem:[#allocation2 + $0x8c] sm:$0x1] %v316_v43  ;;  %v6333_v44 = vpack.c.bf16 %v356_v32, %v356_v32  ;;  %v6334_v58 = vpack.c.bf16 %v357_v36, %v357_v36  ;;  %v853_v57 = vsel %vm7912_vm9, %v625_v41, %v852_v38  ;;  %v7370_v54 = vld [vmem:[#allocation6 + $0x198] sm:$0xff]  }
  0xe5   : > { %6819 = vmatmul.mubr.bf16.vlgmr.msra.gmra.mrb[0].mxu0 %v6194_v21  ;;  %v3656_v47 = vsel %vm8202_vm14, %v3654_v63, %v3655_v14  ;;  %v6180_v49 = vrot.slane %v3575_v22, 9  ;;  %v3659_v62 = vrot.slane %v8076_v18, 5  ;;  %v634_v45 = vsel %vm7919_vm10, %v626_v53, %v633_v34  ;;  %854 = vst [vmem:[#allocation2 + $0x78] sm:$0xf] %v853_v57 }
  0xe6   : > { %6851 = vmatpush3.bf16.msra.mxu0 %v8113_v48  ;;  %v857_v37 = vsel %vm7879_vm3, %v635_v35, %v856_v25  ;;  %v6195_v42 = vcombine.low %v3653_v29, %v3656_v47  ;;  %v637_v21 = vshrl.u32 %v6333_v44, 16  ;;  %v920_v56 = vld [vmem:[#allocation2 + $0x70] sm:$0xf]  ;;  %855 = vst [vmem:[#allocation2 + $0x7c] sm:$0xf] %v634_v45  ;;  %v640_v12 = vshll.u32 %v6333_v44, 16 }
  0xe7   : > { %v958_v28 = vld [vmem:[#allocation2 + $0x74] sm:$0x1]  ;;  %858 = vst [vmem:[#allocation2 + $0x80] sm:$0x1] %v857_v37  ;;  %v645_v11 = vshrl.u32 %v6334_v58, 16  ;;  %v3660_v18 = vsel %vm8202_vm14, %v6180_v49, %v3659_v62  ;;  %6852 = vmatprep.subr.bf16.mxu0 %v7366_v33  ;;  %v8331_v48 = vpack.c.bf16 %v358_v7, %v358_v7  ;;  %v1194_v13 = vshll.u32 %v920_v56, 16 }
  0xe8   : > { %v1198_v6 = vshrl.u32 %v920_v56, 16  ;;  %v1204_v30 = vshll.u32 %v958_v28, 16  ;;  %6822 = vmatprep.mubr.bf16.mxu0 %v6195_v42  ;;  %v639_v61 = vrot.slane %v637_v21, 7  ;;  %v648_v32 = vshll.u32 %v6334_v58, 16 }
  0xe9   : > { %v647_v1 = vrot.slane %v645_v11, 7  ;;  %v3661_v36 = vrot.slane %v3659_v62, 4  ;;  %v3662_v60 = vrot.slane %v8078_v19, 5  ;;  %v1196_v59 = vrot.slane %v1194_v13, 5  ;;  %v3576_v11 = vld [vmem:[#allocation2 + $0x3c] sm:$0xe] }
  0xea   : > { %v1200_v22 = vrot.slane %v1198_v6, 4  ;;  %v1206_v27 = vrot.slane %v1204_v30, 5  ;;  %v642_v2 = vor.u32 %v640_v12, %v639_v61  ;;  %6853 = vmatpush3.bf16.msra.mxu0 %v7366_v33  ;;  %v643_v14 = vrot.slane %v639_v61, 4  ;;  %v859_v39 = vld [vmem:[#allocation2 + $0x84] sm:$0xf] }
  0xeb   : > { %v650_v41 = vor.u32 %v648_v32, %v647_v1  ;;  %v652_v53 = vrot.slane %v647_v1, 4  ;;  %v863_v29 = vld [vmem:[#allocation2 + $0x8c] sm:$0x1]  ;;  %v3663_v63 = vsel %vm8202_vm14, %v3661_v36, %v3662_v60  ;;  %6854 = vmatprep.subr.bf16.mxu0 %v7368_v15  ;;  %v1197_v19 = vsel %vm7929_vm11, %v8310_v16, %v1196_v59 }
  0xec   : > { %v1201_v24 = vor.u32 %v1200_v22, %v1196_v59  ;;  %v860_v43 = vsel %vm7912_vm9, %v642_v2, %v859_v39  ;;  %v6196_v34 = vcombine.low %v3660_v18, %v3663_v63  ;;  %v921_v33 = vld [vmem:[#allocation2 + $0x78] sm:$0xf]  ;;  %v263_v25 = vsel %vm7879_vm3, 0, %v262_v55  ;;  %v361_v55 = vld [vmem:[%s7867_s9 + $0xc8] sm:$0xff] }
  0xed   : > { %v651_v35 = vsel %vm7919_vm10, %v643_v14, %v650_v41  ;;  %861 = vst [vmem:[#allocation2 + $0x84] sm:$0xf] %v860_v43  ;;  %v864_v38 = vsel %vm7879_vm3, %v652_v53, %v863_v29  ;;  %v319_v44 = vsel %vm7885_vm4, 0, %v318_v26  ;;  %v922_v58 = vld [vmem:[#allocation2 + $0x7c] sm:$0xf]  ;;  %v1209_v57 = vshrl.u32 %v921_v33, 16 }
  0xee   : > { %v1202_v16 = vrot.slane %v1201_v24, 4  ;;  %v959_v7 = vld [vmem:[#allocation2 + $0x80] sm:$0x1]  ;;  %862 = vst [vmem:[#allocation2 + $0x88] sm:$0xf] %v651_v35  ;;  %6823 = vmatmul.mubr.bf16.gmra.mrb[4].mxu0 %v6196_v34  ;;  %v6336_v47 = vpack.c.bf16 %v359_v50, %v359_v50  ;;  %v8351_v49 = vpack.c.bf16 %v360_v17, %v360_v17  ;;  %v1212_v62 = vshll.u32 %v921_v33, 16 }
  0xef   : > { %865 = vst [vmem:[#allocation2 + $0x8c] sm:$0x1] %v864_v38  ;;  %264 = vst [vmem:[#allocation2 + $0x90] sm:$0x1] %v263_v25  ;;  %v1218_v45 = vshll.u32 %v922_v58, 16  ;;  %v1222_v37 = vshrl.u32 %v922_v58, 16  ;;  %6855 = vmatpush3.bf16.msra.mxu0 %v7368_v15 }
  0xf0   : > { %320 = vst [vmem:[#allocation2 + $0x98] sm:$0x1] %v319_v44  ;;  %v1228_v42 = vshll.u32 %v959_v7, 16  ;;  %v1207_v21 = vsel %vm7929_vm11, %v1202_v16, %v1206_v27  ;;  %v1211_v56 = vrot.slane %v1209_v57, 4  ;;  %v654_v28 = vshrl.u32 %v8331_v48, 16  ;;  %6856 = vmatprep.subr.bf16.mxu0 %v7370_v54  ;;  %v7374_v18 = vld [vmem:[#allocation6 + $0x1a0] sm:$0xff]  }
  0xf1   : > { %v657_v12 = vshll.u32 %v8331_v48, 16  ;;  %v6050_v13 = vcombine.low %v1197_v19, %v1207_v21  ;;  %v1214_v6 = vrot.slane %v1212_v62, 5  ;;  %v1220_v30 = vrot.slane %v1218_v45, 5  ;;  %v7378_v14 = vld [vmem:[#allocation6 + $0x1a8] sm:$0xff]   ;;  %v265_v43 = vld [vmem:[#allocation2 + $0x9c] sm:$0x1] }
  0xf2   : > { %v1224_v61 = vrot.slane %v1222_v37, 4  ;;  %v1230_v26 = vrot.slane %v1228_v42, 5  ;;  %v656_v1 = vrot.slane %v654_v28, 7  ;;  %v662_v32 = vshrl.u32 %v6336_v47, 16  ;;  %v321_v44 = vld [vmem:[#allocation2 + $0xa4] sm:$0x1] }
  0xf3   : > { %v665_v15 = vshll.u32 %v6336_v47, 16  ;;  %6595 = vmatmul.mubr.bf16.gmra.mrb[16].mxu1 %v6050_v13  ;;  %v1215_v36 = vor.u32 %v1214_v6, %v1211_v56  ;;  %v6181_v50 = vrot.slane %v3576_v11, 9  ;;  %v3666_v17 = vrot.slane %v8133_v3, 5  ;;  %6857 = vmatpush3.bf16.msra.mxu0 %v7370_v54  ;;  %v7382_v62 = vld [vmem:[#allocation6 + $0x1b0] sm:$0xff]  }
  0xf4   : > { %v1225_v60 = vor.u32 %v1224_v61, %v1220_v30  ;;  %v8359_v48 = vld [vmem:[#allocation2 + $0x84] sm:$0xf]  ;;  %v659_v59 = vor.u32 %v657_v12, %v656_v1  ;;  %v660_v22 = vrot.slane %v656_v1, 4  ;;  %v664_v27 = vrot.slane %v662_v32, 7  ;;  %6858 = vmatprep.subr.bf16.mxu0 %v7374_v18  ;;  %v3577_v56 = vld [vmem:[#allocation2 + $0x48] sm:$0xe] }
  0xf5   : > { %v3669_v2 = vrot.slane %v8146_v8, 5  ;;  %v1216_v41 = vrot.slane %v1215_v36, 4  ;;  %v8362_v39 = vld [vmem:[#allocation2 + $0x88] sm:$0xf]  ;;  %v3667_v63 = vsel %vm8202_vm14, %v6181_v50, %v3666_v17  ;;  %v8366_v19 = vpack.c.bf16 %v361_v55, %v361_v55  ;;  %v324_v36 = vld [vmem:[#allocation2 + $0xb0] sm:$0x1] }
  0xf6   : > { %v1226_v53 = vrot.slane %v1225_v60, 4  ;;  %v960_v29 = vld [vmem:[#allocation2 + $0x8c] sm:$0x1]  ;;  %v1233_v3 = vshrl.u32 %v8359_v48, 16  ;;  %v1236_v54 = vshll.u32 %v8359_v48, 16  ;;  %v1242_v24 = vshll.u32 %v8362_v39, 16 }
  0xf7   : > { %v1246_v8 = vshrl.u32 %v8362_v39, 16  ;;  %v1221_v34 = vsel %vm7929_vm11, %v1216_v41, %v1220_v30  ;;  %v1252_v35 = vshll.u32 %v960_v29, 16  ;;  %v667_v38 = vor.u32 %v665_v15, %v664_v27  ;;  %v866_v25 = vld [vmem:[#allocation2 + $0x90] sm:$0xf]  ;;  %6859 = vmatpush3.bf16.msra.mxu0 %v7374_v18  ;;  %v870_v47 = vld [vmem:[#allocation2 + $0x98] sm:$0x1] }
  0xf8   : > { %v1231_v33 = vsel %vm7929_vm11, %v1226_v53, %v1230_v26  ;;  %v1235_v58 = vrot.slane %v1233_v3, 4  ;;  %v1238_v7 = vrot.slane %v1236_v54, 5  ;;  %v1244_v57 = vrot.slane %v1242_v24, 5  ;;  %6860 = vmatprep.subr.bf16.mxu0 %v7378_v14  ;;  %v268_v15 = vld [vmem:[#allocation2 + $0xa8] sm:$0x1]  ;;  %v7386_v60 = vld [vmem:[#allocation6 + $0x1b8] sm:$0xff]  }
  0xf9   : > { %v6051_v16 = vcombine.low %v1221_v34, %v1231_v33  ;;  %v1248_v45 = vrot.slane %v1246_v8, 4  ;;  %v1254_v37 = vrot.slane %v1252_v35, 5  ;;  %v668_v42 = vsel %vm7919_vm10, %v660_v22, %v667_v38  ;;  %v8402_v34 = vld [vmem:[#allocation6 + $0x1c0] sm:$0xff]  }
  0xfa   : > { %v669_v21 = vrot.slane %v664_v27, 4  ;;  %v1239_v28 = vor.u32 %v1238_v7, %v1235_v58  ;;  %v867_v12 = vsel %vm7912_vm9, %v659_v59, %v866_v25  ;;  %869 = vst [vmem:[#allocation2 + $0x94] sm:$0xf] %v668_v42  ;;  %v3668_v11 = vrot.slane %v3666_v17, 4  ;;  %v362_v27 = vld [vmem:[%s7867_s9 + $0xd0] sm:$0xff] }
  0xfb   : > { %6598 = vmatprep.mubr.bf16.mxu1 %v6051_v16  ;;  %v266_v18 = vsel %vm7879_vm3, 0, %v265_v43  ;;  %v1249_v13 = vor.u32 %v1248_v45, %v1244_v57  ;;  %868 = vst [vmem:[#allocation2 + $0x90] sm:$0xf] %v867_v12  ;;  %v322_v30 = vsel %vm7885_vm4, 0, %v321_v44  ;;  %v671_v61 = vshrl.u32 %v8351_v49, 16  ;;  %6861 = vmatpush3.bf16.msra.mxu0 %v7378_v14 }
  0xfc   : > { %v871_v6 = vsel %vm7879_vm3, %v669_v21, %v870_v47  ;;  %267 = vst [vmem:[#allocation2 + $0x9c] sm:$0x1] %v266_v18  ;;  %v1240_v55 = vrot.slane %v1239_v28, 4  ;;  %v3670_v26 = vsel %vm8202_vm14, %v3668_v11, %v3669_v2  ;;  %323 = vst [vmem:[#allocation2 + $0xa4] sm:$0x1] %v322_v30  ;;  %v674_v1 = vshll.u32 %v8351_v49, 16  ;;  %6862 = vmatprep.subr.bf16.mxu0 %v7382_v62 }
  0xfd   : > { %872 = vst [vmem:[#allocation2 + $0x98] sm:$0x1] %v871_v6  ;;  %v679_v32 = vshrl.u32 %v8366_v19, 16  ;;  %v1250_v50 = vrot.slane %v1249_v13, 4  ;;  %v6197_v17 = vcombine.low %v3667_v63, %v3670_v26  ;;  %v673_v59 = vrot.slane %v671_v61, 7  ;;  %v363_v49 = vld [vmem:[%s7867_s9 + $0xd8] sm:$0xff] }
  0xfe   : > { %v682_v22 = vshll.u32 %v8366_v19, 16  ;;  %v1245_v14 = vsel %vm7929_vm11, %v1240_v55, %v1244_v57  ;;  %v6182_v41 = vrot.slane %v3577_v56, 9  ;;  %v3673_v53 = vrot.slane %v8162_v20, 5  ;;  %v3578_v18 = vld [vmem:[#allocation2 + $0x54] sm:$0xe] }
  0xff   : > { %v681_v2 = vrot.slane %v679_v32, 7  ;;  %v1255_v29 = vsel %vm7929_vm11, %v1250_v50, %v1254_v37  ;;  %6826 = vmatprep.mubr.bf16.mxu0 %v6197_v17  ;;  %v676_v3 = vor.u32 %v674_v1, %v673_v59  ;;  %v677_v54 = vrot.slane %v673_v59, 4  ;;  %6863 = vmatpush3.bf16.msra.mxu0 %v7382_v62 }
 0x100   : > { %v3676_v63 = vrot.slane %v8164_v23, 5  ;;  %v6052_v24 = vcombine.low %v1245_v14, %v1255_v29  ;;  %v3674_v43 = vsel %vm8202_vm14, %v6182_v41, %v3673_v53  ;;  %6864 = vmatprep.subr.bf16.mxu0 %v7386_v60  ;;  %v3675_v33 = vrot.slane %v3673_v53, 4  ;;  %v271_v29 = vld [vmem:[#allocation2 + $0xb4] sm:$0x1] }
 0x101   : > { %v684_v19 = vor.u32 %v682_v22, %v681_v2  ;;  %v686_v8 = vrot.slane %v681_v2, 4  ;;  %v8404_v20 = vld [vmem:[#allocation2 + $0x94] sm:$0xf]  ;;  %v269_v35 = vsel %vm7879_vm3, 0, %v268_v15  ;;  %v325_v38 = vsel %vm7885_vm4, 0, %v324_v36  ;;  %v364_v15 = vld [vmem:[%s7867_s9 + $0xe0] sm:$0xff] }
 0x102   : > { %v6339_v23 = vpack.c.bf16 %v362_v27, %v362_v27  ;;  %6599 = vmatmul.mubr.bf16.gmra.mrb[20].mxu1 %v6052_v24  ;;  %v8410_v25 = vld [vmem:[#allocation2 + $0x90] sm:$0xf]  ;;  %v1266_v44 = vshll.u32 %v8404_v20, 16  ;;  %v1270_v16 = vshrl.u32 %v8404_v20, 16  ;;  %270 = vst [vmem:[#allocation2 + $0xa8] sm:$0x1] %v269_v35  ;;  %v6340_v57 = vpack.c.bf16 %v363_v49, %v363_v49 }
 0x103   : > { %v685_v58 = vsel %vm7919_vm10, %v677_v54, %v684_v19  ;;  %v873_v7 = vld [vmem:[#allocation2 + $0x9c] sm:$0xf]  ;;  %326 = vst [vmem:[#allocation2 + $0xb0] sm:$0x1] %v325_v38  ;;  %v1257_v62 = vshrl.u32 %v8410_v25, 16  ;;  %v1260_v45 = vshll.u32 %v8410_v25, 16  ;;  %v3677_v21 = vsel %vm8202_vm14, %v3675_v33, %v3676_v63  ;;  %6865 = vmatpush3.bf16.msra.mxu0 %v7386_v60 }
 0x104   : > { %v961_v47 = vld [vmem:[#allocation2 + $0x98] sm:$0x1]  ;;  %v874_v37 = vsel %vm7912_vm9, %v676_v3, %v873_v7  ;;  %876 = vst [vmem:[#allocation2 + $0xa0] sm:$0xf] %v685_v58  ;;  %v877_v42 = vld [vmem:[#allocation2 + $0xa4] sm:$0x1]  ;;  %6898 = vmatprep.subr.bf16.mxu0 %v8402_v34  ;;  %v6198_v30 = vcombine.low %v3674_v43, %v3677_v21  ;;  %v6341_v3 = vpack.c.bf16 %v364_v15, %v364_v15 }
 0x105   : > { %v1268_v56 = vrot.slane %v1266_v44, 5  ;;  %v1272_v28 = vrot.slane %v1270_v16, 4  ;;  %v1276_v12 = vshll.u32 %v961_v47, 16  ;;  %875 = vst [vmem:[#allocation2 + $0x9c] sm:$0xf] %v874_v37  ;;  %v878_v11 = vsel %vm7879_vm3, %v686_v8, %v877_v42  ;;  %v365_v47 = vld [vmem:[%s7867_s9 + $0xe8] sm:$0xff] }
 0x106   : > { %v1259_v13 = vrot.slane %v1257_v62, 4  ;;  %v1262_v6 = vrot.slane %v1260_v45, 5  ;;  %879 = vst [vmem:[#allocation2 + $0xa4] sm:$0x1] %v878_v11  ;;  %v688_v61 = vshrl.u32 %v6339_v23, 16  ;;  %v691_v1 = vshll.u32 %v6339_v23, 16  ;;  %6827 = vmatmul.mubr.bf16.gmra.mrb[8].mxu0 %v6198_v30 }
 0x107   : > { %v1273_v55 = vor.u32 %v1272_v28, %v1268_v56  ;;  %v1278_v26 = vrot.slane %v1276_v12, 5  ;;  %v696_v32 = vshrl.u32 %v6340_v57, 16  ;;  %v699_v50 = vshll.u32 %v6340_v57, 16  ;;  %v327_v23 = vld [vmem:[#allocation2 + $0xbc] sm:$0x1] }
 0x108   : > { %v1263_v36 = vor.u32 %v1262_v6, %v1259_v13  ;;  %v690_v60 = vrot.slane %v688_v61, 7  ;;  %v6183_v17 = vrot.slane %v3578_v18, 9  ;;  %v3680_v27 = vrot.slane %v8247_v46, 5  ;;  %v3579_v11 = vld [vmem:[#allocation2 + $0x60] sm:$0xe] }
 0x109   : > { %v1274_v59 = vrot.slane %v1273_v55, 4  ;;  %v698_v22 = vrot.slane %v696_v32, 7  ;;  %v3683_v14 = vrot.slane %v8240_v5, 5  ;;  %v880_v49 = vld [vmem:[#allocation2 + $0xa8] sm:$0xf]  ;;  %v272_v12 = vsel %vm7879_vm3, 0, %v271_v29 }
 0x10a   : > { %v1264_v2 = vrot.slane %v1263_v36, 4  ;;  %v693_v41 = vor.u32 %v691_v1, %v690_v60  ;;  %v694_v53 = vrot.slane %v690_v60, 4  ;;  %v884_v8 = vld [vmem:[#allocation2 + $0xb0] sm:$0x1]  ;;  %v3681_v46 = vsel %vm8202_vm14, %v6183_v17, %v3680_v27  ;;  %273 = vst [vmem:[#allocation2 + $0xb4] sm:$0x1] %v272_v12 }
 0x10b   : > { %v1279_v54 = vsel %vm7929_vm11, %v1274_v59, %v1278_v26  ;;  %v8430_v63 = vld [vmem:[#allocation2 + $0xa0] sm:$0xf]  ;;  %v701_v24 = vor.u32 %v699_v50, %v698_v22  ;;  %v703_v19 = vrot.slane %v698_v22, 4  ;;  %v3682_v28 = vrot.slane %v3680_v27, 4 }
 0x10c   : > { %v1269_v5 = vsel %vm7929_vm11, %v1264_v2, %v1268_v56  ;;  %v8436_v43 = vld [vmem:[#allocation2 + $0x9c] sm:$0xf]  ;;  %v1290_v33 = vshll.u32 %v8430_v63, 16  ;;  %v1294_v35 = vshrl.u32 %v8430_v63, 16  ;;  %v881_v38 = vsel %vm7912_vm9, %v693_v41, %v880_v49 }
 0x10d   : > { %v6053_v44 = vcombine.low %v1269_v5, %v1279_v54  ;;  %v962_v16 = vld [vmem:[#allocation2 + $0xa4] sm:$0x1]  ;;  %v1281_v58 = vshrl.u32 %v8436_v43, 16  ;;  %v1284_v7 = vshll.u32 %v8436_v43, 16  ;;  %v702_v57 = vsel %vm7919_vm10, %v694_v53, %v701_v24  ;;  %882 = vst [vmem:[#allocation2 + $0xa8] sm:$0xf] %v881_v38 }
 0x10e   : > { %v1292_v62 = vrot.slane %v1290_v33, 5  ;;  %v1296_v45 = vrot.slane %v1294_v35, 4  ;;  %v1300_v37 = vshll.u32 %v962_v16, 16  ;;  %883 = vst [vmem:[#allocation2 + $0xac] sm:$0xf] %v702_v57  ;;  %v885_v42 = vsel %vm7879_vm3, %v703_v19, %v884_v8 }
 0x10f   : > { %6602 = vmatprep.mubr.bf16.mxu1 %v6053_v44  ;;  %v1283_v21 = vrot.slane %v1281_v58, 4  ;;  %v1286_v56 = vrot.slane %v1284_v7, 5  ;;  %886 = vst [vmem:[#allocation2 + $0xb0] sm:$0x1] %v885_v42  ;;  %v328_v6 = vsel %vm7885_vm4, 0, %v327_v23  ;;  %v6342_v30 = vpack.c.bf16 %v365_v47, %v365_v47 }
 0x110   : > { %v1297_v18 = vor.u32 %v1296_v45, %v1292_v62  ;;  %v1302_v13 = vrot.slane %v1300_v37, 5  ;;  %v3684_v55 = vsel %vm8202_vm14, %v3682_v28, %v3683_v14  ;;  %329 = vst [vmem:[#allocation2 + $0xbc] sm:$0x1] %v328_v6  ;;  %v705_v26 = vshrl.u32 %v6341_v3, 16  ;;  %v3580_v24 = vld [vmem:[#allocation2 + $0x6c] sm:$0xe] }
 0x111   : > { %v1287_v61 = vor.u32 %v1286_v56, %v1283_v21  ;;  %v708_v1 = vshll.u32 %v6341_v3, 16  ;;  %v6199_v15 = vcombine.low %v3681_v46, %v3684_v55  ;;  %v713_v36 = vshrl.u32 %v6342_v30, 16  ;;  %v2843_v33 = vld [vmem:[#allocation2 + $0x70] sm:$0xf]  ;;  %v887_v16 = vld [vmem:[#allocation2 + $0xb4] sm:$0xf] }
 0x112   : > { %v1298_v32 = vrot.slane %v1297_v18, 4  ;;  %v707_v50 = vrot.slane %v705_v26, 7  ;;  %v716_v17 = vshll.u32 %v6342_v30, 16  ;;  %v6184_v59 = vrot.slane %v3579_v11, 9  ;;  %v3581_v18 = vld [vmem:[#allocation2 + $0x78] sm:$0xe] }
 0x113   : > { %v1288_v60 = vrot.slane %v1287_v61, 4  ;;  %6830 = vmatprep.mubr.bf16.mxu0 %v6199_v15  ;;  %v715_v2 = vrot.slane %v713_v36, 7  ;;  %v3687_v41 = vrot.slane %v8261_v31, 5  ;;  %v3690_v14 = vrot.slane %v8270_v40, 5  ;;  %v2844_v40 = vld [vmem:[#allocation2 + $0x74] sm:$0x1] }
 0x114   : > { %v1303_v22 = vsel %vm7929_vm11, %v1298_v32, %v1302_v13  ;;  %v8457_v27 = vld [vmem:[#allocation2 + $0xa8] sm:$0xf]  ;;  %v710_v54 = vor.u32 %v708_v1, %v707_v50  ;;  %v711_v31 = vrot.slane %v707_v50, 4  ;;  %v6185_v11 = vrot.slane %v3580_v24, 9  ;;  %v8477_v61 = vld [vmem:[#allocation2 + $0x7c] sm:$0xf] }
 0x115   : > { %v1293_v53 = vsel %vm7929_vm11, %v1288_v60, %v1292_v62  ;;  %v8463_v49 = vld [vmem:[#allocation2 + $0xac] sm:$0xf]  ;;  %v1305_v29 = vshrl.u32 %v8457_v27, 16  ;;  %v1308_v3 = vshll.u32 %v8457_v27, 16  ;;  %v718_v44 = vor.u32 %v716_v17, %v715_v2  ;;  %v8481_v1 = vld [vmem:[#allocation2 + $0x80] sm:$0x1] }
 0x116   : > { %v6054_v19 = vcombine.low %v1293_v53, %v1303_v22  ;;  %v963_v8 = vld [vmem:[#allocation2 + $0xb0] sm:$0x1]  ;;  %v1314_v46 = vshll.u32 %v8463_v49, 16  ;;  %v1318_v5 = vshrl.u32 %v8463_v49, 16  ;;  %v720_v57 = vrot.slane %v715_v2, 4 }
 0x117   : > { %v1307_v35 = vrot.slane %v1305_v29, 4  ;;  %v1310_v38 = vrot.slane %v1308_v3, 5  ;;  %v1324_v23 = vshll.u32 %v963_v8, 16  ;;  %v888_v47 = vsel %vm7912_vm9, %v710_v54, %v887_v16  ;;  %v891_v62 = vld [vmem:[#allocation2 + $0xbc] sm:$0x1] }
 0x118   : > { %6603 = vmatmul.mubr.bf16.gmra.mrb[24].mxu1 %v6054_v19  ;;  %v1316_v58 = vrot.slane %v1314_v46, 5  ;;  %v1320_v7 = vrot.slane %v1318_v5, 4  ;;  %v719_v42 = vsel %vm7919_vm10, %v711_v31, %v718_v44  ;;  %889 = vst [vmem:[#allocation2 + $0xb4] sm:$0xf] %v888_v47  ;;  %v3688_v21 = vsel %vm8202_vm14, %v6184_v59, %v3687_v41  ;;  %v2849_v29 = vld [vmem:[#allocation2 + $0x88] sm:$0xf] }
 0x119   : > { %v1311_v45 = vor.u32 %v1310_v38, %v1307_v35  ;;  %v1326_v37 = vrot.slane %v1324_v23, 5  ;;  %890 = vst [vmem:[#allocation2 + $0xb8] sm:$0xf] %v719_v42  ;;  %v892_v28 = vsel %vm7879_vm3, %v720_v57, %v891_v62  ;;  %v3689_v12 = vrot.slane %v3687_v41, 4  ;;  %v2850_v3 = vld [vmem:[#allocation2 + $0x8c] sm:$0x1] }
 0x11a   : > { %v1321_v56 = vor.u32 %v1320_v7, %v1316_v58  ;;  %893 = vst [vmem:[#allocation2 + $0xbc] sm:$0x1] %v892_v28  ;;  %v3694_v6 = vrot.slane %v2843_v33, 5  ;;  %v3697_v30 = vrot.slane %v2844_v40, 5  ;;  %v6186_v22 = vrot.slane %v3581_v18, 9 }
 0x11b   : > { %v1312_v13 = vrot.slane %v1311_v45, 4  ;;  %v3691_v26 = vsel %vm8202_vm14, %v3689_v12, %v3690_v14  ;;  %v3701_v2 = vrot.slane %v8477_v61, 5  ;;  %v3704_v53 = vrot.slane %v8481_v1, 5  ;;  %v3582_v54 = vld [vmem:[#allocation2 + $0x84] sm:$0xe] }
 0x11c   : > { %v1322_v55 = vrot.slane %v1321_v56, 4  ;;  %v6200_v15 = vcombine.low %v3688_v21, %v3691_v26  ;;  %v3695_v36 = vsel %vm8202_vm14, %v6185_v11, %v3694_v6  ;;  %v3696_v60 = vrot.slane %v3694_v6, 4  ;;  %v2852_v31 = vld [vmem:[#allocation2 + $0x94] sm:$0xf]  ;;  %v2853_v38 = vld [vmem:[#allocation2 + $0x98] sm:$0x1] }
 0x11d   : > { %v1317_v32 = vsel %vm7929_vm11, %v1312_v13, %v1316_v58  ;;  %v3702_v46 = vsel %vm8202_vm14, %v6186_v22, %v3701_v2  ;;  %v3703_v5 = vrot.slane %v3701_v2, 4  ;;  %v3583_v7 = vld [vmem:[#allocation2 + $0x90] sm:$0xe]  ;;  %v6187_v45 = vrot.slane %v3582_v54, 9  ;;  %v3584_v42 = vld [vmem:[#allocation2 + $0x9c] sm:$0xe] }
 0x11e   : > { %v1327_v50 = vsel %vm7929_vm11, %v1322_v55, %v1326_v37  ;;  %6831 = vmatmul.mubr.bf16.gmra.mrb[12].mxu0 %v6200_v15  ;;  %v3698_v59 = vsel %vm8202_vm14, %v3696_v60, %v3697_v30  ;;  %v2855_v37 = vld [vmem:[#allocation2 + $0xa0] sm:$0xf]  ;;  %v3708_v28 = vrot.slane %v2849_v29, 5  ;;  %v3711_v12 = vrot.slane %v2850_v3, 5  ;;  %v2856_v11 = vld [vmem:[#allocation2 + $0xa4] sm:$0x1] }
 0x11f   : > { %v6055_v17 = vcombine.low %v1317_v32, %v1327_v50  ;;  %v8492_v41 = vld [vmem:[#allocation2 + $0xb4] sm:$0xf]  ;;  %v6201_v14 = vcombine.low %v3695_v36, %v3698_v59  ;;  %v3705_v58 = vsel %vm8202_vm14, %v3703_v5, %v3704_v53  ;;  %v6188_v13 = vrot.slane %v3583_v7, 9  ;;  %v2858_v15 = vld [vmem:[#allocation2 + $0xac] sm:$0xf] }
 0x120   : > { %v8495_v24 = vld [vmem:[#allocation2 + $0xb8] sm:$0xf]  ;;  %v1329_v19 = vshrl.u32 %v8492_v41, 16  ;;  %v1332_v8 = vshll.u32 %v8492_v41, 16  ;;  %v6202_v62 = vcombine.low %v3702_v46, %v3705_v58  ;;  %v3715_v6 = vrot.slane %v2852_v31, 5 }
 0x121   : > { %6606 = vmatprep.mubr.bf16.mxu1 %v6055_v17  ;;  %v964_v33 = vld [vmem:[#allocation2 + $0xbc] sm:$0x1]  ;;  %v1338_v40 = vshll.u32 %v8495_v24, 16  ;;  %v1342_v35 = vshrl.u32 %v8495_v24, 16  ;;  %6834 = vmatprep.mubr.bf16.mxu0 %v6201_v14  ;;  %v3709_v55 = vsel %vm8202_vm14, %v6187_v45, %v3708_v28  ;;  %v3710_v26 = vrot.slane %v3708_v28, 4 }
 0x122   : > { %v1331_v23 = vrot.slane %v1329_v19, 4  ;;  %v1334_v44 = vrot.slane %v1332_v8, 5  ;;  %v1348_v16 = vshll.u32 %v964_v33, 16  ;;  %v3718_v32 = vrot.slane %v2853_v38, 5  ;;  %v2859_v36 = vld [vmem:[#allocation2 + $0xb0] sm:$0x1] }
 0x123   : > { %v1340_v57 = vrot.slane %v1338_v40, 5  ;;  %v1344_v47 = vrot.slane %v1342_v35, 4  ;;  %v3585_v60 = vld [vmem:[#allocation2 + $0xa8] sm:$0xe]  ;;  %v8507_v17 = vld [vmem:[#allocation2 + $0x4] sm:$0xf]  ;;  %v3716_v2 = vsel %vm8202_vm14, %v6188_v13, %v3715_v6  ;;  %v3712_v54 = vsel %vm8202_vm14, %v3710_v26, %v3711_v12 }
 0x124   : > { %v1335_v21 = vor.u32 %v1334_v44, %v1331_v23  ;;  %v1350_v56 = vrot.slane %v1348_v16, 5  ;;  %v7456_v59 = vld [vmem:[#allocation2] sm:$0xf]  ;;  %v3717_v14 = vrot.slane %v3715_v6, 4  ;;  %v2861_v53 = vld [vmem:[#allocation2 + $0xb8] sm:$0xf]  ;;  %v6203_v5 = vcombine.low %v3709_v55, %v3712_v54 }
 0x125   : > { %v1345_v18 = vor.u32 %v1344_v47, %v1340_v57  ;;  %v6065_v22 = vcombine.low %v7456_v59, %v8507_v17  ;;  %v3586_v29 = vld [vmem:[#allocation2 + $0xb4] sm:$0xe]  ;;  %v6189_v19 = vrot.slane %v3584_v42, 9  ;;  %v3722_v8 = vrot.slane %v2855_v37, 5  ;;  %v274_v40 = vld [vmem:[#allocation2 + $0xc0] sm:$0x1] }
 0x126   : > { %v1336_v30 = vrot.slane %v1335_v21, 4  ;;  %6835 = vmatmul.mubr.bf16.gmra.mrb[16].mxu0 %v6202_v62  ;;  %v3719_v31 = vsel %vm8202_vm14, %v3717_v14, %v3718_v32  ;;  %v3725_v33 = vrot.slane %v2856_v11, 5  ;;  %v2862_v16 = vld [vmem:[#allocation2 + $0xbc] sm:$0x1]  ;;  %v330_v58 = vld [vmem:[#allocation2 + $0xc8] sm:$0x1] }
 0x127   : > { %v1346_v50 = vrot.slane %v1345_v18, 4  ;;  %v6204_v38 = vcombine.low %v3716_v2, %v3719_v31  ;;  %v3723_v23 = vsel %vm8202_vm14, %v6189_v19, %v3722_v8  ;;  %v3724_v44 = vrot.slane %v3722_v8, 4  ;;  %6838 = vmatprep.mubr.bf16.mxu0 %v6203_v5  ;;  %v366_v42 = vld [vmem:[%s7867_s9 + $0xf0] sm:$0xff]  ;;  %v367_v21 = vld [vmem:[%s7867_s9 + $0xf8] sm:$0xff]  ;;  %v7459_v59 = vld [vmem:[#allocation2 + $0x18] sm:$0xf] }
 0x128   : > { %v1341_v3 = vsel %vm7929_vm11, %v1336_v30, %v1340_v57  ;;  %v6190_v7 = vrot.slane %v3585_v60, 9  ;;  %v3729_v57 = vrot.slane %v2858_v15, 5  ;;  %v3732_v47 = vrot.slane %v2859_v36, 5  ;;  %v7457_v32 = vld [vmem:[#allocation2 + $0xc] sm:$0xf]  ;;  %v7461_v31 = vld [vmem:[#allocation6 + $0x80] sm:$0xff]  }
 0x129   : > { %v1351_v46 = vsel %vm7929_vm11, %v1346_v50, %v1350_v56  ;;  %v3726_v62 = vsel %vm8202_vm14, %v3724_v44, %v3725_v33  ;;  %v6191_v45 = vrot.slane %v3586_v29, 9  ;;  %v3736_v37 = vrot.slane %v2861_v53, 5  ;;  %v8534_v15 = vld [vmem:[#allocation2 + $0x10] sm:$0xf] }
 0x12a   : > { %v6056_v35 = vcombine.low %v1341_v3, %v1351_v46  ;;  %v6205_v56 = vcombine.low %v3723_v23, %v3726_v62  ;;  %v3731_v28 = vrot.slane %v3729_v57, 4  ;;  %v3739_v12 = vrot.slane %v2862_v16, 5  ;;  %v7377_v3 = vld [vmem:[#allocation6 + $0x88] sm:$0xff]   ;;  %v7381_v23 = vld [vmem:[#allocation6 + $0x90] sm:$0xff]  }
 0x12b   : > { %v3730_v11 = vsel %vm8202_vm14, %v6190_v7, %v3729_v57  ;;  %v3738_v18 = vrot.slane %v3736_v37, 4  ;;  %v275_v13 = vsel %vm7879_vm3, 0, %v274_v40  ;;  %v331_v30 = vsel %vm7885_vm4, 0, %v330_v58  ;;  %v7462_v57 = vld [vmem:[#allocation2 + $0x24] sm:$0xf] }
 0x12c   : > { %6607 = vmatmul.mubr.bf16.gmra.mrb[28].mxu1 %v6056_v35  ;;  %v3733_v6 = vsel %vm8202_vm14, %v3731_v28, %v3732_v47  ;;  %276 = vst [vmem:[#allocation2 + $0xc0] sm:$0x1] %v275_v13  ;;  %v6343_v55 = vpack.c.bf16 %v366_v42, %v366_v42  ;;  %v6344_v26 = vpack.c.bf16 %v367_v21, %v367_v21  ;;  %332 = vst [vmem:[#allocation2 + $0xc8] sm:$0x1] %v331_v30  ;;  %v8548_v47 = vld [vmem:[#allocation2 + $0x28] sm:$0xf] }
 0x12d   : > { %6626 = vmatprep.mubr.bf16.mxu1 %v6065_v22  ;;  %v6066_v36 = vcombine.low %v7457_v32, %v8534_v15  ;;  %v3737_v60 = vsel %vm8202_vm14, %v6191_v45, %v3736_v37  ;;  %v3740_v50 = vsel %vm8202_vm14, %v3738_v18, %v3739_v12  ;;  %v8541_v22 = vld [vmem:[#allocation2 + $0x1c] sm:$0xf]  ;;  %v6206_v54 = vcombine.low %v3730_v11, %v3733_v6  ;;  %v7464_v37 = vld [vmem:[#allocation2 + $0x30] sm:$0xf]  ;;  %v8553_v42 = vld [vmem:[#allocation2 + $0x34] sm:$0xf] }
 0x12e   : > { %6839 = vmatmul.mubr.bf16.gmra.mrb[20].mxu0 %v6204_v38  ;;  %v6067_v2 = vcombine.low %v7459_v59, %v8541_v22  ;;  %v722_v14 = vshrl.u32 %v6343_v55, 16  ;;  %v725_v53 = vshll.u32 %v6343_v55, 16  ;;  %v730_v29 = vshrl.u32 %v6344_v26, 16  ;;  %v7390_v21 = vld [vmem:[#allocation6 + $0xa0] sm:$0xff]   ;;  %v277_v12 = vld [vmem:[#allocation2 + $0xcc] sm:$0x1] }
 0x12f   : > { %6842 = vmatprep.mubr.bf16.mxu0 %v6205_v56  ;;  %v733_v19 = vshll.u32 %v6344_v26, 16  ;;  %v6207_v8 = vcombine.low %v3737_v60, %v3740_v50  ;;  %v6068_v62 = vcombine.low %v7462_v57, %v8548_v47  ;;  %v6069_v0 = vcombine.low %v7464_v37, %v8553_v42  ;;  %v8556_v11 = vld [vmem:[#allocation2 + $0x40] sm:$0xf]  ;;  %v7467_v18 = vld [vmem:[#allocation2 + $0x3c] sm:$0xf] }
 0x130   : > { %v724_v46 = vrot.slane %v722_v14, 7  ;;  %v732_v5 = vrot.slane %v730_v29, 7  ;;  %v6070_v13 = vcombine.low %v7467_v18, %v8556_v11  ;;  %v7468_v26 = vld [vmem:[#allocation2 + $0x48] sm:$0xf]  ;;  %v8559_v32 = vld [vmem:[#allocation2 + $0x4c] sm:$0xf] }
 0x131   : > { %v3092_v50 = vshll.u32 %v8477_v61, 16  ;;  %v3096_v59 = vshrl.u32 %v8477_v61, 16  ;;  %v278_v29 = vsel %vm7879_vm3, 0, %v277_v12  ;;  %v2000_v61 = vrot.slane %v8507_v17, 5  ;;  %v7472_v17 = vld [vmem:[#allocation2 + $0x8] sm:$0x1] }
 0x132   : > { %v727_v33 = vor.u32 %v725_v53, %v724_v46  ;;  %v728_v40 = vrot.slane %v724_v46, 4  ;;  %v735_v35 = vor.u32 %v733_v19, %v732_v5  ;;  %v737_v38 = vrot.slane %v732_v5, 4  ;;  %v7396_v53 = vld [vmem:[#allocation6 + $0xa8] sm:$0xff]   ;;  %279 = vst [vmem:[#allocation2 + $0xcc] sm:$0x1] %v278_v29 }
 0x133   : > { %v894_v44 = vld [vmem:[#allocation2 + $0xc0] sm:$0xf]  ;;  %v898_v7 = vld [vmem:[#allocation2 + $0xc8] sm:$0x1]  ;;  %v8573_v46 = vrot.slane %v3096_v59, 4  ;;  %v3102_v5 = vshll.u32 %v8481_v1, 16 }
 0x134   : > { %6627 = vmatmul.mubr.bf16.vlgmr.msra.gmra.mrb[0].mxu1 %v6066_v36  ;;  %v736_v16 = vsel %vm7919_vm10, %v728_v40, %v735_v35  ;;  %v895_v58 = vsel %vm7912_vm9, %v727_v33, %v894_v44  ;;  %v899_v45 = vsel %vm7879_vm3, %v737_v38, %v898_v7  ;;  %v6071_v36 = vcombine.low %v7468_v26, %v8559_v32  ;;  %v7470_v40 = vld [vmem:[#allocation2 + $0x54] sm:$0xf]  ;;  %v8577_v35 = vld [vmem:[#allocation2 + $0x58] sm:$0xf]  ;;  %v7391_v18 = vld [vmem:[#allocation2 + $0x24] sm:$0xff]  }
 0x135   : > { %6659 = vmatpush3.bf16.msra.mxu1 %v7461_v31  ;;  %6630 = vmatprep.mubr.bf16.mxu1 %v6067_v2  ;;  %896 = vst [vmem:[#allocation2 + $0xc0] sm:$0xf] %v895_v58  ;;  %897 = vst [vmem:[#allocation2 + $0xc4] sm:$0xf] %v736_v16  ;;  %v1947_v31 = vld [vmem:[#allocation2] sm:$0xe]  ;;  %v6072_v38 = vcombine.low %v7470_v40, %v8577_v35 }
 0x136   : > { %6660 = vmatprep.subr.bf16.mxu1 %v7377_v3  ;;  %6843 = vmatmul.mubr.bf16.gmra.mrb[24].mxu0 %v6206_v54  ;;  %900 = vst [vmem:[#allocation2 + $0xc8] sm:$0x1] %v899_v45  ;;  %v7388_v54 = vld [vmem:[#allocation2 + $0x18] sm:$0xff]   ;;  %v2007_v33 = vrot.slane %v8534_v15, 5  ;;  %v2003_v44 = vrot.slane %v7472_v17, 5  ;;  %v6089_v7 = vrot.slane %v1947_v31, 9 }
 0x137   : > { %6846 = vmatprep.mubr.bf16.mxu0 %v6207_v8  ;;  %v8571_v8 = vrot.slane %v3092_v50, 5  ;;  %v7473_v16 = vld [vmem:[#allocation2 + $0x60] sm:$0xf]  ;;  %v8580_v58 = vld [vmem:[#allocation2 + $0x64] sm:$0xf]  ;;  %v2002_v57 = vrot.slane %v2000_v61, 4  ;;  %v6077_v50 = vcombine.low %v8410_v25, %v8404_v20 }
 0x138   : > { %v6073_v1 = vcombine.low %v7473_v16, %v8580_v58  ;;  %v7475_v45 = vld [vmem:[#allocation2 + $0x14] sm:$0x1]  ;;  %v2009_v26 = vrot.slane %v2007_v33, 4  ;;  %v2035_v17 = vrot.slane %v8556_v11, 5  ;;  %v2042_v16 = vrot.slane %v8559_v32, 5 }
 0x139   : > { %6661 = vmatpush3.bf16.msra.mxu1 %v7377_v3  ;;  %9619 = vst [vmem:[#allocation16_spill] sm:$0xff] %v8571_v8  ;;  %v2010_v15 = vrot.slane %v7475_v45, 5  ;;  %v3099_v37 = vor.u32 %v8573_v46, %v8571_v8  ;;  %v8614_v29 = vsel %vm8202_vm14, %v2002_v57, %v2003_v44  ;;  %v1953_v44 = vld [vmem:[#allocation2 + $0x48] sm:$0xe]  ;;  %v7484_v31 = vld [vmem:[#allocation2 + $0x50] sm:$0x1] }
 0x13a   : > { %6662 = vmatprep.subr.bf16.mxu1 %v7381_v23  ;;  %v4460_v46 = vld [vmem:[#allocation2 + $0x24] sm:$0xf]  ;;  %v7487_v59 = vld [vmem:[#allocation2 + $0x74] sm:$0x1] }
 0x13b   : > { %v2066_v20 = vrot.slane %v7487_v59, 5 }
 0x13c   : > { %6631 = vmatmul.mubr.bf16.gmra.mrb[4].mxu1 %v6068_v62  ;;  %v2864_v56 = vld [vmem:[#allocation2 + $0xc4] sm:$0xf]  ;;  %v3587_v28 = vld [vmem:[#allocation2 + $0xc0] sm:$0xe]  ;;  %v1949_v62 = vld [vmem:[#allocation2 + $0x18] sm:$0xe] }
 0x13d   : > { %6634 = vmatprep.mubr.bf16.mxu1 %v6069_v0  ;;  %6663 = vmatpush3.bf16.msra.mxu1 %v7381_v23  ;;  %v2865_v6 = vld [vmem:[#allocation2 + $0xc8] sm:$0x1]  ;;  %v6192_v30 = vrot.slane %v3587_v28, 9  ;;  %v3743_v55 = vrot.slane %v2864_v56, 5  ;;  %v1948_v23 = vld [vmem:[#allocation2 + $0xc] sm:$0xe] }
 0x13e   : > { %6664 = vmatprep.subr.bf16.mxu1 %v7385_v52  ;;  %v3746_v60 = vrot.slane %v2865_v6, 5  ;;  %v8585_v0 = vrot.slane %v3102_v5, 5  ;;  %v8588_v56 = vld [vmem:[#allocation2 + $0x6c] sm:$0xf]  ;;  %v8590_v28 = vld [vmem:[#allocation2 + $0x70] sm:$0xf] }
 0x13f   : > { %v3744_v2 = vsel %vm8202_vm14, %v6192_v30, %v3743_v55  ;;  %v3745_v14 = vrot.slane %v3743_v55, 4  ;;  %v6074_v12 = vcombine.low %v8588_v56, %v8590_v28  ;;  %v8596_v6 = vld [vmem:[#allocation2 + $0x7c] sm:$0xf]  ;;  %v6090_v55 = vrot.slane %v1948_v23, 9  ;;  %v7410_v56 = vld [vmem:[#allocation6 + $0x1d8] sm:$0xff]  }
 0x140   : > { %9620 = vst [vmem:[#allocation17_spill] sm:$0xff] %v8585_v0  ;;  %v2028_v5 = vrot.slane %v8553_v42, 5  ;;  %v1952_v42 = vld [vmem:[#allocation2 + $0x3c] sm:$0xe]  ;;  %v2070_v25 = vrot.slane %v8596_v6, 5 }
 0x141   : > { %6665 = vmatpush3.bf16.msra.mxu1 %v7385_v52  ;;  %v3747_v3 = vsel %vm8202_vm14, %v3745_v14, %v3746_v60  ;;  %v7408_v52 = vld [vmem:[#allocation6 + $0xb8] sm:$0xff]   ;;  %v7398_v60 = vld [vmem:[#allocation6 + $0x1c8] sm:$0xff]   ;;  %v6091_v14 = vrot.slane %v1949_v62, 9  ;;  %v8624_v23 = vsel %vm8202_vm14, %v6090_v55, %v2007_v33  ;;  %v7481_v62 = vld [vmem:[#allocation2 + $0x2c] sm:$0x1] }
 0x142   : > { %6666 = vmatprep.subr.bf16.mxu1 %v7390_v21  ;;  %v6208_v19 = vcombine.low %v3744_v2, %v3747_v3  ;;  %v8606_v2 = vld [vmem:[#allocation6 + $0xc0] sm:$0xff]   ;;  %v1950_v3 = vld [vmem:[#allocation2 + $0x24] sm:$0xe]  ;;  %v2024_v45 = vrot.slane %v7481_v62, 5  ;;  %v2030_v55 = vrot.slane %v2028_v5, 4 }
 0x143   : > { %v6092_v57 = vrot.slane %v1950_v3, 9  ;;  %v6095_v3 = vrot.slane %v1953_v44, 9  ;;  %v4458_v62 = vld [vmem:[#allocation2 + $0x1c] sm:$0xf]  ;;  %v7488_v0 = vld [vmem:[#allocation2 + $0x80] sm:$0x1] }
 0x144   : > { %6635 = vmatmul.mubr.bf16.gmra.mrb[8].mxu1 %v6070_v13  ;;  %6847 = vmatmul.mubr.bf16.gmra.mrb[28].mxu0 %v6208_v19  ;;  %v8594_v13 = vld [vmem:[#allocation2 + $0x78] sm:$0xf]  ;;  %v1951_v19 = vld [vmem:[#allocation2 + $0x30] sm:$0xe]  ;;  %v2073_v10 = vrot.slane %v7488_v0, 5  ;;  %v9624_v0 = vcombine.low %v8457_v27, %v8463_v49 }
 0x145   : > { %6638 = vmatprep.mubr.bf16.mxu1 %v6071_v36  ;;  %6667 = vmatpush3.bf16.msra.mxu1 %v7390_v21  ;;  %v2014_v21 = vrot.slane %v8541_v22, 5  ;;  %v6075_v30 = vcombine.low %v8594_v13, %v8596_v6  ;;  %v7394_v36 = vld [vmem:[#allocation2 + $0x30] sm:$0xff]   ;;  %v6076_v22 = vcombine.low %v8359_v48, %v8362_v39  ;;  %v6093_v32 = vrot.slane %v1951_v19, 9 }
 0x146   : > { %6668 = vmatprep.subr.bf16.mxu1 %v7396_v53  ;;  %6866 = vmatprep.mubr.bf16.mxu0 %v7388_v54  ;;  %v2021_v54 = vrot.slane %v8548_v47, 5  ;;  %v8628_v47 = vsel %vm8202_vm14, %v2009_v26, %v2010_v15  ;;  %v4457_v15 = vld [vmem:[#allocation2 + $0x18] sm:$0xf]  ;;  %v8682_v13 = vsel %vm8202_vm14, %v6095_v3, %v2042_v16  ;;  %v4459_v3 = vld [vmem:[#allocation2 + $0x20] sm:$0x1] }
 0x147   : > { %v2016_v40 = vrot.slane %v2014_v21, 4  ;;  %v8637_v33 = vsel %vm8202_vm14, %v6091_v14, %v2014_v21  ;;  %v6094_v14 = vrot.slane %v1952_v42, 9  ;;  %v4506_v42 = vshrl.u32 %v4457_v15, 16 }
 0x148   : > { %v2023_v11 = vrot.slane %v2021_v54, 4  ;;  %v4509_v44 = vshll.u32 %v4457_v15, 16  ;;  %v7485_v15 = vld [vmem:[#allocation2 + $0x5c] sm:$0x1] }
 0x149   : > { %6669 = vmatpush3.bf16.msra.mxu1 %v7396_v53  ;;  %v8610_v53 = vsel %vm8202_vm14, %v6089_v7, %v2000_v61  ;;  %v7480_v61 = vld [vmem:[#allocation2 + $0x20] sm:$0x1]  ;;  %v7483_v7 = vld [vmem:[#allocation2 + $0x44] sm:$0x1] }
 0x14a   : > { %6670 = vmatprep.subr.bf16.mxu1 %v7402_v9  ;;  %v2038_v19 = vrot.slane %v7483_v7, 5  ;;  %v8659_v7 = vrot.slane %v3099_v37, 4  ;;  %v8678_v37 = vsel %vm8202_vm14, %v6094_v14, %v2035_v17  ;;  %v7403_v14 = vld [vmem:[#allocation2 + $0x54] sm:$0xff]  }
 0x14c   : > { %6639 = vmatmul.mubr.bf16.gmra.mrb[12].mxu1 %v6072_v38  ;;  %v2017_v38 = vrot.slane %v7480_v61, 5  ;;  %6867 = vmatmul.mubr.bf16.vlgmr.msra.gmra.mrb[0].mxu0 %v7391_v18  ;;  %v7397_v18 = vld [vmem:[#allocation2 + $0x3c] sm:$0xff]   ;;  %v8646_v61 = vld [vmem:[#allocation2 + $0x54] sm:$0xe]  ;;  %9621 = vst [vmem:[#allocation18_spill] sm:$0xff] %v8659_v7 }
 0x14d   : > { %6642 = vmatprep.mubr.bf16.mxu1 %v6073_v1  ;;  %6671 = vmatpush3.bf16.msra.mxu1 %v7402_v9  ;;  %v7404_v1 = vld [vmem:[#allocation6 + $0x1d0] sm:$0xff]   ;;  %v2044_v9 = vrot.slane %v2042_v16, 4 }
 0x14e   : > { %6672 = vmatprep.subr.bf16.mxu1 %v7408_v52  ;;  %6899 = vmatpush3.bf16.msra.mxu0 %v8402_v34  ;;  %v7482_v34 = vld [vmem:[#allocation2 + $0x38] sm:$0x1]  ;;  %v8644_v21 = vsel %vm8202_vm14, %v2016_v40, %v2017_v38  ;;  %v8653_v40 = vsel %vm8202_vm14, %v6092_v57, %v2021_v54  ;;  %v2049_v38 = vrot.slane %v8577_v35, 5  ;;  %v8670_v35 = vsel %vm8202_vm14, %v6093_v32, %v2028_v5  ;;  %v1955_v32 = vld [vmem:[#allocation2 + $0x60] sm:$0xe] }
 0x14f   : > { %6870 = vmatprep.mubr.bf16.mxu0 %v7394_v36  ;;  %6900 = vmatprep.subr.bf16.mxu0 %v7398_v60  ;;  %v2031_v26 = vrot.slane %v7482_v34, 5  ;;  %v2045_v34 = vrot.slane %v7484_v31, 5  ;;  %v7400_v36 = vld [vmem:[#allocation2 + $0x48] sm:$0xff]   ;;  %v4519_v54 = vshrl.u32 %v4458_v62, 16  ;;  %v7414_v57 = vld [vmem:[#allocation6 + $0x1e0] sm:$0xff]  }
 0x150   : > { %v4461_v31 = vld [vmem:[#allocation2 + $0x28] sm:$0xf]  ;;  %v2051_v16 = vrot.slane %v2049_v38, 4 }
 0x151   : > { %6673 = vmatpush3.bf16.msra.mxu1 %v7408_v52  ;;  %v2037_v52 = vrot.slane %v2035_v17, 4  ;;  %v6096_v17 = vrot.slane %v8646_v61, 9 }
 0x152   : > { %6706 = vmatprep.subr.bf16.mxu1 %v8606_v2  ;;  %6901 = vmatpush3.bf16.msra.mxu0 %v7398_v60  ;;  %v8674_v60 = vsel %vm8202_vm14, %v2030_v55, %v2031_v26  ;;  %v2056_v55 = vrot.slane %v8580_v58, 5  ;;  %v4511_v26 = vrot.slane %v4509_v44, 5  ;;  %v4462_v44 = vld [vmem:[#allocation2 + $0x2c] sm:$0x1] }
 0x153   : > { %6902 = vmatprep.subr.bf16.mxu0 %v7404_v1  ;;  %v8686_v5 = vsel %vm8202_vm14, %v2037_v52, %v2038_v19  ;;  %v4533_v52 = vshll.u32 %v4460_v46, 16  ;;  %v4539_v19 = vshll.u32 %v4461_v31, 16  ;;  %v4549_v6 = vshll.u32 %v4462_v44, 16 }
 0x154   : > { %6643 = vmatmul.mubr.bf16.gmra.mrb[16].mxu1 %v6074_v12  ;;  %v8666_v12 = vsel %vm8202_vm14, %v2023_v11, %v2024_v45  ;;  %6871 = vmatmul.mubr.bf16.gmra.mrb[4].mxu0 %v7397_v18  ;;  %v8690_v45 = vsel %vm8202_vm14, %v2044_v9, %v2045_v34  ;;  %v2052_v11 = vrot.slane %v7485_v15, 5  ;;  %v4508_v18 = vrot.slane %v4506_v42, 4  ;;  %v7406_v15 = vld [vmem:[#allocation2 + $0x60] sm:$0xff]  }
 0x155   : > { %6646 = vmatprep.mubr.bf16.mxu1 %v6075_v30  ;;  %v4515_v30 = vshll.u32 %v4458_v62, 16  ;;  %6874 = vmatprep.mubr.bf16.mxu0 %v7400_v36  ;;  %v4530_v62 = vshrl.u32 %v4460_v46, 16  ;;  %v4543_v9 = vshrl.u32 %v4461_v31, 16  ;;  %v4521_v34 = vrot.slane %v4519_v54, 4  ;;  %v1956_v46 = vld [vmem:[#allocation2 + $0x6c] sm:$0xe] }
 0x156   : > { %6903 = vmatpush3.bf16.msra.mxu0 %v7404_v1  ;;  %v2063_v31 = vrot.slane %v8590_v28, 5  ;;  %v8712_v54 = vsel %vm8202_vm14, %v6096_v17, %v2049_v38  ;;  %v8716_v58 = vsel %vm8202_vm14, %v2051_v16, %v2052_v11  ;;  %v6097_v42 = vrot.slane %v1955_v32, 9  ;;  %v7486_v17 = vld [vmem:[#allocation2 + $0x68] sm:$0x1]  ;;  %v1957_v32 = vld [vmem:[#allocation2 + $0x78] sm:$0xe] }
 0x157   : > { %6904 = vmatprep.subr.bf16.mxu0 %v7410_v56  ;;  %v8698_v1 = vrot.slane %v4515_v30, 5  ;;  %v7418_v30 = vld [vmem:[#allocation6 + $0x1e8] sm:$0xff]   ;;  %9622 = vst [vmem:[#allocation19_spill] sm:$0xff] %v8716_v58  ;;  %v4512_v36 = vor.u32 %v4511_v26, %v4508_v18  ;;  %v4532_v48 = vrot.slane %v4530_v62, 4  ;;  %v4535_v39 = vrot.slane %v4533_v52, 5  ;;  %v7411_v62 = vld [vmem:[#allocation2 + $0x78] sm:$0xff]  }
 0x158   : > { %v8721_v28 = vrot.slane %v4539_v19, 5  ;;  %v2058_v38 = vrot.slane %v2056_v55, 4  ;;  %v2059_v61 = vrot.slane %v7486_v17, 5  ;;  %v4525_v16 = vshll.u32 %v4459_v3, 16  ;;  %v4465_v17 = vld [vmem:[#allocation2 + $0x38] sm:$0x1] }
 0x159   : > { %v4522_v11 = vor.u32 %v4521_v34, %v8698_v1  ;;  %v6098_v18 = vrot.slane %v1956_v46, 9  ;;  %v2065_v26 = vrot.slane %v2063_v31, 4  ;;  %v8729_v52 = vsel %vm8202_vm14, %v6097_v42, %v2056_v55  ;;  %v1958_v58 = vld [vmem:[#allocation2 + $0x84] sm:$0xe] }
 0x15a   : > { %6905 = vmatpush3.bf16.msra.mxu0 %v7410_v56  ;;  %v4463_v56 = vld [vmem:[#allocation2 + $0x30] sm:$0xf]  ;;  %v4513_v34 = vrot.slane %v4512_v36, 4  ;;  %v4536_v46 = vor.u32 %v4535_v39, %v4532_v48  ;;  %v8734_v55 = vsel %vm8202_vm14, %v2058_v38, %v2059_v61  ;;  %v6099_v42 = vrot.slane %v1957_v32, 9 }
 0x15b   : > { %6906 = vmatprep.subr.bf16.mxu0 %v7414_v57  ;;  %v4554_v19 = vshrl.u32 %v4463_v56, 16  ;;  %v4557_v3 = vshll.u32 %v4463_v56, 16  ;;  %v2072_v56 = vrot.slane %v2070_v25, 4  ;;  %v9623_v36 = vcombine.low %v8436_v43, %v8430_v63  ;;  %v7426_v38 = vld [vmem:[#allocation6 + $0x1f8] sm:$0xff]  }
 0x15c   : > { %6647 = vmatmul.mubr.bf16.gmra.mrb[20].mxu1 %v6076_v22  ;;  %v4545_v22 = vrot.slane %v4543_v9, 4  ;;  %6875 = vmatmul.mubr.bf16.gmra.mrb[8].mxu0 %v7403_v14  ;;  %v7409_v9 = vld [vmem:[#allocation2 + $0x6c] sm:$0xff]   ;;  %v8741_v44 = vsel %vm8202_vm14, %v6098_v18, %v2063_v31  ;;  %v8745_v48 = vsel %vm8202_vm14, %v2065_v26, %v2066_v20  ;;  %v4518_v63 = vsel %vm7929_vm11, %v4513_v34, %v8698_v1  ;;  %v4467_v26 = vld [vmem:[#allocation2 + $0x40] sm:$0xf]  ;;  %v8772_v34 = vld [vmem:[#allocation6 + $0x200] sm:$0xff]  }
 0x15d   : > { %6650 = vmatprep.mubr.bf16.mxu1 %v6077_v50  ;;  %v4464_v50 = vld [vmem:[#allocation2 + $0x34] sm:$0xf]  ;;  %6878 = vmatprep.mubr.bf16.mxu0 %v7406_v15  ;;  %v7422_v14 = vld [vmem:[#allocation6 + $0x1f0] sm:$0xff]   ;;  %v4523_v15 = vrot.slane %v4522_v11, 4  ;;  %v4556_v61 = vrot.slane %v4554_v19, 4  ;;  %v4559_v39 = vrot.slane %v4557_v3, 5  ;;  %v8759_v27 = vsel %vm8202_vm14, %v6099_v42, %v2070_v25 }
 0x15e   : > { %6907 = vmatpush3.bf16.msra.mxu0 %v7414_v57  ;;  %v4546_v59 = vor.u32 %v4545_v22, %v8721_v28  ;;  %v4527_v57 = vrot.slane %v4525_v16, 5  ;;  %v4563_v8 = vshll.u32 %v4464_v50, 16  ;;  %v4567_v7 = vshrl.u32 %v4464_v50, 16  ;;  %v4466_v22 = vld [vmem:[#allocation2 + $0x3c] sm:$0xf] }
 0x15f   : > { %6908 = vmatprep.subr.bf16.mxu0 %v7418_v30  ;;  %v4537_v43 = vrot.slane %v4536_v46, 4  ;;  %v4573_v18 = vshll.u32 %v4465_v17, 16  ;;  %v8763_v49 = vsel %vm8202_vm14, %v2072_v56, %v2073_v10  ;;  %v4578_v1 = vshrl.u32 %v4466_v22, 16  ;;  %v7489_v19 = vld [vmem:[#allocation2 + $0x88] sm:$0xf] }
 0x160   : > { %v4547_v31 = vrot.slane %v4546_v59, 4  ;;  %v4528_v11 = vsel %vm7929_vm11, %v4523_v15, %v4527_v57  ;;  %v8755_v16 = vrot.slane %v4563_v8, 5  ;;  %v4569_v32 = vrot.slane %v4567_v7, 4  ;;  %v7415_v59 = vld [vmem:[#allocation2 + $0x90] sm:$0xff]   ;;  %v8781_v57 = vld [vmem:[#allocation2 + $0x4c] sm:$0xf] }
 0x161   : > { %v4581_v20 = vshll.u32 %v4466_v22, 16  ;;  %v4560_v50 = vor.u32 %v4559_v39, %v4556_v61  ;;  %v6100_v7 = vrot.slane %v1958_v58, 9  ;;  %v2077_v3 = vrot.slane %v7489_v19, 5  ;;  %v4472_v42 = vld [vmem:[#allocation2 + $0x54] sm:$0xf] }
 0x162   : > { %6909 = vmatpush3.bf16.msra.mxu0 %v7418_v30  ;;  %v4551_v30 = vrot.slane %v4549_v6, 5  ;;  %v4542_v25 = vsel %vm7929_vm11, %v4537_v43, %v8721_v28  ;;  %v4591_v46 = vshrl.u32 %v4467_v26, 16  ;;  %v8774_v6 = vcombine.low %v4518_v63, %v4528_v11  ;;  %v4469_v28 = vld [vmem:[#allocation2 + $0x48] sm:$0xf] }
 0x163   : > { %6910 = vmatprep.subr.bf16.mxu0 %v7422_v14  ;;  %v4570_v15 = vor.u32 %v4569_v32, %v8755_v16  ;;  %v8783_v56 = vrot.slane %v4573_v18, 5  ;;  %v4580_v39 = vrot.slane %v4578_v1, 4  ;;  %v4583_v22 = vrot.slane %v4581_v20, 5  ;;  %v1959_v20 = vld [vmem:[#allocation2 + $0x90] sm:$0xe] }
 0x164   : > { %6651 = vmatmul.mubr.bf16.gmra.mrb[24].mxu1 %v9623_v36  ;;  %6879 = vmatmul.mubr.bf16.gmra.mrb[12].mxu0 %v7409_v9  ;;  %v7413_v9 = vld [vmem:[#allocation2 + $0x84] sm:$0xff]   ;;  %v4552_v10 = vsel %vm7929_vm11, %v4547_v31, %v4551_v30  ;;  %v7490_v36 = vld [vmem:[#allocation2 + $0x8c] sm:$0x1]  ;;  %v9626_v63 = vcombine.low %v8492_v41, %v8495_v24  ;;  %v8792_v31 = vrot.slane %v4560_v50, 4  ;;  %v8796_v30 = vsel %vm8202_vm14, %v6100_v7, %v2077_v3 }
 0x165   : > { %6654 = vmatprep.mubr.bf16.mxu1 %v9624_v0  ;;  %6882 = vmatprep.mubr.bf16.mxu0 %v7411_v62  ;;  %v4468_v62 = vld [vmem:[#allocation2 + $0x44] sm:$0x1]  ;;  %v2080_v61 = vrot.slane %v7490_v36, 5  ;;  %v8785_v0 = vld [vmem:[#allocation2 + $0x58] sm:$0xf]  ;;  %v8790_v43 = vcombine.low %v4542_v25, %v4552_v10  ;;  %v2079_v11 = vrot.slane %v2077_v3, 4  ;;  %v9627_v32 = vcombine.low %v8610_v53, %v8614_v29 }
 0x166   : > { %6911 = vmatpush3.bf16.msra.mxu0 %v7422_v14  ;;  %v4587_v14 = vshll.u32 %v4467_v26, 16  ;;  %9625 = vst [vmem:[#allocation20_spill] sm:$0xff] %v8785_v0  ;;  %v4593_v41 = vrot.slane %v4591_v46, 4  ;;  %v4602_v24 = vshrl.u32 %v4469_v28, 16  ;;  %v8804_v26 = vrot.slane %v4570_v15, 4  ;;  %v7416_v10 = vld [vmem:[#allocation6 + $0xc8] sm:$0xff]  }
 0x167   : > { %6912 = vmatprep.subr.bf16.mxu0 %v7426_v38  ;;  %v4597_v1 = vshll.u32 %v4468_v62, 16  ;;  %v4611_v50 = vshll.u32 %v8781_v57, 16  ;;  %v4615_v7 = vshrl.u32 %v8781_v57, 16  ;;  %v4584_v19 = vor.u32 %v4583_v22, %v4580_v39  ;;  %v7491_v3 = vld [vmem:[#allocation2 + $0x94] sm:$0xf]  ;;  %v7419_v22 = vld [vmem:[#allocation2 + $0xa8] sm:$0xff]  }
 0x168   : > { %v8802_v18 = vrot.slane %v4587_v14, 5  ;;  %v2084_v53 = vrot.slane %v7491_v3, 5  ;;  %v4626_v29 = vshrl.u32 %v4472_v42, 16  ;;  %v4629_v25 = vshll.u32 %v4472_v42, 16  ;;  %v8816_v46 = vld [vmem:[#allocation2 + $0x50] sm:$0x1] }
 0x169   : > { %v8814_v62 = vsel %vm8202_vm14, %v2079_v11, %v2080_v61  ;;  %v4639_v15 = vshrl.u32 %v8785_v0, 16  ;;  %v4604_v36 = vrot.slane %v4602_v24, 4  ;;  %v8823_v17 = vrot.slane %v4611_v50, 5  ;;  %v8825_v11 = vld [vmem:[#allocation2 + $0x9c] sm:$0xe] }
 0x16a   : > { %6913 = vmatpush3.bf16.msra.mxu0 %v7426_v38  ;;  %v4605_v38 = vshll.u32 %v4469_v28, 16  ;;  %v7417_v28 = vld [vmem:[#allocation2 + $0x9c] sm:$0xff]   ;;  %v4594_v42 = vor.u32 %v4593_v41, %v8802_v18  ;;  %v4617_v61 = vrot.slane %v4615_v7, 4  ;;  %v8827_v58 = vrot.slane %v4584_v19, 4 }
 0x16b   : > { %6946 = vmatprep.subr.bf16.mxu0 %v8772_v34  ;;  %v2086_v8 = vrot.slane %v2084_v53, 4  ;;  %v8829_v14 = vld [vmem:[#allocation2 + $0x5c] sm:$0x1]  ;;  %v4631_v41 = vrot.slane %v4629_v25, 5  ;;  %v9629_v24 = vcombine.low %v8624_v23, %v8628_v47  ;;  %v4641_v7 = vrot.slane %v4639_v15, 4  ;;  %v7420_v25 = vld [vmem:[#allocation6 + $0xd0] sm:$0xff]  }
 0x16c   : > { %6655 = vmatmul.mubr.bf16.gmra.mrb[28].mxu1 %v9626_v63  ;;  %6883 = vmatmul.mubr.bf16.gmra.mrb[16].mxu0 %v7413_v9  ;;  %v4635_v9 = vshll.u32 %v8785_v0, 16  ;;  %v4607_v39 = vrot.slane %v4605_v38, 5  ;;  %v8821_v63 = vrot.slane %v4597_v1, 5  ;;  %9628 = vst [vmem:[#allocation21_spill] sm:$0xff] %v8829_v14  ;;  %v4628_v0 = vrot.slane %v4626_v29, 4 }
 0x16d   : > { %6674 = vmatprep.mubr.bf16.mxu1 %v9627_v32  ;;  %6886 = vmatprep.mubr.bf16.mxu0 %v7415_v59  ;;  %v6101_v59 = vrot.slane %v1959_v20, 9  ;;  %v7492_v32 = vld [vmem:[#allocation2 + $0x98] sm:$0x1]  ;;  %v4475_v20 = vld [vmem:[#allocation2 + $0x60] sm:$0xf]  ;;  %v4576_v38 = vsel %vm7929_vm11, %v8804_v26, %v8783_v56  ;;  %v9630_v19 = vcombine.low %v8637_v33, %v8644_v21  ;;  %v4595_v29 = vrot.slane %v4594_v42, 4 }
 0x16e   : > { %v2087_v3 = vrot.slane %v7492_v32, 5  ;;  %v8840_v50 = vrot.slane %v4635_v9, 5  ;;  %v4608_v47 = vor.u32 %v4607_v39, %v4604_v36  ;;  %v4621_v56 = vshll.u32 %v8816_v46, 16  ;;  %v8851_v26 = vld [vmem:[#allocation2 + $0x64] sm:$0xf] }
 0x16f   : > { %v8848_v23 = vsel %vm8202_vm14, %v6101_v59, %v2084_v53  ;;  %9631 = vst [vmem:[#allocation22_spill] sm:$0xff] %v8851_v26  ;;  %v4618_v9 = vor.u32 %v4617_v61, %v8823_v17  ;;  %v7493_v15 = vld [vmem:[#allocation2 + $0xa0] sm:$0xf]  ;;  %v4650_v32 = vshrl.u32 %v4475_v20, 16  ;;  %v4590_v33 = vsel %vm7929_vm11, %v8827_v58, %v8802_v18  ;;  %v8865_v39 = vld [vmem:[#allocation2 + $0xa8] sm:$0xe] }
 0x170   : > { %v8860_v21 = vsel %vm8202_vm14, %v2086_v8, %v2087_v3  ;;  %v6102_v53 = vrot.slane %v8825_v11, 9  ;;  %v4632_v42 = vor.u32 %v4631_v41, %v4628_v0  ;;  %v4642_v59 = vor.u32 %v4641_v7, %v8840_v50  ;;  %v7424_v58 = vld [vmem:[#allocation6 + $0xd8] sm:$0xff]   ;;  %v7494_v0 = vld [vmem:[#allocation2 + $0xa4] sm:$0x1] }
 0x171   : > { %v4645_v36 = vshll.u32 %v8829_v14, 16  ;;  %v4663_v61 = vshrl.u32 %v8851_v26, 16  ;;  %v4600_v8 = vsel %vm7929_vm11, %v4595_v29, %v8821_v63  ;;  %v4609_v18 = vrot.slane %v4608_v47, 4  ;;  %v7495_v47 = vld [vmem:[#allocation2 + $0xac] sm:$0xf] }
 0x172   : > { %v4623_v3 = vrot.slane %v4621_v56, 5  ;;  %v4619_v11 = vrot.slane %v4618_v9, 4  ;;  %v4633_v29 = vrot.slane %v4632_v42, 4  ;;  %v2098_v56 = vrot.slane %v7495_v47, 5  ;;  %v4484_v47 = vld [vmem:[#allocation2 + $0x84] sm:$0xf] }
 0x173   : > { %v9633_v9 = vcombine.low %v8653_v40, %v8666_v12  ;;  %v4665_v14 = vrot.slane %v4663_v61, 4  ;;  %v4614_v42 = vsel %vm7929_vm11, %v4609_v18, %v8823_v17  ;;  %v6103_v12 = vrot.slane %v8865_v39, 9  ;;  %v8909_v17 = vld [vmem:[#allocation2 + $0x70] sm:$0xf]  ;;  %v7429_v18 = vld [vmem:[#allocation6 + $0xe8] sm:$0xff]  }
 0x174   : > { %6675 = vmatmul.mubr.bf16.vlgmr.msra.gmra.mrb[0].mxu1 %v9629_v24  ;;  %v4653_v24 = vshll.u32 %v4475_v20, 16  ;;  %6887 = vmatmul.mubr.bf16.gmra.mrb[20].mxu0 %v7417_v28  ;;  %v4659_v28 = vshll.u32 %v8851_v26, 16  ;;  %v4652_v20 = vrot.slane %v4650_v32, 4  ;;  %v4643_v32 = vrot.slane %v4642_v59, 4  ;;  %v4478_v59 = vld [vmem:[#allocation2 + $0x6c] sm:$0xf] }
 0x175   : > { %6707 = vmatpush3.bf16.msra.mxu1 %v8606_v2  ;;  %6678 = vmatprep.mubr.bf16.mxu1 %v9630_v19  ;;  %v2091_v2 = vrot.slane %v7493_v15, 5  ;;  %v7421_v19 = vld [vmem:[#allocation2 + $0xb4] sm:$0xff]   ;;  %v7423_v15 = vld [vmem:[#allocation2 + $0xc0] sm:$0xff]   ;;  %9637 = vst [vmem:[#allocation25_spill] sm:$0xff] %v8909_v17  ;;  %v7497_v39 = vld [vmem:[#allocation2 + $0xb0] sm:$0x1] }
 0x176   : > { %6708 = vmatprep.subr.bf16.mxu1 %v7416_v10  ;;  %6890 = vmatprep.mubr.bf16.mxu0 %v7419_v22  ;;  %v2094_v22 = vrot.slane %v7494_v0, 5  ;;  %v4655_v7 = vrot.slane %v4653_v24, 5  ;;  %v8881_v0 = vld [vmem:[#allocation2 + $0x68] sm:$0x1]  ;;  %v4647_v24 = vrot.slane %v4645_v36, 5  ;;  %v8886_v26 = vrot.slane %v4659_v28, 5 }
 0x177   : > { %v2093_v41 = vrot.slane %v2091_v2, 4  ;;  %v8900_v40 = vsel %vm8202_vm14, %v6102_v53, %v2091_v2  ;;  %v7427_v36 = vld [vmem:[#allocation6 + $0xe0] sm:$0xff]   ;;  %v4638_v2 = vsel %vm7929_vm11, %v4633_v29, %v8840_v50  ;;  %v2100_v53 = vrot.slane %v2098_v56, 4 }
 0x178   : > { %9635 = vst [vmem:[#allocation23_spill] sm:$0xff] %v8900_v40  ;;  %v2101_v61 = vrot.slane %v7497_v39, 5  ;;  %v9642_v39 = vcombine.low %v8682_v13, %v8690_v45 }
 0x179   : > { %6709 = vmatpush3.bf16.msra.mxu1 %v7416_v10  ;;  %v9632_v10 = vsel %vm7929_vm11, %v8792_v31, %v8755_v16  ;;  %v8888_v16 = vld [vmem:[#allocation2 + $0xb4] sm:$0xe]  ;;  %v9634_v31 = vcombine.low %v8670_v35, %v8674_v60  ;;  %v4624_v35 = vsel %vm7929_vm11, %v4619_v11, %v4623_v3  ;;  %v8907_v60 = vsel %vm8202_vm14, %v2093_v41, %v2094_v22 }
 0x17a   : > { %6710 = vmatprep.subr.bf16.mxu1 %v7420_v25  ;;  %v8877_v1 = vcombine.low %v9632_v10, %v4576_v38  ;;  %v8893_v38 = vcombine.low %v4590_v33, %v4600_v8  ;;  %9636 = vst [vmem:[#allocation24_spill] sm:$0xff] %v8907_v60  ;;  %v7496_v33 = vld [vmem:[#allocation2 + $0xb8] sm:$0xf]  ;;  %v4669_v8 = vshll.u32 %v8881_v0, 16  ;;  %v4648_v3 = vsel %vm7929_vm11, %v4643_v32, %v4647_v24  ;;  %v7498_v32 = vld [vmem:[#allocation2 + $0xbc] sm:$0x1] }
 0x17b   : > { %v2105_v28 = vrot.slane %v7496_v33, 5  ;;  %v4666_v22 = vor.u32 %v4665_v14, %v8886_v26  ;;  %v4674_v11 = vshrl.u32 %v4478_v59, 16  ;;  %v4677_v41 = vshll.u32 %v4478_v59, 16  ;;  %v9002_v60 = vld [vmem:[#allocation2 + $0x8c] sm:$0x1] }
 0x17c   : > { %6679 = vmatmul.mubr.bf16.gmra.mrb[4].mxu1 %v9633_v9  ;;  %6891 = vmatmul.mubr.bf16.gmra.mrb[24].mxu0 %v7421_v19  ;;  %v7425_v19 = vld [vmem:[#allocation2 + $0xcc] sm:$0xff]   ;;  %v8920_v50 = vcombine.low %v4614_v42, %v4624_v35  ;;  %v6104_v29 = vrot.slane %v8888_v16, 9  ;;  %v2108_v24 = vrot.slane %v7498_v32, 5  ;;  %v8936_v42 = vsel %vm8202_vm14, %v2100_v53, %v2101_v61 }
 0x17d   : > { %6682 = vmatprep.mubr.bf16.mxu1 %v9634_v31  ;;  %6711 = vmatpush3.bf16.msra.mxu1 %v7420_v25  ;;  %v4656_v25 = vor.u32 %v4655_v7, %v4652_v20  ;;  %v4481_v20 = vld [vmem:[#allocation2 + $0x78] sm:$0xf]  ;;  %v8918_v7 = vld [vmem:[#allocation2 + $0x7c] sm:$0xf]  ;;  %v2107_v9 = vrot.slane %v2105_v28, 4  ;;  %v8932_v31 = vcombine.low %v4638_v2, %v4648_v3  ;;  %v8938_v59 = vrot.slane %v4669_v8, 5 }
 0x17e   : > { %6712 = vmatprep.subr.bf16.mxu1 %v7424_v58  ;;  %6894 = vmatprep.mubr.bf16.mxu0 %v7423_v15  ;;  %9638 = vst [vmem:[#allocation26_spill] sm:$0xff] %v8918_v7  ;;  %v8926_v15 = vsel %vm8202_vm14, %v6103_v12, %v2098_v56  ;;  %v8940_v56 = vld [vmem:[#allocation2 + $0x74] sm:$0x1]  ;;  %v4687_v16 = vshrl.u32 %v8909_v17, 16  ;;  %v8943_v12 = vld [vmem:[#allocation2 + $0x88] sm:$0xf]  ;;  %v9641_v35 = vcombine.low %v8678_v37, %v8686_v5 }
 0x17f   : > { %v8929_v14 = vrot.slane %v4656_v25, 4  ;;  %9639 = vst [vmem:[#allocation27_spill] sm:$0xff] %v8940_v56  ;;  %9640 = vst [vmem:[#allocation28_spill] sm:$0xff] %v8943_v12  ;;  %v8948_v25 = vrot.slane %v4666_v22, 4  ;;  %v8950_v33 = vrot.slane %v4674_v11, 4  ;;  %v8952_v2 = vrot.slane %v4677_v41, 5 }
 0x180   : > { %v4698_v53 = vshrl.u32 %v4481_v20, 16  ;;  %v4701_v61 = vshll.u32 %v4481_v20, 16  ;;  %v4707_v8 = vshll.u32 %v8918_v7, 16  ;;  %v4711_v3 = vshrl.u32 %v8918_v7, 16  ;;  %v7431_v37 = vld [vmem:[#allocation6 + $0xf0] sm:$0xff]  }
 0x181   : > { %6713 = vmatpush3.bf16.msra.mxu1 %v7424_v58  ;;  %v4683_v58 = vshll.u32 %v8909_v17, 16  ;;  %v4722_v32 = vshrl.u32 %v4484_v47, 16  ;;  %v8965_v22 = vsel %vm8202_vm14, %v6104_v29, %v2105_v28  ;;  %v8969_v13 = vsel %vm8202_vm14, %v2107_v9, %v2108_v24  ;;  %v7433_v29 = vld [vmem:[#allocation6 + $0xf8] sm:$0xff]   ;;  %v4490_v24 = vld [vmem:[#allocation2 + $0x9c] sm:$0xf] }
 0x182   : > { %6714 = vmatprep.subr.bf16.mxu1 %v7427_v36  ;;  %v8973_v11 = vrot.slane %v4687_v16, 4  ;;  %v4725_v41 = vshll.u32 %v4484_v47, 16  ;;  %v4731_v20 = vshll.u32 %v8943_v12, 16  ;;  %v4693_v9 = vshll.u32 %v8940_v56, 16  ;;  %v8991_v5 = vld [vmem:[#allocation2 + $0x80] sm:$0x1] }
 0x183   : > { %v8971_v45 = vrot.slane %v4683_v58, 5  ;;  %v4700_v47 = vrot.slane %v4698_v53, 4  ;;  %v4703_v58 = vrot.slane %v4701_v61, 5  ;;  %v8987_v16 = vrot.slane %v4707_v8, 5  ;;  %v9645_v8 = vld [vmem:[#allocation19_spill] sm:$0xff] }
 0x184   : > { %6683 = vmatmul.mubr.bf16.gmra.mrb[8].mxu1 %v9641_v35  ;;  %6895 = vmatmul.mubr.bf16.gmra.mrb[28].mxu0 %v7425_v19  ;;  %v4735_v35 = vshrl.u32 %v8943_v12, 16  ;;  %v4680_v19 = vor.u32 %v8952_v2, %v8950_v33  ;;  %v4713_v10 = vrot.slane %v4711_v3, 4  ;;  %v4724_v63 = vrot.slane %v4722_v32, 4  ;;  %9647 = vst [vmem:[#allocation19_spill] sm:$0xff] %v9002_v60 }
 0x185   : > { %6686 = vmatprep.mubr.bf16.mxu1 %v9642_v39  ;;  %6715 = vmatpush3.bf16.msra.mxu1 %v7427_v36  ;;  %v4487_v36 = vld [vmem:[#allocation2 + $0x90] sm:$0xf]  ;;  %v8977_v39 = vld [vmem:[#allocation2 + $0x94] sm:$0xf]  ;;  %v4727_v2 = vrot.slane %v4725_v41, 5  ;;  %v8995_v53 = vrot.slane %v4731_v20, 5  ;;  %v9646_v3 = vcombine.low %v8712_v54, %v9645_v8  ;;  %v4690_v32 = vor.u32 %v8973_v11, %v8971_v45 }
 0x186   : > { %6716 = vmatprep.subr.bf16.mxu1 %v7429_v18  ;;  %9643 = vst [vmem:[#allocation29_spill] sm:$0xff] %v8977_v39  ;;  %6914 = vmatprep.mubr.bf16.mxu0 %v8774_v6  ;;  %v8989_v6 = vld [vmem:[#allocation2 + $0xa0] sm:$0xf]  ;;  %v4746_v28 = vshrl.u32 %v4487_v36, 16  ;;  %v4749_v12 = vshll.u32 %v4487_v36, 16  ;;  %v4755_v7 = vshll.u32 %v8977_v39, 16  ;;  %v9648_v41 = vcombine.low %v8729_v52, %v8734_v55 }
 0x187   : > { %9644 = vst [vmem:[#allocation30_spill] sm:$0xff] %v8989_v6  ;;  %v4759_v33 = vshrl.u32 %v8977_v39, 16  ;;  %v4770_v61 = vshrl.u32 %v4490_v24, 16  ;;  %v4773_v40 = vshll.u32 %v4490_v24, 16  ;;  %v4779_v36 = vshll.u32 %v8989_v6, 16  ;;  %v7430_v20 = vld [vmem:[#allocation6 + $0x208] sm:$0xff]  }
 0x188   : > { %v4783_v56 = vshrl.u32 %v8989_v6, 16  ;;  %v4704_v54 = vor.u32 %v4703_v58, %v4700_v47  ;;  %v4714_v8 = vor.u32 %v4713_v10, %v8987_v16  ;;  %v4717_v11 = vshll.u32 %v8991_v5, 16  ;;  %v7432_v52 = vld [vmem:[#allocation6 + $0x210] sm:$0xff]   ;;  %v9018_v47 = vld [vmem:[#allocation2 + $0x98] sm:$0x1] }
 0x189   : > { %6717 = vmatpush3.bf16.msra.mxu1 %v7429_v18  ;;  %v4737_v18 = vrot.slane %v4735_v35, 4  ;;  %v9009_v35 = vrot.slane %v4693_v9, 5  ;;  %v4748_v24 = vrot.slane %v4746_v28, 4  ;;  %v4751_v39 = vrot.slane %v4749_v12, 5  ;;  %v4493_v58 = vld [vmem:[#allocation2 + $0xa8] sm:$0xf] }
 0x18a   : > { %6718 = vmatprep.subr.bf16.mxu1 %v7431_v37  ;;  %v9013_v17 = vrot.slane %v4755_v7, 5  ;;  %v4761_v6 = vrot.slane %v4759_v33, 4  ;;  %v4728_v55 = vor.u32 %v4727_v2, %v4724_v63  ;;  %v4741_v9 = vshll.u32 %v9002_v60, 16  ;;  %v9026_v60 = vld [vmem:[#allocation2 + $0xa4] sm:$0x1] }
 0x18b   : > { %v4772_v10 = vrot.slane %v4770_v61, 4  ;;  %v4775_v28 = vrot.slane %v4773_v40, 5  ;;  %v9022_v12 = vrot.slane %v4779_v36, 5  ;;  %v4785_v7 = vrot.slane %v4783_v56, 4  ;;  %v9028_v61 = vld [vmem:[#allocation6 + $0x100] sm:$0xff]  }
 0x18c   : > { %6687 = vmatmul.mubr.bf16.gmra.mrb[12].mxu1 %v9646_v3  ;;  %v333_v3 = vld [vmem:[#allocation2 + $0xd4] sm:$0x1]  ;;  %6915 = vmatmul.mubr.bf16.vlgmr.msra.gmra.mrb[0].mxu0 %v8790_v43  ;;  %v4681_v63 = vrot.slane %v4680_v19, 4  ;;  %v4691_v2 = vrot.slane %v4690_v32, 4  ;;  %v4762_v40 = vor.u32 %v4761_v6, %v9013_v17  ;;  %v4765_v56 = vshll.u32 %v9018_v47, 16 }
 0x18d   : > { %6690 = vmatprep.mubr.bf16.mxu1 %v9648_v41  ;;  %6719 = vmatpush3.bf16.msra.mxu1 %v7431_v37  ;;  %v4738_v37 = vor.u32 %v4737_v18, %v8995_v53  ;;  %v334_v43 = vsel %vm7885_vm4, 0, %v333_v3  ;;  %v4705_v18 = vrot.slane %v4704_v54, 4  ;;  %v4719_v41 = vrot.slane %v4717_v11, 5  ;;  %v9033_v36 = vld [vmem:[#allocation2 + $0xac] sm:$0xf] }
 0x18e   : > { %6720 = vmatprep.subr.bf16.mxu1 %v7433_v29  ;;  %6947 = vmatpush3.bf16.msra.mxu0 %v8772_v34  ;;  %335 = vst [vmem:[#allocation2 + $0xd4] sm:$0x1] %v334_v43  ;;  %v4715_v34 = vrot.slane %v4714_v8, 4  ;;  %v4729_v19 = vrot.slane %v4728_v55, 4  ;;  %v4743_v32 = vrot.slane %v4741_v9, 5  ;;  %v4797_v54 = vshll.u32 %v4493_v58, 16 }
 0x18f   : > { %6918 = vmatprep.mubr.bf16.mxu0 %v8877_v1  ;;  %6948 = vmatprep.subr.bf16.mxu0 %v7430_v20  ;;  %v4752_v1 = vor.u32 %v4751_v39, %v4748_v24  ;;  %v9650_v11 = vcombine.low %v8741_v44, %v8745_v48  ;;  %v4739_v8 = vrot.slane %v4738_v37, 4  ;;  %v4776_v3 = vor.u32 %v4775_v28, %v4772_v10  ;;  %v7434_v48 = vld [vmem:[#allocation6 + $0x218] sm:$0xff]  }
 0x190   : > { %v4786_v33 = vor.u32 %v4785_v7, %v9022_v12  ;;  %v4789_v39 = vshll.u32 %v9026_v60, 16  ;;  %v9651_v6 = vcombine.low %v8759_v27, %v8763_v49  ;;  %v4686_v24 = vsel %vm7929_vm11, %v4681_v63, %v8971_v45  ;;  %v9060_v10 = vld [vmem:[#allocation2 + $0xb0] sm:$0x1] }
 0x191   : > { %6721 = vmatpush3.bf16.msra.mxu1 %v7433_v29  ;;  %v4794_v29 = vshrl.u32 %v4493_v58, 16  ;;  %v4696_v44 = vsel %vm7929_vm11, %v4691_v2, %v9009_v35  ;;  %v4807_v55 = vshrl.u32 %v9033_v36, 16  ;;  %v4710_v37 = vsel %vm7929_vm11, %v4705_v18, %v8987_v16  ;;  %v7437_v58 = vld [vmem:[#allocation6 + $0x220] sm:$0xff]  }
 0x192   : > { %6994 = vmatprep.subr.bf16.mxu1 %v9028_v61  ;;  %6949 = vmatpush3.bf16.msra.mxu0 %v7430_v20  ;;  %v4803_v20 = vshll.u32 %v9033_v36, 16  ;;  %v4753_v27 = vrot.slane %v4752_v1, 4  ;;  %v4763_v49 = vrot.slane %v4762_v40, 4  ;;  %v4767_v9 = vrot.slane %v4765_v56, 5 }
 0x193   : > { %6950 = vmatprep.subr.bf16.mxu0 %v7432_v52  ;;  %v4720_v45 = vsel %vm7929_vm11, %v4715_v34, %v4719_v41  ;;  %v4734_v35 = vsel %vm7929_vm11, %v4729_v19, %v8995_v53  ;;  %v4796_v28 = vrot.slane %v4794_v29, 4  ;;  %v4799_v7 = vrot.slane %v4797_v54, 5  ;;  %v4496_v34 = vld [vmem:[#allocation2 + $0xb4] sm:$0xf] }
 0x194   : > { %6691 = vmatmul.mubr.bf16.gmra.mrb[16].mxu1 %v9650_v11  ;;  %6919 = vmatmul.mubr.bf16.gmra.mrb[4].mxu0 %v8893_v38  ;;  %v4744_v16 = vsel %vm7929_vm11, %v4739_v8, %v4743_v32  ;;  %v4777_v43 = vrot.slane %v4776_v3, 4  ;;  %v4787_v38 = vrot.slane %v4786_v33, 4  ;;  %v4791_v63 = vrot.slane %v4789_v39, 5  ;;  %v9093_v11 = vld [vmem:[#allocation2 + $0xb8] sm:$0xf] }
 0x195   : > { %6694 = vmatprep.mubr.bf16.mxu1 %v9651_v6  ;;  %6922 = vmatprep.mubr.bf16.mxu0 %v8920_v50  ;;  %v6119_v2 = vcombine.low %v8926_v15, %v8936_v42  ;;  %v6120_v53 = vcombine.low %v8965_v22, %v8969_v13  ;;  %v9069_v18 = vrot.slane %v4803_v20, 5  ;;  %v4809_v41 = vrot.slane %v4807_v55, 4  ;;  %v5215_v50 = vld [vmem:[#allocation2 + $0x48] sm:$0xe] }
 0x196   : > { %6951 = vmatpush3.bf16.msra.mxu0 %v7432_v52  ;;  %v9652_v52 = vsel %vm7929_vm11, %v8948_v25, %v8938_v59  ;;  %v9653_v1 = vsel %vm7929_vm11, %v8929_v14, %v8886_v26  ;;  %v4758_v56 = vsel %vm7929_vm11, %v4753_v27, %v9013_v17  ;;  %v4768_v19 = vsel %vm7929_vm11, %v4763_v49, %v4767_v9  ;;  %v5216_v26 = vld [vmem:[#allocation2 + $0x54] sm:$0xe]  ;;  %v5218_v27 = vld [vmem:[#allocation2 + $0x6c] sm:$0xe] }
 0x197   : > { %6952 = vmatprep.subr.bf16.mxu0 %v7434_v48  ;;  %v6247_v40 = vcombine.low %v9653_v1, %v9652_v52  ;;  %v4813_v32 = vshll.u32 %v9060_v10, 16  ;;  %v9087_v29 = vcombine.low %v4686_v24, %v4696_v44  ;;  %v9089_v54 = vcombine.low %v4710_v37, %v4720_v45  ;;  %v7440_v24 = vld [vmem:[#allocation6 + $0x228] sm:$0xff]   ;;  %v9659_v52 = vld [vmem:[#allocation25_spill] sm:$0xff] }
 0x198   : > { %v9091_v59 = vcombine.low %v4734_v35, %v4744_v16  ;;  %v4800_v25 = vor.u32 %v4799_v7, %v4796_v28  ;;  %v9654_v14 = vcombine.low %v8796_v30, %v8814_v62  ;;  %v4782_v17 = vsel %vm7929_vm11, %v4777_v43, %v9022_v12  ;;  %v9656_v45 = vld [vmem:[#allocation20_spill] sm:$0xff]  ;;  %v9658_v43 = vld [vmem:[#allocation22_spill] sm:$0xff] }
 0x199   : > { %v4792_v8 = vsel %vm7929_vm11, %v4787_v38, %v4791_v63  ;;  %v4818_v3 = vshrl.u32 %v4496_v34, 16  ;;  %v6269_v33 = vrot.slane %v5215_v50, 9  ;;  %v9655_v39 = vcombine.low %v8848_v23, %v8860_v21 }
 0x19a   : > { %6953 = vmatpush3.bf16.msra.mxu0 %v7434_v48  ;;  %v9106_v6 = vcombine.low %v4758_v56, %v4768_v19  ;;  %v4810_v30 = vor.u32 %v4809_v41, %v9069_v18  ;;  %v4821_v62 = vshll.u32 %v4496_v34, 16  ;;  %v5305_v44 = vrot.slane %v8781_v57, 5  ;;  %v5217_v48 = vld [vmem:[#allocation2 + $0x60] sm:$0xe] }
 0x19b   : > { %6954 = vmatprep.subr.bf16.mxu0 %v7437_v58  ;;  %v9110_v12 = vrot.slane %v4813_v32, 5  ;;  %v4827_v20 = vshll.u32 %v9093_v11, 16  ;;  %v5308_v55 = vrot.slane %v8816_v46, 5  ;;  %v6270_v37 = vrot.slane %v5216_v26, 9  ;;  %v9657_v46 = vld [vmem:[#allocation21_spill] sm:$0xff]  ;;  %v9661_v26 = vld [vmem:[#allocation23_spill] sm:$0xff] }
 0x19c   : > { %6695 = vmatmul.mubr.bf16.gmra.mrb[20].mxu1 %v9654_v14  ;;  %6923 = vmatmul.mubr.bf16.gmra.mrb[8].mxu0 %v8932_v31  ;;  %v9115_v23 = vcombine.low %v4782_v17, %v4792_v8  ;;  %v9117_v21 = vrot.slane %v4800_v25, 4  ;;  %v9121_v49 = vsel %vm8202_vm14, %v6269_v33, %v5305_v44  ;;  %v5307_v57 = vrot.slane %v5305_v44, 4  ;;  %v7443_v31 = vld [vmem:[#allocation6 + $0x230] sm:$0xff]   ;;  %v4499_v56 = vld [vmem:[#allocation2 + $0xc0] sm:$0xf] }
 0x19d   : > { %6698 = vmatprep.mubr.bf16.mxu1 %v9655_v39  ;;  %6926 = vmatprep.mubr.bf16.mxu0 %v6247_v40  ;;  %v9123_v9 = vrot.slane %v4818_v3, 4  ;;  %v5312_v35 = vrot.slane %v9656_v45, 5  ;;  %v5315_v28 = vrot.slane %v9657_v46, 5  ;;  %v6271_v7 = vrot.slane %v5217_v48, 9  ;;  %v9662_v14 = vld [vmem:[#allocation24_spill] sm:$0xff] }
 0x19e   : > { %6955 = vmatpush3.bf16.msra.mxu0 %v7437_v58  ;;  %v9129_v16 = vsel %vm8202_vm14, %v5307_v57, %v5308_v55  ;;  %v5319_v38 = vrot.slane %v9658_v43, 5  ;;  %v5322_v63 = vrot.slane %v8881_v0, 5  ;;  %v6272_v41 = vrot.slane %v5218_v27, 9  ;;  %v9660_v0 = vld [vmem:[#allocation27_spill] sm:$0xff]  ;;  %v5219_v44 = vld [vmem:[#allocation2 + $0x78] sm:$0xe] }
 0x19f   : > { %6956 = vmatprep.subr.bf16.mxu0 %v7440_v24  ;;  %v6285_v58 = vcombine.low %v9121_v49, %v9129_v16  ;;  %v9137_v34 = vsel %vm8202_vm14, %v6270_v37, %v5312_v35  ;;  %v5314_v50 = vrot.slane %v5312_v35, 4  ;;  %v5326_v1 = vrot.slane %v9659_v52, 5  ;;  %v9152_v3 = vld [vmem:[#allocation2 + $0xbc] sm:$0x1]  ;;  %v7446_v55 = vld [vmem:[#allocation6 + $0x238] sm:$0xff]   ;;  %v7452_v49 = vld [vmem:[#allocation2 + $0xa8] sm:$0xff]  }
 0x1a0   : > { %v9140_v40 = vrot.slane %v4821_v62, 5  ;;  %v9144_v19 = vsel %vm8202_vm14, %v6271_v7, %v5319_v38  ;;  %v5321_v32 = vrot.slane %v5319_v38, 4  ;;  %v5329_v25 = vrot.slane %v9660_v0, 5  ;;  %v9664_v38 = vld [vmem:[#allocation26_spill] sm:$0xff] }
 0x1a1   : > { %v9663_v17 = vcombine.low %v9661_v26, %v9662_v14  ;;  %v9150_v8 = vrot.slane %v4810_v30, 4  ;;  %v9156_v33 = vsel %vm8202_vm14, %v5314_v50, %v5315_v28  ;;  %v9160_v39 = vsel %vm8202_vm14, %v6272_v41, %v5326_v1  ;;  %v9168_v30 = vld [vmem:[#allocation2 + $0xc4] sm:$0xf]  ;;  %v7435_v50 = vld [vmem:[#allocation2 + $0xc] sm:$0xff]  }
 0x1a2   : > { %6957 = vmatpush3.bf16.msra.mxu0 %v7440_v24  ;;  %v5328_v62 = vrot.slane %v5326_v1, 4  ;;  %v9165_v48 = vrot.slane %v4827_v20, 5  ;;  %v4831_v24 = vshrl.u32 %v9093_v11, 16  ;;  %v6286_v37 = vcombine.low %v9137_v34, %v9156_v33  ;;  %v5220_v41 = vld [vmem:[#allocation2 + $0x84] sm:$0xe]  ;;  %v9665_v1 = vld [vmem:[#allocation17_spill] sm:$0xff] }
 0x1a3   : > { %6958 = vmatprep.subr.bf16.mxu0 %v7443_v31  ;;  %v9174_v27 = vsel %vm8202_vm14, %v5321_v32, %v5322_v63  ;;  %v4842_v57 = vshrl.u32 %v4499_v56, 16  ;;  %v4845_v45 = vshll.u32 %v4499_v56, 16  ;;  %v4806_v20 = vsel %vm7929_vm11, %v9117_v21, %v9069_v18  ;;  %v9666_v56 = vld [vmem:[#allocation18_spill] sm:$0xff] }
 0x1a4   : > { %6699 = vmatmul.mubr.bf16.gmra.mrb[24].mxu1 %v9663_v17  ;;  %v6287_v15 = vcombine.low %v9144_v19, %v9174_v27  ;;  %v9180_v42 = vsel %vm8202_vm14, %v5328_v62, %v5329_v25  ;;  %6927 = vmatmul.mubr.bf16.gmra.mrb[12].mxu0 %v9087_v29  ;;  %v4837_v35 = vshll.u32 %v9152_v3, 16  ;;  %v6273_v28 = vrot.slane %v5219_v44, 9  ;;  %v9667_v17 = vld [vmem:[#allocation28_spill] sm:$0xff] }
 0x1a5   : > { %6702 = vmatprep.mubr.bf16.mxu1 %v6119_v2  ;;  %v2845_v2 = vld [vmem:[#allocation2 + $0x78] sm:$0xf]  ;;  %v6288_v46 = vcombine.low %v9160_v39, %v9180_v42  ;;  %6930 = vmatprep.mubr.bf16.mxu0 %v9089_v54  ;;  %v4851_v7 = vshll.u32 %v9168_v30, 16  ;;  %v4855_v43 = vshrl.u32 %v9168_v30, 16  ;;  %v5333_v29 = vrot.slane %v9664_v38, 5 }
 0x1a6   : > { %6959 = vmatpush3.bf16.msra.mxu0 %v7443_v31  ;;  %v5336_v63 = vrot.slane %v8991_v5, 5  ;;  %v4833_v18 = vrot.slane %v4831_v24, 4  ;;  %v3083_v21 = vshrl.u32 %v2845_v2, 16  ;;  %v3086_v52 = vshll.u32 %v2845_v2, 16  ;;  %v4502_v2 = vld [vmem:[#allocation2 + $0xcc] sm:$0xf] }
 0x1a7   : > { %6960 = vmatprep.subr.bf16.mxu0 %v7446_v55  ;;  %v3105_v54 = vsel %vm7929_vm11, %v9666_v56, %v9665_v1  ;;  %v4844_v31 = vrot.slane %v4842_v57, 4  ;;  %v4847_v32 = vrot.slane %v4845_v45, 5  ;;  %v9201_v0 = vsel %vm8202_vm14, %v6273_v28, %v5333_v29  ;;  %v9668_v45 = vld [vmem:[#allocation19_spill] sm:$0xff]  ;;  %v9214_v38 = vld [vmem:[#allocation2 + $0xc8] sm:$0x1] }
 0x1a8   : > { %v5335_v25 = vrot.slane %v5333_v29, 4  ;;  %v3085_v26 = vrot.slane %v3083_v21, 4  ;;  %v3088_v5 = vrot.slane %v3086_v52, 5  ;;  %v6274_v14 = vrot.slane %v5220_v41, 9  ;;  %v9216_v29 = vld [vmem:[#allocation2 + $0xd0] sm:$0xf] }
 0x1a9   : > { %v5340_v62 = vrot.slane %v9667_v17, 5  ;;  %v9207_v44 = vrot.slane %v4851_v7, 5  ;;  %v4857_v24 = vrot.slane %v4855_v43, 4  ;;  %v5343_v28 = vrot.slane %v9668_v45, 5 }
 0x1aa   : > { %6961 = vmatpush3.bf16.msra.mxu0 %v7446_v55  ;;  %v9211_v57 = vsel %vm8202_vm14, %v5335_v25, %v5336_v63  ;;  %v3089_v13 = vor.u32 %v3088_v5, %v3085_v26  ;;  %v4816_v7 = vsel %vm7929_vm11, %v9150_v8, %v9110_v12  ;;  %v4824_v43 = vor.u32 %v9140_v40, %v9123_v9  ;;  %v7436_v25 = vld [vmem:[#allocation2 + $0x18] sm:$0xff]   ;;  %v9669_v26 = vld [vmem:[#allocation16_spill] sm:$0xff] }
 0x1ab   : > { %v6289_v22 = vcombine.low %v9201_v0, %v9211_v57  ;;  %v5342_v55 = vrot.slane %v5340_v62, 4  ;;  %v4834_v63 = vor.u32 %v4833_v18, %v9165_v48  ;;  %v9231_v41 = vrot.slane %v4837_v35, 5  ;;  %v7523_v0 = vld [vmem:[#allocation2 + $0xac] sm:$0xf] }
 0x1ac   : > { %6703 = vmatmul.mubr.bf16.gmra.mrb[28].mxu1 %v6120_v53  ;;  %v9222_v53 = vsel %vm8202_vm14, %v6274_v14, %v5340_v62  ;;  %6931 = vmatmul.mubr.bf16.gmra.mrb[16].mxu0 %v9091_v59  ;;  %v4866_v21 = vshrl.u32 %v4502_v2, 16  ;;  %v4869_v52 = vshll.u32 %v4502_v2, 16  ;;  %v3090_v1 = vrot.slane %v3089_v13, 4  ;;  %v7438_v59 = vld [vmem:[#allocation2 + $0x24] sm:$0xff]   ;;  %v9670_v62 = vld [vmem:[#allocation29_spill] sm:$0xff] }
 0x1ad   : > { %6722 = vmatprep.mubr.bf16.mxu1 %v7435_v50  ;;  %v5221_v50 = vld [vmem:[#allocation2 + $0x90] sm:$0xe]  ;;  %v9236_v56 = vsel %vm8202_vm14, %v5342_v55, %v5343_v28  ;;  %6934 = vmatprep.mubr.bf16.mxu0 %v9106_v6  ;;  %v4861_v12 = vshll.u32 %v9214_v38, 16  ;;  %v4875_v9 = vshll.u32 %v9216_v29, 16  ;;  %v4879_v40 = vshrl.u32 %v9216_v29, 16 }
 0x1ae   : > { %v4848_v35 = vor.u32 %v4847_v32, %v4844_v31  ;;  %v4858_v18 = vor.u32 %v4857_v24, %v9207_v44  ;;  %v3095_v5 = vsel %vm7929_vm11, %v3090_v1, %v9669_v26  ;;  %v6275_v14 = vrot.slane %v5221_v50, 9  ;;  %v7501_v26 = vld [vmem:[#allocation2 + $0x1c] sm:$0xf] }
 0x1af   : > { %v6253_v17 = vcombine.low %v4806_v20, %v4816_v7  ;;  %v9248_v6 = vcombine.low %v3095_v5, %v3105_v54  ;;  %v5347_v2 = vrot.slane %v9670_v62, 5  ;;  %v5350_v45 = vrot.slane %v9018_v47, 5  ;;  %v5222_v20 = vld [vmem:[#allocation2 + $0x9c] sm:$0xe] }
 0x1b0   : > { %v4825_v28 = vrot.slane %v4824_v43, 4  ;;  %v4835_v13 = vrot.slane %v4834_v63, 4  ;;  %v4868_v55 = vrot.slane %v4866_v21, 4  ;;  %v4871_v8 = vrot.slane %v4869_v52, 5  ;;  %v9259_v43 = vld [vmem:[#allocation2 + $0xd4] sm:$0x1] }
 0x1b1   : > { %v9252_v31 = vrot.slane %v4875_v9, 5  ;;  %v4881_v32 = vrot.slane %v4879_v40, 4  ;;  %v9256_v24 = vsel %vm8202_vm14, %v6275_v14, %v5347_v2  ;;  %v5349_v50 = vrot.slane %v5347_v2, 4  ;;  %v7500_v63 = vld [vmem:[#allocation6 + $0x108] sm:$0xff]  }
 0x1b2   : > { %v4849_v54 = vrot.slane %v4848_v35, 4  ;;  %v4859_v7 = vrot.slane %v4858_v18, 4  ;;  %v4863_v47 = vrot.slane %v4861_v12, 5  ;;  %v4830_v52 = vsel %vm7929_vm11, %v4825_v28, %v9165_v48  ;;  %v7439_v12 = vld [vmem:[#allocation2 + $0x30] sm:$0xff]   ;;  %v7441_v48 = vld [vmem:[#allocation2 + $0x3c] sm:$0xff]  }
 0x1b3   : > { %v9263_v21 = vsel %vm8202_vm14, %v5349_v50, %v5350_v45  ;;  %v4872_v1 = vor.u32 %v4871_v8, %v4868_v55  ;;  %v4882_v9 = vor.u32 %v4881_v32, %v9252_v31  ;;  %v4885_v40 = vshll.u32 %v9259_v43, 16  ;;  %v9671_v35 = vld [vmem:[#allocation30_spill] sm:$0xff]  ;;  %v5223_v45 = vld [vmem:[#allocation2 + $0xa8] sm:$0xe] }
 0x1b4   : > { %6723 = vmatmul.mubr.bf16.vlgmr.msra.gmra.mrb[0].mxu1 %v7436_v25  ;;  %6935 = vmatmul.mubr.bf16.gmra.mrb[20].mxu0 %v9115_v23  ;;  %v6291_v25 = vcombine.low %v9256_v24, %v9263_v21  ;;  %v6276_v23 = vrot.slane %v5222_v20, 9  ;;  %v5354_v18 = vrot.slane %v9671_v35, 5  ;;  %v4864_v8 = vsel %vm7929_vm11, %v4859_v7, %v4863_v47  ;;  %v5212_v35 = vld [vmem:[#allocation2 + $0x24] sm:$0xe] }
 0x1b5   : > { %7002 = vmatpush3.bf16.msra.mxu1 %v9028_v61  ;;  %6726 = vmatprep.mubr.bf16.mxu1 %v7438_v59  ;;  %v4840_v61 = vsel %vm7929_vm11, %v4835_v13, %v9231_v41  ;;  %v5211_v59 = vld [vmem:[#allocation2 + $0x18] sm:$0xe]  ;;  %v4854_v41 = vsel %vm7929_vm11, %v4849_v54, %v9207_v44  ;;  %v5277_v5 = vrot.slane %v7501_v26, 5  ;;  %v5357_v14 = vrot.slane %v9026_v60, 5  ;;  %v7503_v54 = vld [vmem:[#allocation2 + $0x20] sm:$0x1] }
 0x1b6   : > { %6995 = vmatprep.subr.bf16.mxu1 %v7500_v63  ;;  %6938 = vmatprep.mubr.bf16.mxu0 %v6253_v17  ;;  %v7502_v17 = vld [vmem:[#allocation6 + $0x110] sm:$0xff]   ;;  %v9285_v62 = vsel %vm8202_vm14, %v6276_v23, %v5354_v18  ;;  %v5356_v2 = vrot.slane %v5354_v18, 4  ;;  %v6254_v28 = vcombine.low %v4830_v52, %v4840_v61  ;;  %v4873_v13 = vrot.slane %v4872_v1, 4  ;;  %v7504_v52 = vld [vmem:[#allocation6 + $0x118] sm:$0xff]  }
 0x1b7   : > { %v6265_v55 = vrot.slane %v5211_v59, 9  ;;  %v6255_v44 = vcombine.low %v4854_v41, %v4864_v8  ;;  %v4883_v32 = vrot.slane %v4882_v9, 4  ;;  %v4887_v50 = vrot.slane %v4885_v40, 5  ;;  %v7505_v1 = vld [vmem:[#allocation2 + $0x28] sm:$0xf] }
 0x1b8   : > { %v9289_v20 = vsel %vm8202_vm14, %v5356_v2, %v5357_v14  ;;  %v5279_v60 = vrot.slane %v5277_v5, 4  ;;  %v5280_v7 = vrot.slane %v7503_v54, 5  ;;  %v5361_v61 = vrot.slane %v9033_v36, 5  ;;  %v7442_v40 = vld [vmem:[#allocation2 + $0x48] sm:$0xff]   ;;  %v7506_v8 = vld [vmem:[#allocation2 + $0x34] sm:$0xf] }
 0x1b9   : > { %7003 = vmatpush3.bf16.msra.mxu1 %v7500_v63  ;;  %v6292_v47 = vcombine.low %v9285_v62, %v9289_v20  ;;  %v6277_v63 = vrot.slane %v5223_v45, 9  ;;  %v5364_v9 = vrot.slane %v9060_v10, 5  ;;  %v4878_v59 = vsel %vm7929_vm11, %v4873_v13, %v9252_v31  ;;  %v5224_v31 = vld [vmem:[#allocation2 + $0xb4] sm:$0xe]  ;;  %v7507_v14 = vld [vmem:[#allocation6 + $0x120] sm:$0xff]  }
 0x1ba   : > { %6996 = vmatprep.subr.bf16.mxu1 %v7502_v17  ;;  %v4888_v23 = vsel %vm7929_vm11, %v4883_v32, %v4887_v50  ;;  %v5363_v36 = vrot.slane %v5361_v61, 4  ;;  %v5278_v10 = vsel %vm8202_vm14, %v6265_v55, %v5277_v5  ;;  %v5281_v41 = vsel %vm8202_vm14, %v5279_v60, %v5280_v7  ;;  %v7508_v13 = vld [vmem:[#allocation2 + $0x2c] sm:$0x1] }
 0x1bb   : > { %v9302_v18 = vsel %vm8202_vm14, %v6277_v63, %v5361_v61  ;;  %v5291_v26 = vrot.slane %v7506_v8, 5  ;;  %v6256_v45 = vcombine.low %v4878_v59, %v4888_v23  ;;  %v6281_v55 = vcombine.low %v5278_v10, %v5281_v41  ;;  %v7509_v63 = vld [vmem:[#allocation2 + $0x38] sm:$0x1]  ;;  %v5225_v59 = vld [vmem:[#allocation2 + $0xc0] sm:$0xe]  ;;  %v7447_v41 = vld [vmem:[#allocation2 + $0x6c] sm:$0xff]  }
 0x1bc   : > { %6727 = vmatmul.mubr.bf16.gmra.mrb[4].mxu1 %v7439_v12  ;;  %6939 = vmatmul.mubr.bf16.gmra.mrb[24].mxu0 %v6254_v28  ;;  %v5284_v12 = vrot.slane %v7505_v1, 5  ;;  %v9310_v2 = vsel %vm8202_vm14, %v5363_v36, %v5364_v9  ;;  %v6266_v28 = vrot.slane %v5212_v35, 9  ;;  %v6278_v50 = vrot.slane %v5224_v31, 9  ;;  %v7510_v1 = vld [vmem:[#allocation6 + $0x128] sm:$0xff]   ;;  %v5214_v36 = vld [vmem:[#allocation2 + $0x3c] sm:$0xe] }
 0x1bd   : > { %6730 = vmatprep.mubr.bf16.mxu1 %v7441_v48  ;;  %7004 = vmatpush3.bf16.msra.mxu1 %v7502_v17  ;;  %v7444_v48 = vld [vmem:[#allocation2 + $0x54] sm:$0xff]   ;;  %v5213_v17 = vld [vmem:[#allocation2 + $0x30] sm:$0xe]  ;;  %v6293_v5 = vcombine.low %v9302_v18, %v9310_v2  ;;  %v5368_v60 = vrot.slane %v9093_v11, 5  ;;  %v5293_v7 = vrot.slane %v5291_v26, 4  ;;  %v5371_v61 = vrot.slane %v9152_v3, 5 }
 0x1be   : > { %6997 = vmatprep.subr.bf16.mxu1 %v7504_v52  ;;  %6942 = vmatprep.mubr.bf16.mxu0 %v6255_v44  ;;  %v5287_v44 = vrot.slane %v7508_v13, 5  ;;  %v5286_v32 = vrot.slane %v5284_v12, 4  ;;  %v6267_v54 = vrot.slane %v5213_v17, 9  ;;  %v7445_v23 = vld [vmem:[#allocation2 + $0x60] sm:$0xff]   ;;  %v5285_v11 = vsel %vm8202_vm14, %v6266_v28, %v5284_v12  ;;  %v7512_v17 = vld [vmem:[#allocation6 + $0x130] sm:$0xff]  }
 0x1bf   : > { %v9318_v9 = vsel %vm8202_vm14, %v6278_v50, %v5368_v60  ;;  %v6268_v13 = vrot.slane %v5214_v36, 9  ;;  %v3188_v57 = vshll.u32 %v7523_v0, 16  ;;  %v7528_v2 = vld [vmem:[#allocation2 + $0xc8] sm:$0x1] }
 0x1c0   : > { %v5288_v35 = vsel %vm8202_vm14, %v5286_v32, %v5287_v44  ;;  %v5292_v8 = vsel %vm8202_vm14, %v6267_v54, %v5291_v26  ;;  %v7513_v44 = vld [vmem:[#allocation2 + $0x44] sm:$0x1]  ;;  %v5378_v32 = vrot.slane %v9214_v38, 5 }
 0x1c1   : > { %7005 = vmatpush3.bf16.msra.mxu1 %v7504_v52  ;;  %v5294_v52 = vrot.slane %v7509_v63, 5  ;;  %v6282_v28 = vcombine.low %v5285_v11, %v5288_v35  ;;  %v7514_v63 = vld [vmem:[#allocation6 + $0x138] sm:$0xff]   ;;  %v7449_v11 = vld [vmem:[#allocation2 + $0x84] sm:$0xff]   ;;  %v5385_v35 = vrot.slane %v9259_v43, 5 }
 0x1c2   : > { %6998 = vmatprep.subr.bf16.mxu1 %v7507_v14  ;;  %v7450_v43 = vld [vmem:[#allocation2 + $0x90] sm:$0xff]  }
 0x1c3   : > { %v5295_v31 = vsel %vm8202_vm14, %v5293_v7, %v5294_v52  ;;  %v5226_v7 = vld [vmem:[#allocation2 + $0xcc] sm:$0xe]  ;;  %v7448_v52 = vld [vmem:[#allocation2 + $0x78] sm:$0xff]  }
 0x1c4   : > { %6731 = vmatmul.mubr.bf16.gmra.mrb[8].mxu1 %v7442_v40  ;;  %v5370_v40 = vrot.slane %v5368_v60, 4  ;;  %6943 = vmatmul.mubr.bf16.gmra.mrb[28].mxu0 %v6256_v45  ;;  %v5375_v45 = vrot.slane %v9168_v30, 5  ;;  %v6283_v26 = vcombine.low %v5292_v8, %v5295_v31  ;;  %v7515_v31 = vld [vmem:[#allocation2 + $0x70] sm:$0xf] }
 0x1c5   : > { %6734 = vmatprep.mubr.bf16.mxu1 %v7444_v48  ;;  %7006 = vmatpush3.bf16.msra.mxu1 %v7507_v14  ;;  %v7511_v48 = vld [vmem:[#allocation2 + $0x40] sm:$0xf]  ;;  %v6279_v14 = vrot.slane %v5225_v59, 9  ;;  %v6280_v59 = vrot.slane %v5226_v7, 9 }
 0x1c6   : > { %6999 = vmatprep.subr.bf16.mxu1 %v7510_v1  ;;  %6962 = vmatprep.mubr.bf16.mxu0 %v6281_v55  ;;  %v5298_v3 = vrot.slane %v7511_v48, 5  ;;  %v9326_v10 = vsel %vm8202_vm14, %v5370_v40, %v5371_v61  ;;  %v5301_v55 = vrot.slane %v7513_v44, 5  ;;  %v5377_v54 = vrot.slane %v5375_v45, 4  ;;  %v2842_v40 = vld [vmem:[#allocation2 + $0x6c] sm:$0xf] }
 0x1c7   : > { %v6294_v12 = vcombine.low %v9318_v9, %v9326_v10  ;;  %v9338_v60 = vsel %vm8202_vm14, %v6279_v14, %v5375_v45  ;;  %v3059_v8 = vshrl.u32 %v2842_v40, 16  ;;  %v3068_v14 = vshll.u32 %v7515_v31, 16 }
 0x1c8   : > { %v5300_v50 = vrot.slane %v5298_v3, 4  ;;  %v9342_v30 = vsel %vm8202_vm14, %v5377_v54, %v5378_v32  ;;  %v5299_v61 = vsel %vm8202_vm14, %v6268_v13, %v5298_v3  ;;  %v3062_v3 = vshll.u32 %v2842_v40, 16  ;;  %v7451_v32 = vld [vmem:[#allocation2 + $0x9c] sm:$0xff]  }
 0x1c9   : > { %7007 = vmatpush3.bf16.msra.mxu1 %v7510_v1  ;;  %v6295_v38 = vcombine.low %v9338_v60, %v9342_v30  ;;  %v3070_v44 = vrot.slane %v3068_v14, 5 }
 0x1ca   : > { %7000 = vmatprep.subr.bf16.mxu1 %v7512_v17  ;;  %v5302_v1 = vsel %vm8202_vm14, %v5300_v50, %v5301_v55  ;;  %v3064_v13 = vrot.slane %v3062_v3, 5  ;;  %v7516_v50 = vld [vmem:[#allocation2 + $0x74] sm:$0x1] }
 0x1cb   : > { %v3078_v51 = vshll.u32 %v7516_v50, 16 }
 0x1cc   : > { %6735 = vmatmul.mubr.bf16.gmra.mrb[12].mxu1 %v7445_v23  ;;  %6963 = vmatmul.mubr.bf16.vlgmr.msra.gmra.mrb[0].mxu0 %v6282_v28  ;;  %v5382_v23 = vrot.slane %v9216_v29, 5  ;;  %v3061_v28 = vrot.slane %v3059_v8, 4 }
 0x1cd   : > { %6738 = vmatprep.mubr.bf16.mxu1 %v7447_v41  ;;  %7008 = vmatpush3.bf16.msra.mxu1 %v7512_v17  ;;  %v6284_v41 = vcombine.low %v5299_v61, %v5302_v1  ;;  %v3072_v17 = vshrl.u32 %v7515_v31, 16  ;;  %v7517_v61 = vld [vmem:[#allocation2 + $0x88] sm:$0xf]  ;;  %v3080_v16 = vrot.slane %v3078_v51, 5 }
 0x1ce   : > { %7001 = vmatprep.subr.bf16.mxu1 %v7514_v63  ;;  %6966 = vmatprep.mubr.bf16.mxu0 %v6283_v26  ;;  %v9354_v36 = vsel %vm8202_vm14, %v6280_v59, %v5382_v23  ;;  %v5384_v48 = vrot.slane %v5382_v23, 4  ;;  %v2848_v26 = vld [vmem:[#allocation2 + $0x84] sm:$0xf]  ;;  %v3065_v54 = vor.u32 %v3064_v13, %v3061_v28  ;;  %v3116_v1 = vshll.u32 %v7517_v61, 16  ;;  %v2851_v59 = vld [vmem:[#allocation2 + $0x90] sm:$0xf] }
 0x1cf   : > { %v3074_v55 = vrot.slane %v3072_v17, 4  ;;  %v3120_v40 = vshrl.u32 %v7517_v61, 16  ;;  %v3131_v31 = vshrl.u32 %v2851_v59, 16  ;;  %v3134_v14 = vshll.u32 %v2851_v59, 16  ;;  %v7518_v17 = vld [vmem:[#allocation2 + $0x94] sm:$0xf] }
 0x1d0   : > { %v9358_v45 = vsel %vm8202_vm14, %v5384_v48, %v5385_v35  ;;  %v2854_v48 = vld [vmem:[#allocation2 + $0x9c] sm:$0xf]  ;;  %v9371_v8 = vrot.slane %v3116_v1, 5  ;;  %v3144_v34 = vshrl.u32 %v7518_v17, 16  ;;  %v7519_v28 = vld [vmem:[#allocation2 + $0xa0] sm:$0xf] }
 0x1d1   : > { %7009 = vmatpush3.bf16.msra.mxu1 %v7514_v63  ;;  %v6296_v29 = vcombine.low %v9354_v36, %v9358_v45  ;;  %v3075_v7 = vor.u32 %v3074_v55, %v3070_v44  ;;  %v3107_v63 = vshrl.u32 %v2848_v26, 16  ;;  %v3122_v3 = vrot.slane %v3120_v40, 4  ;;  %v7520_v55 = vld [vmem:[#allocation2 + $0x8c] sm:$0x1]  ;;  %v7454_v40 = vld [vmem:[#allocation2 + $0xc0] sm:$0xff]  }
 0x1d2   : > { %v3155_v33 = vshrl.u32 %v2854_v48, 16  ;;  %v3164_v13 = vshll.u32 %v7519_v28, 16  ;;  %v3168_v19 = vshrl.u32 %v7519_v28, 16  ;;  %v3133_v51 = vrot.slane %v3131_v31, 4  ;;  %v2860_v31 = vld [vmem:[#allocation2 + $0xb4] sm:$0xf] }
 0x1d3   : > { %v3076_v23 = vrot.slane %v3075_v7, 4  ;;  %v3123_v50 = vor.u32 %v3122_v3, %v9371_v8  ;;  %v3203_v28 = vshrl.u32 %v2860_v31, 16 }
 0x1d4   : > { %6739 = vmatmul.mubr.bf16.gmra.mrb[16].mxu1 %v7448_v52  ;;  %6967 = vmatmul.mubr.bf16.gmra.mrb[4].mxu0 %v6284_v41  ;;  %v3110_v52 = vshll.u32 %v2848_v26, 16  ;;  %v7453_v41 = vld [vmem:[#allocation2 + $0xb4] sm:$0xff]   ;;  %v9383_v61 = vrot.slane %v3164_v13, 5  ;;  %v3170_v1 = vrot.slane %v3168_v19, 4  ;;  %v3206_v13 = vshll.u32 %v2860_v31, 16 }
 0x1d5   : > { %6742 = vmatprep.mubr.bf16.mxu1 %v7449_v11  ;;  %6970 = vmatprep.mubr.bf16.mxu0 %v6285_v58  ;;  %v3066_v58 = vrot.slane %v3065_v54, 4  ;;  %v3109_v11 = vrot.slane %v3107_v63, 4  ;;  %v3136_v54 = vrot.slane %v3134_v14, 5  ;;  %v3146_v63 = vrot.slane %v3144_v34, 4  ;;  %v7524_v19 = vld [vmem:[#allocation2 + $0xb8] sm:$0xf] }
 0x1d6   : > { %v3112_v35 = vrot.slane %v3110_v52, 5  ;;  %v3157_v52 = vrot.slane %v3155_v33, 4 }
 0x1d7   : > { %v3071_v27 = vsel %vm7929_vm11, %v3066_v58, %v3070_v44  ;;  %v3124_v58 = vrot.slane %v3123_v50, 4 }
 0x1d8   : > { %v3113_v26 = vor.u32 %v3112_v35, %v3109_v11  ;;  %v7521_v11 = vld [vmem:[#allocation2 + $0x98] sm:$0x1] }
 0x1d9   : > { %v3150_v35 = vshll.u32 %v7521_v11, 16 }
 0x1dc   : > { %6743 = vmatmul.mubr.bf16.gmra.mrb[20].mxu1 %v7450_v43  ;;  %6971 = vmatmul.mubr.bf16.gmra.mrb[8].mxu0 %v6286_v37  ;;  %v3140_v43 = vshll.u32 %v7518_v17, 16  ;;  %v3158_v37 = vshll.u32 %v2854_v48, 16  ;;  %v2857_v48 = vld [vmem:[#allocation2 + $0xa8] sm:$0xf] }
 0x1dd   : > { %6746 = vmatprep.mubr.bf16.mxu1 %v7451_v32  ;;  %6974 = vmatprep.mubr.bf16.mxu0 %v6287_v15  ;;  %v3081_v15 = vsel %vm7929_vm11, %v3076_v23, %v3080_v16  ;;  %v3126_v32 = vshll.u32 %v7520_v55, 16  ;;  %v3114_v16 = vrot.slane %v3113_v26, 4  ;;  %v3137_v23 = vor.u32 %v3136_v54, %v3133_v51 }
 0x1de   : > { %v9378_v7 = vrot.slane %v3140_v43, 5  ;;  %v3160_v44 = vrot.slane %v3158_v37, 5  ;;  %v6161_v59 = vcombine.low %v3071_v27, %v3081_v15  ;;  %v3179_v14 = vshrl.u32 %v2857_v48, 16 }
 0x1df   : > { %v3182_v17 = vshll.u32 %v2857_v48, 16  ;;  %v3119_v43 = vsel %vm7929_vm11, %v3114_v16, %v9371_v8  ;;  %v3138_v33 = vrot.slane %v3137_v23, 4  ;;  %v3152_v37 = vrot.slane %v3150_v35, 5  ;;  %v2863_v16 = vld [vmem:[#allocation2 + $0xc0] sm:$0xf] }
 0x1e0   : > { %v3147_v39 = vor.u32 %v3146_v63, %v9378_v7  ;;  %v3161_v42 = vor.u32 %v3160_v44, %v3157_v52  ;;  %v3212_v27 = vshll.u32 %v7524_v19, 16  ;;  %v3216_v15 = vshrl.u32 %v7524_v19, 16  ;;  %v7525_v23 = vld [vmem:[#allocation2 + $0xb0] sm:$0x1] }
 0x1e1   : > { %v9672_v55 = vcombine.low %v9222_v53, %v9236_v56  ;;  %v3181_v8 = vrot.slane %v3179_v14, 4  ;;  %v3184_v54 = vrot.slane %v3182_v17, 5  ;;  %v3190_v63 = vrot.slane %v3188_v57, 5 }
 0x1e2   : > { %v3162_v26 = vrot.slane %v3161_v42, 4  ;;  %v3143_v53 = vsel %vm7929_vm11, %v3138_v33, %v9378_v7  ;;  %v3198_v11 = vshll.u32 %v7525_v23, 16  ;;  %v3227_v35 = vshrl.u32 %v2863_v16, 16  ;;  %v7526_v7 = vld [vmem:[#allocation2 + $0xc4] sm:$0xf] }
 0x1e3   : > { %v3230_v48 = vshll.u32 %v2863_v16, 16  ;;  %v3240_v42 = vshrl.u32 %v7526_v7, 16 }
 0x1e4   : > { %6747 = vmatmul.mubr.bf16.gmra.mrb[24].mxu1 %v7452_v49  ;;  %6975 = vmatmul.mubr.bf16.gmra.mrb[12].mxu0 %v6288_v46  ;;  %v3128_v49 = vrot.slane %v3126_v32, 5  ;;  %v3171_v46 = vor.u32 %v3170_v1, %v9383_v61  ;;  %v3148_v32 = vrot.slane %v3147_v39, 4  ;;  %v3205_v1 = vrot.slane %v3203_v28, 4 }
 0x1e5   : > { %6750 = vmatprep.mubr.bf16.mxu1 %v7453_v41  ;;  %6978 = vmatprep.mubr.bf16.mxu0 %v6289_v22  ;;  %v7522_v41 = vld [vmem:[#allocation2 + $0xa4] sm:$0x1]  ;;  %v3192_v22 = vshrl.u32 %v7523_v0, 16  ;;  %v3167_v24 = vsel %vm7929_vm11, %v3162_v26, %v9383_v61  ;;  %v3236_v39 = vshll.u32 %v7526_v7, 16  ;;  %v3200_v0 = vrot.slane %v3198_v11, 5 }
 0x1e6   : > { %v3174_v3 = vshll.u32 %v7522_v41, 16  ;;  %v3129_v34 = vsel %vm7929_vm11, %v3124_v58, %v3128_v49  ;;  %v3172_v50 = vrot.slane %v3171_v46, 4  ;;  %v3218_v49 = vrot.slane %v3216_v15, 4 }
 0x1e7   : > { %v3194_v52 = vrot.slane %v3192_v22, 4  ;;  %v6163_v44 = vcombine.low %v3119_v43, %v3129_v34  ;;  %v3153_v56 = vsel %vm7929_vm11, %v3148_v32, %v3152_v37  ;;  %v3229_v57 = vrot.slane %v3227_v35, 4 }
 0x1e8   : > { %v3176_v51 = vrot.slane %v3174_v3, 5  ;;  %v7527_v3 = vld [vmem:[#allocation2 + $0xbc] sm:$0x1]  ;;  %v6164_v61 = vcombine.low %v3143_v53, %v3153_v56  ;;  %v3232_v22 = vrot.slane %v3230_v48, 5  ;;  %v3238_v43 = vrot.slane %v3236_v39, 5 }
 0x1e9   : > { %v3195_v58 = vor.u32 %v3194_v52, %v3190_v63  ;;  %v3222_v31 = vshll.u32 %v7527_v3, 16  ;;  %v3242_v34 = vrot.slane %v3240_v42, 4 }
 0x1ea   : > { %v3177_v21 = vsel %vm7929_vm11, %v3172_v50, %v3176_v51 }
 0x1eb   : > { %v3196_v17 = vrot.slane %v3195_v58, 4  ;;  %v3224_v28 = vrot.slane %v3222_v31, 5  ;;  %v3243_v18 = vor.u32 %v3242_v34, %v3238_v43 }
 0x1ec   : > { %6751 = vmatmul.mubr.bf16.gmra.mrb[28].mxu1 %v7454_v40  ;;  %6979 = vmatmul.mubr.bf16.gmra.mrb[16].mxu0 %v9672_v55  ;;  %v3208_v40 = vrot.slane %v3206_v13, 5 }
 0x1ed   : > { %6786 = vmatprep.mubr.bf16.mxu1 %v6161_v59  ;;  %6982 = vmatprep.mubr.bf16.mxu0 %v6291_v25  ;;  %v3214_v59 = vrot.slane %v3212_v27, 5  ;;  %v3185_v25 = vor.u32 %v3184_v54, %v3181_v8  ;;  %v3201_v20 = vsel %vm7929_vm11, %v3196_v17, %v3200_v0  ;;  %v3244_v32 = vrot.slane %v3243_v18, 4 }
 0x1ee   : > { %v3209_v46 = vor.u32 %v3208_v40, %v3205_v1 }
 0x1ef   : > { %v3219_v41 = vor.u32 %v3218_v49, %v3214_v59  ;;  %v3186_v14 = vrot.slane %v3185_v25, 4 }
 0x1f0   : > { %v3210_v33 = vrot.slane %v3209_v46, 4 }
 0x1f1   : > { %v3220_v37 = vrot.slane %v3219_v41, 4  ;;  %v3191_v62 = vsel %vm7929_vm11, %v3186_v14, %v3190_v63 }
 0x1f2   : > { %v3215_v13 = vsel %vm7929_vm11, %v3210_v33, %v3214_v59  ;;  %v6166_v27 = vcombine.low %v3191_v62, %v3201_v20 }
 0x1f3   : > { %v3225_v19 = vsel %vm7929_vm11, %v3220_v37, %v3224_v28 }
 0x1f4   : > { %6787 = vmatmul.mubr.bf16.vlgmr.msra.gmra.mrb[16].mxu1 %v9248_v6  ;;  %6983 = vmatmul.mubr.bf16.gmra.mrb[20].mxu0 %v6292_v47  ;;  %v6165_v6 = vcombine.low %v3167_v24, %v3177_v21  ;;  %v3233_v47 = vor.u32 %v3232_v22, %v3229_v57  ;;  %v6167_v15 = vcombine.low %v3215_v13, %v3225_v19 }
 0x1f5   : > { %6790 = vmatprep.mubr.bf16.mxu1 %v6163_v44  ;;  %6986 = vmatprep.mubr.bf16.mxu0 %v6293_v5  ;;  %v3246_v5 = vshll.u32 %v7528_v2, 16 }
 0x1f6   : > { %v3234_v55 = vrot.slane %v3233_v47, 4 }
 0x1f7   : > { %v3248_v26 = vrot.slane %v3246_v5, 5 }
 0x1f8   : > { %v3239_v50 = vsel %vm7929_vm11, %v3234_v55, %v3238_v43 }
 0x1f9   : > { %v3249_v51 = vsel %vm7929_vm11, %v3244_v32, %v3248_v26 }
 0x1fa   : > { %v6168_v9 = vcombine.low %v3239_v50, %v3249_v51 }
 0x1fc   : > { %6791 = vmatmul.mubr.bf16.gmra.mrb[20].mxu1 %v6164_v61  ;;  %6987 = vmatmul.mubr.bf16.gmra.mrb[24].mxu0 %v6294_v12 }
 0x1fd   : > { %6794 = vmatprep.mubr.bf16.mxu1 %v6165_v6  ;;  %6990 = vmatprep.mubr.bf16.mxu0 %v6295_v38 }
 0x204   : > { %6795 = vmatmul.mubr.bf16.gmra.mrb[24].mxu1 %v6166_v27  ;;  %6991 = vmatmul.mubr.bf16.gmra.mrb[28].mxu0 %v6296_v29 }
 0x205   : > { %6798 = vmatprep.mubr.bf16.mxu1 %v6167_v15 }
 0x20c   : > { %6799 = vmatmul.mubr.bf16.gmra.mrb[28].mxu1 %v6168_v9 }
 0x287   : > { %v6724_v10 = vpop.f32.mrb[0].mxu1 }
 0x288   : > { %v2659_v12 = vpop.f32.mrb[1].mxu1 }
 0x289   : > { %v6725_v60 = vpop.f32.mrb[2].mxu1 }
 0x28a   : > { %v2662_v30 = vpop.f32.mrb[3].mxu1 }
 0x28f   : > { %v6728_v38 = vpop.f32.mrb[4].mxu1 }
 0x290   : > { %v2675_v8 = vpop.f32.mrb[5].mxu1 }
 0x291   : > { %v6729_v54 = vpop.f32.mrb[6].mxu1 }
 0x292   : > { %v2678_v63 = vpop.f32.mrb[7].mxu1 }
 0x297   : > { %v6732_v52 = vpop.f32.mrb[8].mxu1 }
 0x298   : > { %v2691_v44 = vpop.f32.mrb[9].mxu1 }
 0x299   : > { %v6733_v1 = vpop.f32.mrb[10].mxu1 }
 0x29a   : > { %v9439_v4 = vpop.f32.mrb[11].mxu1 }
 0x29f   : > { %v9441_v40 = vpop.f32.mrb[12].mxu1  ;;  %v6964_v59 = vpop.f32.mrb[0].mxu0 }
 0x2a0   : > { %v9443_v36 = vpop.f32.mrb[13].mxu1  ;;  %v7010_v49 = vadd.f32 %v6964_v59, %v6724_v10  ;;  %v5550_v16 = vpop.f32.mrb[1].mxu0 }
 0x2a1   : > { %v9445_v45 = vpop.f32.mrb[14].mxu1  ;;  %v7011_v53 = vadd.f32 %v5550_v16, %v2659_v12  ;;  %v6965_v56 = vpop.f32.mrb[2].mxu0 }
 0x2a2   : > { %v9447_v29 = vpop.f32.mrb[15].mxu1  ;;  %5711 = vst [vmem:[%s9451_s18 + $0x10] sm:$0xff] %v7010_v49  ;;  %v7012_v24 = vadd.f32 %v6965_v56, %v6725_v60  ;;  %v5553_v21 = vpop.f32.mrb[3].mxu0  ;;  %v5780_v35 = vmul.f32 %v7010_v49, %v7010_v49 }
 0x2a3   : > { %5709 = vst [vmem:[%s9451_s18] sm:$0xff] %v7011_v53  ;;  %v7013_v25 = vadd.f32 %v5553_v21, %v2662_v30  ;;  %v5778_v58 = vmul.f32 %v7011_v53, %v7011_v53 }
 0x2a4   : > { %5712 = vst [vmem:[%s9451_s18 + $0x18] sm:$0xff] %v7012_v24  ;;  %v5781_v41 = vmul.f32 %v7012_v24, %v7012_v24 }
 0x2a5   : > { %5710 = vst [vmem:[%s9451_s18 + $0x8] sm:$0xff] %v7013_v25  ;;  %v5741_v23 = vadd.f32 %v7013_v25, %v7011_v53  ;;  %v5779_v11 = vmul.f32 %v7013_v25, %v7013_v25 }
 0x2a7   : > { %v5742_v48 = vadd.f32 %v7010_v49, %v5741_v23  ;;  %v5810_v7 = vadd.f32 %v5779_v11, %v5778_v58  ;;  %v6968_v39 = vpop.f32.mrb[4].mxu0 }
 0x2a8   : > { %v7014_v42 = vadd.f32 %v6968_v39, %v6728_v38  ;;  %v5566_v46 = vpop.f32.mrb[5].mxu0 }
 0x2a9   : > { %v5811_v3 = vadd.f32 %v5810_v7, %v5780_v35  ;;  %v7015_v31 = vadd.f32 %v5566_v46, %v2675_v8  ;;  %v5743_v61 = vadd.f32 %v7012_v24, %v5742_v48  ;;  %v6969_v6 = vpop.f32.mrb[6].mxu0 }
 0x2aa   : > { %5715 = vst [vmem:[%s9451_s18 + $0x30] sm:$0xff] %v7014_v42  ;;  %v7016_v14 = vadd.f32 %v6969_v6, %v6729_v54  ;;  %v5569_v17 = vpop.f32.mrb[7].mxu0  ;;  %v5784_v28 = vmul.f32 %v7014_v42, %v7014_v42 }
 0x2ab   : > { %5713 = vst [vmem:[%s9451_s18 + $0x20] sm:$0xff] %v7015_v31  ;;  %v5744_v0 = vadd.f32 %v7015_v31, %v5743_v61  ;;  %v5782_v57 = vmul.f32 %v7015_v31, %v7015_v31  ;;  %v5812_v22 = vadd.f32 %v5811_v3, %v5781_v41  ;;  %v7017_v43 = vadd.f32 %v5569_v17, %v2678_v63 }
 0x2ac   : > { %5716 = vst [vmem:[%s9451_s18 + $0x38] sm:$0xff] %v7016_v14  ;;  %v5785_v5 = vmul.f32 %v7016_v14, %v7016_v14 }
 0x2ad   : > { %v5813_v34 = vadd.f32 %v5812_v22, %v5782_v57  ;;  %5714 = vst [vmem:[%s9451_s18 + $0x28] sm:$0xff] %v7017_v43  ;;  %v5745_v33 = vadd.f32 %v7017_v43, %v5744_v0  ;;  %v5783_v37 = vmul.f32 %v7017_v43, %v7017_v43 }
 0x2af   : > { %v5746_v62 = vadd.f32 %v7014_v42, %v5745_v33  ;;  %v5814_v20 = vadd.f32 %v5813_v34, %v5783_v37  ;;  %v6972_v47 = vpop.f32.mrb[8].mxu0 }
 0x2b0   : > { %v7018_v18 = vadd.f32 %v6972_v47, %v6732_v52  ;;  %v5582_v2 = vpop.f32.mrb[9].mxu0 }
 0x2b1   : > { %v5815_v13 = vadd.f32 %v5814_v20, %v5784_v28  ;;  %v7019_v19 = vadd.f32 %v5582_v2, %v2691_v44  ;;  %v5747_v27 = vadd.f32 %v7016_v14, %v5746_v62  ;;  %v6973_v15 = vpop.f32.mrb[10].mxu0 }
 0x2b2   : > { %5719 = vst [vmem:[%s9451_s18 + $0x50] sm:$0xff] %v7018_v18  ;;  %v7020_v55 = vadd.f32 %v6973_v15, %v6733_v1  ;;  %v5585_v32 = vpop.f32.mrb[11].mxu0  ;;  %v5788_v30 = vmul.f32 %v7018_v18, %v7018_v18 }
 0x2b3   : > { %5717 = vst [vmem:[%s9451_s18 + $0x40] sm:$0xff] %v7019_v19  ;;  %v5748_v26 = vadd.f32 %v7019_v19, %v5747_v27  ;;  %v5786_v50 = vmul.f32 %v7019_v19, %v7019_v19  ;;  %v5816_v51 = vadd.f32 %v5815_v13, %v5785_v5  ;;  %v7021_v9 = vadd.f32 %v5585_v32, %v9439_v4 }
 0x2b4   : > { %5720 = vst [vmem:[%s9451_s18 + $0x58] sm:$0xff] %v7020_v55  ;;  %v5789_v44 = vmul.f32 %v7020_v55, %v7020_v55 }
 0x2b5   : > { %v5817_v10 = vadd.f32 %v5816_v51, %v5786_v50  ;;  %5718 = vst [vmem:[%s9451_s18 + $0x48] sm:$0xff] %v7021_v9  ;;  %v5749_v12 = vadd.f32 %v7021_v9, %v5748_v26  ;;  %v5787_v60 = vmul.f32 %v7021_v9, %v7021_v9 }
 0x2b7   : > { %v5750_v38 = vadd.f32 %v7018_v18, %v5749_v12  ;;  %v5818_v8 = vadd.f32 %v5817_v10, %v5787_v60  ;;  %v6976_v54 = vpop.f32.mrb[12].mxu0 }
 0x2b8   : > { %v7022_v63 = vadd.f32 %v6976_v54, %v9441_v40  ;;  %v5598_v52 = vpop.f32.mrb[13].mxu0 }
 0x2b9   : > { %v5819_v1 = vadd.f32 %v5818_v8, %v5788_v30  ;;  %v7023_v4 = vadd.f32 %v5598_v52, %v9443_v36  ;;  %v5751_v59 = vadd.f32 %v7020_v55, %v5750_v38  ;;  %v6977_v49 = vpop.f32.mrb[14].mxu0 }
 0x2ba   : > { %5723 = vst [vmem:[%s9451_s18 + $0x70] sm:$0xff] %v7022_v63  ;;  %v7024_v16 = vadd.f32 %v6977_v49, %v9445_v45  ;;  %v5601_v53 = vpop.f32.mrb[15].mxu0  ;;  %v5792_v11 = vmul.f32 %v7022_v63, %v7022_v63 }
 0x2bb   : > { %5721 = vst [vmem:[%s9451_s18 + $0x60] sm:$0xff] %v7023_v4  ;;  %v5752_v56 = vadd.f32 %v7023_v4, %v5751_v59  ;;  %v5790_v24 = vmul.f32 %v7023_v4, %v7023_v4  ;;  %v5820_v21 = vadd.f32 %v5819_v1, %v5789_v44  ;;  %v7025_v25 = vadd.f32 %v5601_v53, %v9447_v29 }
 0x2bc   : > { %5724 = vst [vmem:[%s9451_s18 + $0x78] sm:$0xff] %v7024_v16  ;;  %v5793_v45 = vmul.f32 %v7024_v16, %v7024_v16 }
 0x2bd   : > { %v5821_v40 = vadd.f32 %v5820_v21, %v5790_v24  ;;  %5722 = vst [vmem:[%s9451_s18 + $0x68] sm:$0xff] %v7025_v25  ;;  %v5753_v58 = vadd.f32 %v7025_v25, %v5752_v56  ;;  %v5791_v23 = vmul.f32 %v7025_v25, %v7025_v25 }
 0x2bf   : > { %v5754_v36 = vadd.f32 %v7022_v63, %v5753_v58  ;;  %v5822_v35 = vadd.f32 %v5821_v40, %v5791_v23  ;;  %v6980_v48 = vpop.f32.mrb[16].mxu0 }
 0x2c0   : > { %v5614_v7 = vpop.f32.mrb[17].mxu0 }
 0x2c1   : > { %v5823_v39 = vadd.f32 %v5822_v35, %v5792_v11  ;;  %v5755_v42 = vadd.f32 %v7024_v16, %v5754_v36  ;;  %v6981_v46 = vpop.f32.mrb[18].mxu0 }
 0x2c2   : > { %v5617_v41 = vpop.f32.mrb[19].mxu0 }
 0x2c3   : > { %v5824_v3 = vadd.f32 %v5823_v39, %v5793_v45 }
 0x2c7   : > { %v6788_v29 = vpop.f32.mrb[16].mxu1  ;;  %v6984_v57 = vpop.f32.mrb[20].mxu0 }
 0x2c8   : > { %v7026_v31 = vadd.f32 %v6980_v48, %v6788_v29  ;;  %v3477_v61 = vpop.f32.mrb[17].mxu1  ;;  %v5630_v33 = vpop.f32.mrb[21].mxu0 }
 0x2c9   : > { %v7027_v6 = vadd.f32 %v5614_v7, %v3477_v61  ;;  %v6789_v14 = vpop.f32.mrb[18].mxu1  ;;  %v6985_v37 = vpop.f32.mrb[22].mxu0 }
 0x2ca   : > { %5727 = vst [vmem:[%s9451_s18 + $0x90] sm:$0xff] %v7026_v31  ;;  %v7028_v17 = vadd.f32 %v6981_v46, %v6789_v14  ;;  %v3480_v0 = vpop.f32.mrb[19].mxu1  ;;  %v5633_v47 = vpop.f32.mrb[23].mxu0  ;;  %v5796_v18 = vmul.f32 %v7026_v31, %v7026_v31 }
 0x2cb   : > { %5725 = vst [vmem:[%s9451_s18 + $0x80] sm:$0xff] %v7027_v6  ;;  %v5756_v22 = vadd.f32 %v7027_v6, %v5755_v42  ;;  %v5794_v43 = vmul.f32 %v7027_v6, %v7027_v6  ;;  %v7029_v34 = vadd.f32 %v5617_v41, %v3480_v0 }
 0x2cc   : > { %5728 = vst [vmem:[%s9451_s18 + $0x98] sm:$0xff] %v7028_v17  ;;  %v5797_v15 = vmul.f32 %v7028_v17, %v7028_v17 }
 0x2cd   : > { %v5825_v28 = vadd.f32 %v5824_v3, %v5794_v43  ;;  %5726 = vst [vmem:[%s9451_s18 + $0x88] sm:$0xff] %v7029_v34  ;;  %v5757_v62 = vadd.f32 %v7029_v34, %v5756_v22  ;;  %v5795_v20 = vmul.f32 %v7029_v34, %v7029_v34 }
 0x2cf   : > { %v5758_v2 = vadd.f32 %v7026_v31, %v5757_v62  ;;  %v5826_v5 = vadd.f32 %v5825_v28, %v5795_v20  ;;  %v6792_v13 = vpop.f32.mrb[20].mxu1  ;;  %v6988_v10 = vpop.f32.mrb[24].mxu0 }
 0x2d0   : > { %v7030_v19 = vadd.f32 %v6984_v57, %v6792_v13  ;;  %v3493_v27 = vpop.f32.mrb[21].mxu1  ;;  %v5646_v8 = vpop.f32.mrb[25].mxu0 }
 0x2d1   : > { %v5827_v55 = vadd.f32 %v5826_v5, %v5796_v18  ;;  %v7031_v32 = vadd.f32 %v5630_v33, %v3493_v27  ;;  %v5759_v26 = vadd.f32 %v7028_v17, %v5758_v2  ;;  %v6793_v50 = vpop.f32.mrb[22].mxu1  ;;  %v6989_v54 = vpop.f32.mrb[26].mxu0 }
 0x2d2   : > { %5731 = vst [vmem:[%s9451_s18 + $0xb0] sm:$0xff] %v7030_v19  ;;  %v7032_v51 = vadd.f32 %v6985_v37, %v6793_v50  ;;  %v3496_v9 = vpop.f32.mrb[23].mxu1  ;;  %v5649_v1 = vpop.f32.mrb[27].mxu0  ;;  %v5800_v4 = vmul.f32 %v7030_v19, %v7030_v19 }
 0x2d3   : > { %5729 = vst [vmem:[%s9451_s18 + $0xa0] sm:$0xff] %v7031_v32  ;;  %v5760_v12 = vadd.f32 %v7031_v32, %v5759_v26  ;;  %v5798_v60 = vmul.f32 %v7031_v32, %v7031_v32  ;;  %v5828_v30 = vadd.f32 %v5827_v55, %v5797_v15  ;;  %v7033_v38 = vadd.f32 %v5633_v47, %v3496_v9 }
 0x2d4   : > { %5732 = vst [vmem:[%s9451_s18 + $0xb8] sm:$0xff] %v7032_v51  ;;  %v5801_v24 = vmul.f32 %v7032_v51, %v7032_v51 }
 0x2d5   : > { %v5829_v63 = vadd.f32 %v5828_v30, %v5798_v60  ;;  %5730 = vst [vmem:[%s9451_s18 + $0xa8] sm:$0xff] %v7033_v38  ;;  %v5761_v52 = vadd.f32 %v7033_v38, %v5760_v12  ;;  %v5799_v44 = vmul.f32 %v7033_v38, %v7033_v38 }
 0x2d7   : > { %v5762_v59 = vadd.f32 %v7030_v19, %v5761_v52  ;;  %v5830_v49 = vadd.f32 %v5829_v63, %v5799_v44  ;;  %v6796_v16 = vpop.f32.mrb[24].mxu1  ;;  %v6992_v36 = vpop.f32.mrb[28].mxu0 }
 0x2d8   : > { %v7034_v53 = vadd.f32 %v6988_v10, %v6796_v16  ;;  %v3509_v56 = vpop.f32.mrb[25].mxu1  ;;  %v5662_v39 = vpop.f32.mrb[29].mxu0 }
 0x2d9   : > { %v5831_v21 = vadd.f32 %v5830_v49, %v5800_v4  ;;  %v7035_v25 = vadd.f32 %v5646_v8, %v3509_v56  ;;  %v5763_v40 = vadd.f32 %v7032_v51, %v5762_v59  ;;  %v6797_v58 = vpop.f32.mrb[26].mxu1  ;;  %v6993_v42 = vpop.f32.mrb[30].mxu0 }
 0x2da   : > { %5735 = vst [vmem:[%s9451_s18 + $0xd0] sm:$0xff] %v7034_v53  ;;  %v7036_v23 = vadd.f32 %v6989_v54, %v6797_v58  ;;  %v3512_v11 = vpop.f32.mrb[27].mxu1  ;;  %v5665_v29 = vpop.f32.mrb[31].mxu0  ;;  %v5804_v31 = vmul.f32 %v7034_v53, %v7034_v53 }
 0x2db   : > { %5733 = vst [vmem:[%s9451_s18 + $0xc0] sm:$0xff] %v7035_v25  ;;  %v5764_v35 = vadd.f32 %v7035_v25, %v5763_v40  ;;  %v5802_v48 = vmul.f32 %v7035_v25, %v7035_v25  ;;  %v5832_v7 = vadd.f32 %v5831_v21, %v5801_v24  ;;  %v7037_v45 = vadd.f32 %v5649_v1, %v3512_v11 }
 0x2dc   : > { %5736 = vst [vmem:[%s9451_s18 + $0xd8] sm:$0xff] %v7036_v23  ;;  %v5805_v57 = vmul.f32 %v7036_v23, %v7036_v23 }
 0x2dd   : > { %v5833_v46 = vadd.f32 %v5832_v7, %v5802_v48  ;;  %5734 = vst [vmem:[%s9451_s18 + $0xc8] sm:$0xff] %v7037_v45  ;;  %v5765_v41 = vadd.f32 %v7037_v45, %v5764_v35  ;;  %v5803_v3 = vmul.f32 %v7037_v45, %v7037_v45 }
 0x2df   : > { %v5766_v61 = vadd.f32 %v7034_v53, %v5765_v41  ;;  %v5834_v6 = vadd.f32 %v5833_v46, %v5803_v3  ;;  %v6800_v14 = vpop.f32.mrb[28].mxu1 }
 0x2e0   : > { %v7038_v17 = vadd.f32 %v6992_v36, %v6800_v14  ;;  %v3525_v0 = vpop.f32.mrb[29].mxu1 }
 0x2e1   : > { %v5835_v22 = vadd.f32 %v5834_v6, %v5804_v31  ;;  %v7039_v43 = vadd.f32 %v5662_v39, %v3525_v0  ;;  %v5767_v34 = vadd.f32 %v7036_v23, %v5766_v61  ;;  %v6801_v33 = vpop.f32.mrb[30].mxu1 }
 0x2e2   : > { %5739 = vst [vmem:[%s9451_s18 + $0xf0] sm:$0xff] %v7038_v17  ;;  %v7040_v37 = vadd.f32 %v6993_v42, %v6801_v33  ;;  %v3528_v28 = vpop.f32.mrb[31].mxu1 }
 0x2e3   : > { %5737 = vst [vmem:[%s9451_s18 + $0xe0] sm:$0xff] %v7039_v43  ;;  %v5768_v62 = vadd.f32 %v7039_v43, %v5767_v34  ;;  %v5806_v20 = vmul.f32 %v7039_v43, %v7039_v43  ;;  %v5836_v47 = vadd.f32 %v5835_v22, %v5805_v57  ;;  %v7041_v18 = vadd.f32 %v5665_v29, %v3528_v28 }
 0x2e4   : > { %5740 = vst [vmem:[%s9451_s18 + $0xf8] sm:$0xff] %v7040_v37 }
 0x2e5   : > { %v5837_v2 = vadd.f32 %v5836_v47, %v5806_v20  ;;  %5738 = vst [vmem:[%s9451_s18 + $0xe8] sm:$0xff] %v7041_v18  ;;  %v5769_v5 = vadd.f32 %v7041_v18, %v5768_v62  ;;  %v5807_v13 = vmul.f32 %v7041_v18, %v7041_v18 }
 0x2e6   : > { %7600 = shalt.err (!%p7597_p7)
}
 0x2e7   : > { %s7601_s23 = scalar_lea.hbm %s9492_s5, 4096  ;;  %s7605_s7 = scalar_lea.hbm %s9575_s2, 8192 }
 0x2e8   : > { %p7602_p9 = scmp.ne.s32.totalorder %s9492_s5, %s7601_s23  ;;  %p7606_p5 = scmp.lt.u32.totalorder %s9492_s5, %s9575_s2 }
 0x2e9   : > { %p7607_p11 = scmp.lt.u32.totalorder %s7605_s7, %s7601_s23  ;;  %p7609_p4 = scmp.lt.u32.totalorder %s7601_s23, %s9492_s5 }
 0x2ea   : > { %p7603_p2 = pnand %p7602_p9, %p7813_p12 }
 0x2eb   : > { %p7608_p1 = por %p7607_p11, %p7606_p5 }
 0x2ec   : > { %p7604_p0 = pneg %p7603_p2 }
 0x2ed   : > { %p7610_p6 = por %p7609_p4, %p7608_p1 }
 0x2ef   : > { %p7611_p8 = pnand %p7610_p6, %p7604_p0 }
 0x2f1   : > { %7614 = shalt.err (!%p7611_p8)
}
 0x2f2   : > { %s7699_s18 = smov 128   ;;  %s7700_s20 = smov 8   ;;  %v5808_v19 = vmul.f32 %v7038_v17, %v7038_v17  ;;  %v5770_v27 = vadd.f32 %v7038_v17, %v5769_v5  ;;  %v5838_v15 = vadd.f32 %v5837_v2, %v5807_v13  ;;  %v5809_v55 = vmul.f32 %v7040_v37, %v7040_v37 }
 0x2f3   : > { %7272 = dma.vmem_to_hbm [thread:$0]  (%p7813_p12), %s9494_s4, 4096, %s9492_s5, %s5851_s10, %s7699_s18, %s7699_s18, %s7700_s20  }
 0x2f4   : > { %v5771_v32 = vadd.f32 %v7040_v37, %v5770_v27  ;;  %v5839_v26 = vadd.f32 %v5838_v15, %v5808_v19  ;;  %s6008_s25 = sshll.u32 %s7861_s6, 1  ;;  %s6309_s4 = sshll.u32 %s7743_s16, 5 }
 0x2f5   : > { %s214_s26 = scalar_lea.vmem [#allocation9], %s6008_s25  ;;  %s9528_s27 = scalar_lea.hbm %s9576_s3, %s6309_s4 }
 0x2f6   : > { %v5772_v50 = vrot.slane %v5771_v32, 4  ;;  %v5840_v51 = vadd.f32 %v5839_v26, %v5809_v55  ;;  %s5885_s5 = sshll.u32 %s214_s26, 4  ;;  %s5856_s28 = scalar_lea.sflag [#allocation10], %s7861_s6  ;;  %s9530_s5 = int_to_ptr.vmem [resolvable:$true] %s5885_s5 }
 0x2f7   : > { %s7615_s29 = scalar_lea.vmem %s9530_s5, 32  ;;  %s7701_s16 = smov [#allocation9]  }
 0x2f8   : > { %v5773_v9 = vadd.f32 %v5772_v50, %v5771_v32  ;;  %v5841_v10 = vrot.slane %v5840_v51, 4  ;;  %p7616_p10 = scmp.ne.s32.totalorder %s9530_s5, %s7615_s29  ;;  %s7619_s23 = sshll.u32 %s7701_s16, 4  ;;  %s7620_s23 = int_to_ptr.vmem [resolvable:$false] %s7619_s23 }
 0x2f9   : > { %s7621_s30 = scalar_lea.vmem %s7620_s23, 64  ;;  %p7622_p7 = scmp.lt.s32.totalorder %s9530_s5, %s7620_s23 }
 0x2fa   : > { %v5774_v12 = vrot.slane %v5773_v9, 2  ;;  %v5842_v60 = vadd.f32 %v5841_v10, %v5840_v51  ;;  %p7617_p13 = pnand %p7616_p10, %p7813_p12  ;;  %p7623_p9 = scmp.lt.s32.totalorder %s7621_s30, %s7615_s29 }
 0x2fc   : > { %v5775_v30 = vadd.f32 %v5774_v12, %v5773_v9  ;;  %v5843_v38 = vrot.slane %v5842_v60, 2  ;;  %p7618_p3 = pneg %p7617_p13  ;;  %p7624_p2 = por %p7623_p9, %p7622_p7 }
 0x2fe   : > { %v5776_v8 = vrot.slane %v5775_v30, 1  ;;  %v5844_v54 = vadd.f32 %v5843_v38, %v5842_v60  ;;  %p7625_p0 = pnand %p7624_p2, %p7618_p3 }
 0x300   : > { %v5845_v63 = vrot.slane %v5844_v54, 1  ;;  %v5777_v52 = vadd.f32 %v5776_v8, %v5775_v30 }
 0x302   : > { %v5846_v44 = vadd.f32 %v5845_v63, %v5844_v54 }
 0x304   : > { %v5848_v1 = vsel %vm223_vm0, %v5777_v52, %v5846_v44 }
 0x305   : > { %5849 = vst [vmem:[%s214_s26] sm:$0x3] %v5848_v1 }
 0x306   : > { %7628 = shalt.err (!%p7625_p0)
}
 0x307   : > { %s7629_s6 = scalar_lea.hbm %s9528_s27, 32  ;;  %s7633_s8 = scalar_lea.hbm %s9576_s3, 64 }
 0x308   : > { %p7630_p5 = scmp.ne.s32.totalorder %s9528_s27, %s7629_s6  ;;  %p7634_p4 = scmp.lt.u32.totalorder %s9528_s27, %s9576_s3 }
 0x309   : > { %p7635_p6 = scmp.lt.u32.totalorder %s7633_s8, %s7629_s6  ;;  %p7637_p10 = scmp.lt.u32.totalorder %s7629_s6, %s9528_s27 }
 0x30a   : > { %p7631_p11 = pnand %p7630_p5, %p7813_p12 }
 0x30b   : > { %p7636_p8 = por %p7635_p6, %p7634_p4 }
 0x30c   : > { %p7632_p1 = pneg %p7631_p11 }
 0x30d   : > { %p7638_p13 = por %p7637_p10, %p7636_p8 }
 0x30f   : > { %p7639_p3 = pnand %p7638_p13, %p7632_p1 }
 0x311   : > { %7642 = shalt.err (!%p7639_p3)
}
 0x312   : > { %7273 = dma.vmem_to_hbm [thread:$0]  (%p7813_p12), %s9530_s5, 32, %s9528_s27, %s5856_s28  }
 0x313 PF: > { %s5897_s20 = sand.u32 1, %s7677_s12   ;;  %p9673_p7 = scmp.ne.s32.totalorder %s9596_s19, 0 }
 0x314   : > { %p9674_p9 = scmp.ge.s32.totalorder %s7689_s15, 2  ;;  %s5898_s25 = scalar_lea.sflag [#allocation5], %s5897_s20 }
 0x316   : > { %p7285_p2 = pnand %p9674_p9, %p9673_p7 }
 0x318   : > { %7668 = dma.done.wait (!%p7285_p2), %s5898_s25, 4096  }
 0x319   : > { %7670 = vsyncadd (!%p7285_p2), %s5898_s25, 4294963200  ;;  %s5907_s4 = scalar_lea.sflag [#allocation10], %s5897_s20 }
 0x31a   : > { %7672 = dma.done.wait (!%p7285_p2), %s5907_s4, 32  }
 0x31b   : > { %7674 = vsyncadd (!%p7285_p2), %s5907_s4, 4294967264  ;;  %p21_p12 = scmp.ge.s32.totalorder %s7778_s24, 4   ;;  %s9675_s12 = smov %s7681_s13 }
 0x31c   : > { %s9676_s13 = smov %s7685_s14  ;;  %s9677_s14 = smov %s7809_s17 }
 0x31d   : > { %s9678_s15 = smov %s7778_s24  ;;  %23 = sbr.rel (!%p21_p12) target bundleno = 8 (0x8), region = 105 }
 0x324   :  { %5912 = vsyncpa [#allocation4], 1 }
 0x325   :  { %5914 = vsyncpa [#allocation4 + $0x1], 1 }
 0x326   :  { %5915 = vsyncpa [#allocation7], 1 }
 0x327   :  { %5916 = vsyncpa [#allocation5], 1 }
 0x328   :  { %5918 = vsyncpa [#allocation5 + $0x1], 1 }
 0x329   :  { %5919 = vsyncpa [#allocation10], 1 }
 0x32a   :  { %5921 = vsyncpa [#allocation10 + $0x1], 1 }

</bundles_post_ra>
